<compile_context>
chip_gen: v5e
topology: v5e:2x2
jax: 0.10.0
libtpu: 0.0.40
codegen_flags: <defaults>
</compile_context>

<pallas_src>
import jax
import jax.numpy as jnp
from jax.experimental import pallas as pl
from jax.experimental.pallas import tpu as pltpu


# ----------------------------------------------------------------------------
# Fused kernel factory: all layers, both directions, fc epilogue.
# Refs: ids (T*Bp, 1) int32, packed weights (R, 8H) f32, out (B, O),
#       scratch (T*Bp, 2H) f32.
# ----------------------------------------------------------------------------
def _make_fused_kernel(layout, T, B, Bp):
    H = layout["H"]
    Vp = layout["Vp"]
    O = layout["O"]
    L = layout["L"]
    G = 8 * H
    TB = T * Bp

    def kernel(ids_ref, w_ref, o_ref, scr_ref):
        f32 = jnp.float32

        # Hoisted lane masks (shared by all T*L unrolled cells).
        lane = jax.lax.broadcasted_iota(jnp.int32, (Bp, G), 1)
        is_g = (lane >= 4 * H) & (lane < 6 * H)      # tanh ('g') gate lanes
        is_fwd = (lane % (2 * H)) < H                # forward-direction lanes

        # Layer-0 input = one-hot(token ids); the embedding table is folded
        # into the packed layer-0 input-projection weights (emb @ W_ih).
        vlane = jax.lax.broadcasted_iota(jnp.int32, (TB, Vp), 1)
        onehot = jnp.where(ids_ref[...] == vlane, 1.0, 0.0).astype(f32)

        h_cat = None
        for l in range(L):
            lo = layout["layers"][l]
            w_x = w_ref[lo["wx"]:lo["wx"] + lo["in_rows"], :]      # (in, 8H)
            b = w_ref[lo["b"]:lo["b"] + 1, :]                      # (1, 8H)
            whh = w_ref[lo["whh"]:lo["whh"] + 2 * H, :]            # (2H, 8H) block-diag

            layer_in = onehot if l == 0 else scr_ref[...]          # (TB, in)
            # Hoisted input projection for ALL timesteps of this layer.
            # TODO(synk): cast operands to bf16 on v6e/v7x and chunk over T for
            # the v7x 64 MiB VMEM budget when T*B*H grows beyond toy size.
            gx = jnp.dot(layer_in, w_x, preferred_element_type=f32) + b  # (TB, 8H)

            h_cat = jnp.zeros((Bp, 2 * H), f32)   # [h_fwd | h_bwd]
            c_cat = jnp.zeros((Bp, 2 * H), f32)
            last = (l == L - 1)

            # Fully-unrolled fused bidirectional recurrence; only the single
            # (Bp, 2H) x (2H, 8H) block-diag matmul + one sigmoid + one tanh
            # per step sit on the serial chain.  All row offsets are 8-aligned.
            for t in range(T):
                rf = t * Bp               # forward processes time t
                rb = (T - 1 - t) * Bp     # backward processes time T-1-t
                gx_t = jnp.where(is_fwd, gx[rf:rf + Bp, :], gx[rb:rb + Bp, :])
                gates = gx_t + jnp.dot(h_cat, whh, preferred_element_type=f32)
                # Single EUP pass: tanh(x) = 2*sigmoid(2x) - 1 on g lanes.
                s = jax.nn.sigmoid(jnp.where(is_g, gates * 2.0, gates))
                act = jnp.where(is_g, 2.0 * s - 1.0, s)
                i_c = act[:, 0 * H:2 * H]          # [i_f | i_b]
                f_c = act[:, 2 * H:4 * H]          # [f_f | f_b]
                g_c = act[:, 4 * H:6 * H]          # [g_f | g_b]
                o_c = act[:, 6 * H:8 * H]          # [o_f | o_b]
                c_cat = f_c * c_cat + i_c * g_c
                h_cat = o_c * jnp.tanh(c_cat)      # one tanh for both dirs
                if not last:
                    scr_ref[rf:rf + Bp, 0:H] = h_cat[:, 0:H]           # fwd half
                    scr_ref[rb:rb + Bp, H:2 * H] = h_cat[:, H:2 * H]   # bwd half

        # torch: hidden = cat((hidden[-2], hidden[-1]), 1) == h_cat at loop end;
        # dropout = identity (eval); fc fused as the kernel epilogue.
        wfc = w_ref[layout["fc"]:layout["fc"] + 2 * H, :]     # lanes [0:O] valid
        bfc = w_ref[layout["bfc"]:layout["bfc"] + 1, :]
        out = jnp.dot(h_cat, wfc, preferred_element_type=f32) + bfc   # (Bp, 8H)
        o_ref[...] = out[:B, :O].astype(o_ref.dtype)

    return kernel


# ----------------------------------------------------------------------------
# Full model forward (text_lengths=None path, eval mode).
# ----------------------------------------------------------------------------
def lstm_model_forward(text, packed, layout):
    """text: (B, T) int32 token ids; packed/layout from prepare_kernel_params."""
    B, T = text.shape
    Bp = max(8, ((B + 7) // 8) * 8)         # pad batch to the 8-sublane tile
    H, O = layout["H"], layout["O"]

    # Tiny host-side prep: time-major ids, batch zero-padded to Bp.
    # (The embedding gather itself happens inside the kernel via one-hot @ W.)
    ids = jnp.zeros((T, Bp), jnp.int32).at[:, :B].set(text.T.astype(jnp.int32))
    ids = ids.reshape(T * Bp, 1)

    kernel = _make_fused_kernel(layout, T, B, Bp)
    return pl.pallas_call(
        kernel,
        out_shape=jax.ShapeDtypeStruct((B, O), jnp.float32),
        in_specs=[pl.BlockSpec(memory_space=pltpu.MemorySpace.VMEM),
                  pl.BlockSpec(memory_space=pltpu.MemorySpace.VMEM)],
        out_specs=pl.BlockSpec(memory_space=pltpu.MemorySpace.VMEM),
        scratch_shapes=[pltpu.VMEM((T * Bp, 2 * H), jnp.float32)],
    )(ids, packed)


# ----------------------------------------------------------------------------
# Parameters: PyTorch-layout construction + one-time kernel-layout packing.
# ----------------------------------------------------------------------------
def make_params(key, vocab_size, embedding_dim, hidden_dim, num_layers,
                output_dim, bidirectional=True):
    assert bidirectional
    H = hidden_dim
    keys = iter(jax.random.split(key, 4 + num_layers * 16))
    scale = 1.0 / jnp.sqrt(H)

    def u(k, shape):
        return jax.random.uniform(k, shape, jnp.float32, -scale, scale)

    params = {
        "embedding": jax.random.normal(next(keys), (vocab_size, embedding_dim),
                                       jnp.float32) * 0.1,
        "lstm": [],
        "fc_w": u(next(keys), (output_dim, 2 * H)),
        "fc_b": u(next(keys), (output_dim,)),
    }
    for l in range(num_layers):
        in_dim = embedding_dim if l == 0 else 2 * H
        params["lstm"].append({
            "w_ih_f": u(next(keys), (4 * H, in_dim)),
            "w_hh_f": u(next(keys), (4 * H, H)),
            "b_ih_f": u(next(keys), (4 * H,)),
            "b_hh_f": u(next(keys), (4 * H,)),
            "w_ih_b": u(next(keys), (4 * H, in_dim)),
            "w_hh_b": u(next(keys), (4 * H, H)),
            "b_ih_b": u(next(keys), (4 * H,)),
            "b_hh_b": u(next(keys), (4 * H,)),
        })
    return params


def prepare_kernel_params(params):
    """One-time packing:
       * transpose to (in, out), re-order columns gate-major/direction-minor,
       * fold b_ih + b_hh, fold the embedding table into layer-0 W_ih,
       * build the block-diagonal (2H, 8H) recurrent weight,
       * concatenate everything into ONE (rows, 8H) f32 array with 8-aligned
         static row offsets (single weight DMA)."""
    H = params["lstm"][0]["w_hh_f"].shape[1]
    V = params["embedding"].shape[0]
    O = params["fc_w"].shape[0]
    L = len(params["lstm"])
    G = 8 * H

    def up8(n):
        return ((n + 7) // 8) * 8

    def reorder_cols(wf_T, wb_T):
        # (in, 4H) fwd + (in, 4H) bwd -> (in, 8H) [i_f i_b f_f f_b g_f g_b o_f o_b]
        cols = []
        for k in range(4):
            cols.append(wf_T[:, k * H:(k + 1) * H])
            cols.append(wb_T[:, k * H:(k + 1) * H])
        return jnp.concatenate(cols, axis=1)

    segs, row = [], 0

    def add(arr):
        nonlocal row
        arr = arr.astype(jnp.float32)
        rows = up8(arr.shape[0])
        pad = jnp.zeros((rows, G), jnp.float32)
        pad = pad.at[:arr.shape[0], :arr.shape[1]].set(arr)
        segs.append(pad)
        off = row
        row += rows
        return off, rows

    layers = []
    for l, lw in enumerate(params["lstm"]):
        wx = reorder_cols(lw["w_ih_f"].T, lw["w_ih_b"].T)                  # (in, 8H)
        if l == 0:
            # Fold the embedding: (onehot @ emb) @ W_ih == onehot @ (emb @ W_ih)
            wx = params["embedding"].astype(jnp.float32) @ wx              # (V, 8H)
        b = reorder_cols((lw["b_ih_f"] + lw["b_hh_f"]).reshape(1, 4 * H),
                         (lw["b_ih_b"] + lw["b_hh_b"]).reshape(1, 4 * H))  # (1, 8H)
        zeros = jnp.zeros((H, 4 * H), jnp.float32)
        whh = jnp.concatenate(
            [reorder_cols(lw["w_hh_f"].T, zeros),        # rows for h_fwd
             reorder_cols(zeros, lw["w_hh_b"].T)],       # rows for h_bwd
            axis=0)                                      # (2H, 8H) block-diagonal
        wx_off, wx_rows = add(wx)
        b_off, _ = add(b)
        whh_off, _ = add(whh)
        layers.append(dict(wx=wx_off, in_rows=wx_rows, b=b_off, whh=whh_off))

    fc_off, _ = add(params["fc_w"].T)                    # (2H, O), lane-padded
    bfc_off, _ = add(params["fc_b"].reshape(1, O))

    layout = dict(H=H, Vp=up8(V), O=O, L=L, layers=layers, fc=fc_off, bfc=bfc_off)
    return dict(packed=jnp.concatenate(segs, axis=0), layout=layout)


# ----------------------------------------------------------------------------
# Pure-JAX reference (PyTorch semantics) for a correctness check.
# ----------------------------------------------------------------------------
def reference_forward(text, params):
    x = params["embedding"][text].astype(jnp.float32)     # (B, T, E)
    B, T = text.shape
    H = params["lstm"][0]["w_hh_f"].shape[1]

    hf = hb = None
    for lw in params["lstm"]:
        def run(w_ih, w_hh, b_ih, b_hh, reverse, x_seq):
            h = jnp.zeros((B, H), jnp.float32)
            c = jnp.zeros((B, H), jnp.float32)
            outs = [None] * T
            order = range(T - 1, -1, -1) if reverse else range(T)
            for t in order:
                g = x_seq[:, t, :] @ w_ih.T + b_ih + h @ w_hh.T + b_hh
                i = jax.nn.sigmoid(g[:, 0:H])
                f = jax.nn.sigmoid(g[:, H:2 * H])
                gg = jnp.tanh(g[:, 2 * H:3 * H])
                o = jax.nn.sigmoid(g[:, 3 * H:4 * H])
                c = f * c + i * gg
                h = o * jnp.tanh(c)
                outs[t] = h
            return jnp.stack(outs, axis=1), h
        of, hf = run(lw["w_ih_f"], lw["w_hh_f"], lw["b_ih_f"], lw["b_hh_f"], False, x)
        ob, hb = run(lw["w_ih_b"], lw["w_hh_b"], lw["b_ih_b"], lw["b_hh_b"], True, x)
        x = jnp.concatenate([of, ob], axis=-1)
    hidden = jnp.concatenate([hf, hb], axis=-1)
    return hidden @ params["fc_w"].T + params["fc_b"]


if __name__ == "__main__":
    # Small, module-consistent shapes.
    vocab_size = 50
    embedding_dim = 16
    hidden_dim = 32
    num_layers = 2
    output_dim = 2
    batch = 2
    seq = 8

    key = jax.random.PRNGKey(0)
    k_param, k_text = jax.random.split(key)
    params = make_params(k_param, vocab_size, embedding_dim, hidden_dim,
                         num_layers, output_dim, bidirectional=True)
    kp = prepare_kernel_params(params)
    text = jax.random.randint(k_text, (batch, seq), 0, vocab_size, jnp.int32)

    layout = kp["layout"]   # static Python ints, captured by closure (not traced)
    fwd = jax.jit(lambda t, w: lstm_model_forward(t, w, layout))
    logits = fwd(text, kp["packed"])
    jax.block_until_ready(logits)

    assert logits.shape == (batch, output_dim)
    assert bool(jnp.all(jnp.isfinite(logits)))

    ref = jax.jit(reference_forward)(text, params)
    err = float(jnp.max(jnp.abs(logits - ref)))
    assert err < 3e-2, f"mismatch vs pure-JAX reference: {err}"

    print("KERNEL_OK")
</pallas_src>

<mosaic_0001>
module attributes {stable_mosaic.version = 11 : i64} {
  func.func @kernel(%arg0: memref<64x1xi32, #tpu.memory_space<vmem>>, %arg1: memref<336x256xf32, #tpu.memory_space<vmem>>, %arg2: memref<2x2xf32, #tpu.memory_space<vmem>>, %arg3: memref<64x64xf32, #tpu.memory_space<vmem>>) attributes {dimension_semantics = [], scalar_prefetch = 0 : i64, scratch_operands = 1 : i64, tpu.core_type = #tpu.core_type<tc>} {
    %0 = tpu.iota {dimensions = array<i32: 1>} : vector<8x256xi32>
    %c128_i32 = arith.constant 128 : i32
    %1 = vector.broadcast %c128_i32 : i32 to vector<8x256xi32>
    %2 = arith.cmpi sge, %0, %1 : vector<8x256xi32>
    %c192_i32 = arith.constant 192 : i32
    %3 = vector.broadcast %c192_i32 : i32 to vector<8x256xi32>
    %4 = arith.cmpi slt, %0, %3 : vector<8x256xi32>
    %5 = arith.andi %2, %4 : vector<8x256xi1>
    %c64_i32 = arith.constant 64 : i32
    %c0_i32 = arith.constant 0 : i32
    %6 = arith.cmpi eq, %c64_i32, %c0_i32 : i32
    %c1_i32 = arith.constant 1 : i32
    %7 = arith.select %6, %c1_i32, %c64_i32 : i32
    %8 = vector.broadcast %7 : i32 to vector<8x256xi32>
    %9 = arith.remsi %0, %8 : vector<8x256xi32>
    %c0_i32_0 = arith.constant 0 : i32
    %10 = vector.broadcast %c0_i32_0 : i32 to vector<8x256xi32>
    %11 = arith.cmpi ne, %9, %10 : vector<8x256xi32>
    %c0_i32_1 = arith.constant 0 : i32
    %12 = vector.broadcast %c0_i32_1 : i32 to vector<8x256xi32>
    %13 = arith.cmpi slt, %9, %12 : vector<8x256xi32>
    %c0_i32_2 = arith.constant 0 : i32
    %14 = arith.cmpi slt, %7, %c0_i32_2 : i32
    %15 = vector.broadcast %14 : i1 to vector<8x256xi1>
    %16 = vector.broadcast %15 : vector<8x256xi1> to vector<8x256xi1>
    %17 = arith.xori %13, %16 : vector<8x256xi1>
    %18 = arith.andi %17, %11 : vector<8x256xi1>
    %19 = vector.broadcast %7 : i32 to vector<8x256xi32>
    %20 = arith.addi %9, %19 : vector<8x256xi32>
    %21 = arith.select %18, %20, %9 : vector<8x256xi1>, vector<8x256xi32>
    %c32_i32 = arith.constant 32 : i32
    %22 = vector.broadcast %c32_i32 : i32 to vector<8x256xi32>
    %23 = arith.cmpi slt, %21, %22 : vector<8x256xi32>
    %24 = tpu.iota {dimensions = array<i32: 1>} : vector<64x56xi32>
    %c0 = arith.constant 0 : index
    %c0_3 = arith.constant 0 : index
    %25 = vector.load %arg0[%c0, %c0_3] : memref<64x1xi32, #tpu.memory_space<vmem>>, vector<64x1xi32>
    %26 = vector.broadcast %25 : vector<64x1xi32> to vector<64x56xi32>
    %27 = arith.cmpi eq, %26, %24 : vector<64x56xi32>
    %cst = arith.constant 1.000000e+00 : f32
    %cst_4 = arith.constant 0.000000e+00 : f32
    %28 = vector.broadcast %cst : f32 to vector<64x56xf32>
    %29 = vector.broadcast %cst_4 : f32 to vector<64x56xf32>
    %30 = arith.select %27, %28, %29 : vector<64x56xi1>, vector<64x56xf32>
    %c0_5 = arith.constant 0 : index
    %c0_6 = arith.constant 0 : index
    %31 = vector.load %arg1[%c0_5, %c0_6] : memref<336x256xf32, #tpu.memory_space<vmem>>, vector<56x256xf32>
    %c56 = arith.constant 56 : index
    %c0_7 = arith.constant 0 : index
    %32 = vector.load %arg1[%c56, %c0_7] : memref<336x256xf32, #tpu.memory_space<vmem>>, vector<1x256xf32>
    %c64 = arith.constant 64 : index
    %c0_8 = arith.constant 0 : index
    %33 = vector.load %arg1[%c64, %c0_8] : memref<336x256xf32, #tpu.memory_space<vmem>>, vector<64x256xf32>
    %cst_9 = arith.constant dense<0.000000e+00> : vector<64x256xf32>
    %34 = tpu.matmul %30, %31, %cst_9 {dimension_numbers = #tpu.dot_dimension_numbers<[1], [0], [0], [1], [0, 0, 1, 1], [], []>} : vector<64x56xf32>, vector<56x256xf32>, vector<64x256xf32> -> vector<64x256xf32>
    %35 = vector.broadcast %32 : vector<1x256xf32> to vector<64x256xf32>
    %36 = arith.addf %34, %35 : vector<64x256xf32>
    %cst_10 = arith.constant 0.000000e+00 : f32
    %37 = vector.broadcast %cst_10 : f32 to vector<8x64xf32>
    %cst_11 = arith.constant 0.000000e+00 : f32
    %38 = vector.broadcast %cst_11 : f32 to vector<8x64xf32>
    %39 = vector.extract_strided_slice %36 {offsets = [0, 0], sizes = [8, 256], strides = [1, 1]} : vector<64x256xf32> to vector<8x256xf32>
    %40 = vector.extract_strided_slice %36 {offsets = [56, 0], sizes = [8, 256], strides = [1, 1]} : vector<64x256xf32> to vector<8x256xf32>
    %41 = arith.select %23, %39, %40 : vector<8x256xi1>, vector<8x256xf32>
    %cst_12 = arith.constant dense<0.000000e+00> : vector<8x256xf32>
    %42 = tpu.matmul %37, %33, %cst_12 {dimension_numbers = #tpu.dot_dimension_numbers<[1], [0], [0], [1], [0, 0, 1, 1], [], []>} : vector<8x64xf32>, vector<64x256xf32>, vector<8x256xf32> -> vector<8x256xf32>
    %43 = arith.addf %41, %42 : vector<8x256xf32>
    %cst_13 = arith.constant 2.000000e+00 : f32
    %44 = vector.broadcast %cst_13 : f32 to vector<8x256xf32>
    %45 = arith.mulf %43, %44 : vector<8x256xf32>
    %46 = arith.select %5, %45, %43 : vector<8x256xi1>, vector<8x256xf32>
    %47 = arith.negf %46 : vector<8x256xf32>
    %48 = math.exp %47 : vector<8x256xf32>
    %cst_14 = arith.constant 1.000000e+00 : f32
    %49 = vector.broadcast %cst_14 : f32 to vector<8x256xf32>
    %50 = arith.addf %49, %48 : vector<8x256xf32>
    %51 = arith.divf %49, %50 : vector<8x256xf32>
    %cst_15 = arith.constant 2.000000e+00 : f32
    %52 = vector.broadcast %cst_15 : f32 to vector<8x256xf32>
    %53 = arith.mulf %52, %51 : vector<8x256xf32>
    %cst_16 = arith.constant 1.000000e+00 : f32
    %54 = vector.broadcast %cst_16 : f32 to vector<8x256xf32>
    %55 = arith.subf %53, %54 : vector<8x256xf32>
    %56 = arith.select %5, %55, %51 : vector<8x256xi1>, vector<8x256xf32>
    %57 = vector.extract_strided_slice %56 {offsets = [0, 0], sizes = [8, 64], strides = [1, 1]} : vector<8x256xf32> to vector<8x64xf32>
    %58 = vector.extract_strided_slice %56 {offsets = [0, 64], sizes = [8, 64], strides = [1, 1]} : vector<8x256xf32> to vector<8x64xf32>
    %59 = vector.extract_strided_slice %56 {offsets = [0, 128], sizes = [8, 64], strides = [1, 1]} : vector<8x256xf32> to vector<8x64xf32>
    %60 = vector.extract_strided_slice %56 {offsets = [0, 192], sizes = [8, 64], strides = [1, 1]} : vector<8x256xf32> to vector<8x64xf32>
    %61 = arith.mulf %58, %38 : vector<8x64xf32>
    %62 = arith.mulf %57, %59 : vector<8x64xf32>
    %63 = arith.addf %61, %62 : vector<8x64xf32>
    %64 = math.tanh %63 : vector<8x64xf32>
    %65 = arith.mulf %60, %64 : vector<8x64xf32>
    %66 = vector.extract_strided_slice %65 {offsets = [0, 0], sizes = [8, 32], strides = [1, 1]} : vector<8x64xf32> to vector<8x32xf32>
    %c0_17 = arith.constant 0 : index
    %c0_18 = arith.constant 0 : index
    %67 = vector.load %arg3[%c0_17, %c0_18] : memref<64x64xf32, #tpu.memory_space<vmem>>, vector<8x32xf32>
    tpu.vector_store %arg3[%c0_17, %c0_18], %66 {strides = array<i32>} : memref<64x64xf32, #tpu.memory_space<vmem>>, vector<8x32xf32>,
    %68 = vector.extract_strided_slice %65 {offsets = [0, 32], sizes = [8, 32], strides = [1, 1]} : vector<8x64xf32> to vector<8x32xf32>
    %c56_19 = arith.constant 56 : index
    %c32 = arith.constant 32 : index
    %69 = vector.load %arg3[%c56_19, %c32] : memref<64x64xf32, #tpu.memory_space<vmem>>, vector<8x32xf32>
    tpu.vector_store %arg3[%c56_19, %c32], %68 {strides = array<i32>} : memref<64x64xf32, #tpu.memory_space<vmem>>, vector<8x32xf32>,
    %70 = vector.extract_strided_slice %36 {offsets = [8, 0], sizes = [8, 256], strides = [1, 1]} : vector<64x256xf32> to vector<8x256xf32>
    %71 = vector.extract_strided_slice %36 {offsets = [48, 0], sizes = [8, 256], strides = [1, 1]} : vector<64x256xf32> to vector<8x256xf32>
    %72 = arith.select %23, %70, %71 : vector<8x256xi1>, vector<8x256xf32>
    %cst_20 = arith.constant dense<0.000000e+00> : vector<8x256xf32>
    %73 = tpu.matmul %65, %33, %cst_20 {dimension_numbers = #tpu.dot_dimension_numbers<[1], [0], [0], [1], [0, 0, 1, 1], [], []>} : vector<8x64xf32>, vector<64x256xf32>, vector<8x256xf32> -> vector<8x256xf32>
    %74 = arith.addf %72, %73 : vector<8x256xf32>
    %cst_21 = arith.constant 2.000000e+00 : f32
    %75 = vector.broadcast %cst_21 : f32 to vector<8x256xf32>
    %76 = arith.mulf %74, %75 : vector<8x256xf32>
    %77 = arith.select %5, %76, %74 : vector<8x256xi1>, vector<8x256xf32>
    %78 = arith.negf %77 : vector<8x256xf32>
    %79 = math.exp %78 : vector<8x256xf32>
    %cst_22 = arith.constant 1.000000e+00 : f32
    %80 = vector.broadcast %cst_22 : f32 to vector<8x256xf32>
    %81 = arith.addf %80, %79 : vector<8x256xf32>
    %82 = arith.divf %80, %81 : vector<8x256xf32>
    %cst_23 = arith.constant 2.000000e+00 : f32
    %83 = vector.broadcast %cst_23 : f32 to vector<8x256xf32>
    %84 = arith.mulf %83, %82 : vector<8x256xf32>
    %cst_24 = arith.constant 1.000000e+00 : f32
    %85 = vector.broadcast %cst_24 : f32 to vector<8x256xf32>
    %86 = arith.subf %84, %85 : vector<8x256xf32>
    %87 = arith.select %5, %86, %82 : vector<8x256xi1>, vector<8x256xf32>
    %88 = vector.extract_strided_slice %87 {offsets = [0, 0], sizes = [8, 64], strides = [1, 1]} : vector<8x256xf32> to vector<8x64xf32>
    %89 = vector.extract_strided_slice %87 {offsets = [0, 64], sizes = [8, 64], strides = [1, 1]} : vector<8x256xf32> to vector<8x64xf32>
    %90 = vector.extract_strided_slice %87 {offsets = [0, 128], sizes = [8, 64], strides = [1, 1]} : vector<8x256xf32> to vector<8x64xf32>
    %91 = vector.extract_strided_slice %87 {offsets = [0, 192], sizes = [8, 64], strides = [1, 1]} : vector<8x256xf32> to vector<8x64xf32>
    %92 = arith.mulf %89, %63 : vector<8x64xf32>
    %93 = arith.mulf %88, %90 : vector<8x64xf32>
    %94 = arith.addf %92, %93 : vector<8x64xf32>
    %95 = math.tanh %94 : vector<8x64xf32>
    %96 = arith.mulf %91, %95 : vector<8x64xf32>
    %97 = vector.extract_strided_slice %96 {offsets = [0, 0], sizes = [8, 32], strides = [1, 1]} : vector<8x64xf32> to vector<8x32xf32>
    %c8 = arith.constant 8 : index
    %c0_25 = arith.constant 0 : index
    %98 = vector.load %arg3[%c8, %c0_25] : memref<64x64xf32, #tpu.memory_space<vmem>>, vector<8x32xf32>
    tpu.vector_store %arg3[%c8, %c0_25], %97 {strides = array<i32>} : memref<64x64xf32, #tpu.memory_space<vmem>>, vector<8x32xf32>,
    %99 = vector.extract_strided_slice %96 {offsets = [0, 32], sizes = [8, 32], strides = [1, 1]} : vector<8x64xf32> to vector<8x32xf32>
    %c48 = arith.constant 48 : index
    %c32_26 = arith.constant 32 : index
    %100 = vector.load %arg3[%c48, %c32_26] : memref<64x64xf32, #tpu.memory_space<vmem>>, vector<8x32xf32>
    tpu.vector_store %arg3[%c48, %c32_26], %99 {strides = array<i32>} : memref<64x64xf32, #tpu.memory_space<vmem>>, vector<8x32xf32>,
    %101 = vector.extract_strided_slice %36 {offsets = [16, 0], sizes = [8, 256], strides = [1, 1]} : vector<64x256xf32> to vector<8x256xf32>
    %102 = vector.extract_strided_slice %36 {offsets = [40, 0], sizes = [8, 256], strides = [1, 1]} : vector<64x256xf32> to vector<8x256xf32>
    %103 = arith.select %23, %101, %102 : vector<8x256xi1>, vector<8x256xf32>
    %cst_27 = arith.constant dense<0.000000e+00> : vector<8x256xf32>
    %104 = tpu.matmul %96, %33, %cst_27 {dimension_numbers = #tpu.dot_dimension_numbers<[1], [0], [0], [1], [0, 0, 1, 1], [], []>} : vector<8x64xf32>, vector<64x256xf32>, vector<8x256xf32> -> vector<8x256xf32>
    %105 = arith.addf %103, %104 : vector<8x256xf32>
    %cst_28 = arith.constant 2.000000e+00 : f32
    %106 = vector.broadcast %cst_28 : f32 to vector<8x256xf32>
    %107 = arith.mulf %105, %106 : vector<8x256xf32>
    %108 = arith.select %5, %107, %105 : vector<8x256xi1>, vector<8x256xf32>
    %109 = arith.negf %108 : vector<8x256xf32>
    %110 = math.exp %109 : vector<8x256xf32>
    %cst_29 = arith.constant 1.000000e+00 : f32
    %111 = vector.broadcast %cst_29 : f32 to vector<8x256xf32>
    %112 = arith.addf %111, %110 : vector<8x256xf32>
    %113 = arith.divf %111, %112 : vector<8x256xf32>
    %cst_30 = arith.constant 2.000000e+00 : f32
    %114 = vector.broadcast %cst_30 : f32 to vector<8x256xf32>
    %115 = arith.mulf %114, %113 : vector<8x256xf32>
    %cst_31 = arith.constant 1.000000e+00 : f32
    %116 = vector.broadcast %cst_31 : f32 to vector<8x256xf32>
    %117 = arith.subf %115, %116 : vector<8x256xf32>
    %118 = arith.select %5, %117, %113 : vector<8x256xi1>, vector<8x256xf32>
    %119 = vector.extract_strided_slice %118 {offsets = [0, 0], sizes = [8, 64], strides = [1, 1]} : vector<8x256xf32> to vector<8x64xf32>
    %120 = vector.extract_strided_slice %118 {offsets = [0, 64], sizes = [8, 64], strides = [1, 1]} : vector<8x256xf32> to vector<8x64xf32>
    %121 = vector.extract_strided_slice %118 {offsets = [0, 128], sizes = [8, 64], strides = [1, 1]} : vector<8x256xf32> to vector<8x64xf32>
    %122 = vector.extract_strided_slice %118 {offsets = [0, 192], sizes = [8, 64], strides = [1, 1]} : vector<8x256xf32> to vector<8x64xf32>
    %123 = arith.mulf %120, %94 : vector<8x64xf32>
    %124 = arith.mulf %119, %121 : vector<8x64xf32>
    %125 = arith.addf %123, %124 : vector<8x64xf32>
    %126 = math.tanh %125 : vector<8x64xf32>
    %127 = arith.mulf %122, %126 : vector<8x64xf32>
    %128 = vector.extract_strided_slice %127 {offsets = [0, 0], sizes = [8, 32], strides = [1, 1]} : vector<8x64xf32> to vector<8x32xf32>
    %c16 = arith.constant 16 : index
    %c0_32 = arith.constant 0 : index
    %129 = vector.load %arg3[%c16, %c0_32] : memref<64x64xf32, #tpu.memory_space<vmem>>, vector<8x32xf32>
    tpu.vector_store %arg3[%c16, %c0_32], %128 {strides = array<i32>} : memref<64x64xf32, #tpu.memory_space<vmem>>, vector<8x32xf32>,
    %130 = vector.extract_strided_slice %127 {offsets = [0, 32], sizes = [8, 32], strides = [1, 1]} : vector<8x64xf32> to vector<8x32xf32>
    %c40 = arith.constant 40 : index
    %c32_33 = arith.constant 32 : index
    %131 = vector.load %arg3[%c40, %c32_33] : memref<64x64xf32, #tpu.memory_space<vmem>>, vector<8x32xf32>
    tpu.vector_store %arg3[%c40, %c32_33], %130 {strides = array<i32>} : memref<64x64xf32, #tpu.memory_space<vmem>>, vector<8x32xf32>,
    %132 = vector.extract_strided_slice %36 {offsets = [24, 0], sizes = [8, 256], strides = [1, 1]} : vector<64x256xf32> to vector<8x256xf32>
    %133 = vector.extract_strided_slice %36 {offsets = [32, 0], sizes = [8, 256], strides = [1, 1]} : vector<64x256xf32> to vector<8x256xf32>
    %134 = arith.select %23, %132, %133 : vector<8x256xi1>, vector<8x256xf32>
    %cst_34 = arith.constant dense<0.000000e+00> : vector<8x256xf32>
    %135 = tpu.matmul %127, %33, %cst_34 {dimension_numbers = #tpu.dot_dimension_numbers<[1], [0], [0], [1], [0, 0, 1, 1], [], []>} : vector<8x64xf32>, vector<64x256xf32>, vector<8x256xf32> -> vector<8x256xf32>
    %136 = arith.addf %134, %135 : vector<8x256xf32>
    %cst_35 = arith.constant 2.000000e+00 : f32
    %137 = vector.broadcast %cst_35 : f32 to vector<8x256xf32>
    %138 = arith.mulf %136, %137 : vector<8x256xf32>
    %139 = arith.select %5, %138, %136 : vector<8x256xi1>, vector<8x256xf32>
    %140 = arith.negf %139 : vector<8x256xf32>
    %141 = math.exp %140 : vector<8x256xf32>
    %cst_36 = arith.constant 1.000000e+00 : f32
    %142 = vector.broadcast %cst_36 : f32 to vector<8x256xf32>
    %143 = arith.addf %142, %141 : vector<8x256xf32>
    %144 = arith.divf %142, %143 : vector<8x256xf32>
    %cst_37 = arith.constant 2.000000e+00 : f32
    %145 = vector.broadcast %cst_37 : f32 to vector<8x256xf32>
    %146 = arith.mulf %145, %144 : vector<8x256xf32>
    %cst_38 = arith.constant 1.000000e+00 : f32
    %147 = vector.broadcast %cst_38 : f32 to vector<8x256xf32>
    %148 = arith.subf %146, %147 : vector<8x256xf32>
    %149 = arith.select %5, %148, %144 : vector<8x256xi1>, vector<8x256xf32>
    %150 = vector.extract_strided_slice %149 {offsets = [0, 0], sizes = [8, 64], strides = [1, 1]} : vector<8x256xf32> to vector<8x64xf32>
    %151 = vector.extract_strided_slice %149 {offsets = [0, 64], sizes = [8, 64], strides = [1, 1]} : vector<8x256xf32> to vector<8x64xf32>
    %152 = vector.extract_strided_slice %149 {offsets = [0, 128], sizes = [8, 64], strides = [1, 1]} : vector<8x256xf32> to vector<8x64xf32>
    %153 = vector.extract_strided_slice %149 {offsets = [0, 192], sizes = [8, 64], strides = [1, 1]} : vector<8x256xf32> to vector<8x64xf32>
    %154 = arith.mulf %151, %125 : vector<8x64xf32>
    %155 = arith.mulf %150, %152 : vector<8x64xf32>
    %156 = arith.addf %154, %155 : vector<8x64xf32>
    %157 = math.tanh %156 : vector<8x64xf32>
    %158 = arith.mulf %153, %157 : vector<8x64xf32>
    %159 = vector.extract_strided_slice %158 {offsets = [0, 0], sizes = [8, 32], strides = [1, 1]} : vector<8x64xf32> to vector<8x32xf32>
    %c24 = arith.constant 24 : index
    %c0_39 = arith.constant 0 : index
    %160 = vector.load %arg3[%c24, %c0_39] : memref<64x64xf32, #tpu.memory_space<vmem>>, vector<8x32xf32>
    tpu.vector_store %arg3[%c24, %c0_39], %159 {strides = array<i32>} : memref<64x64xf32, #tpu.memory_space<vmem>>, vector<8x32xf32>,
    %161 = vector.extract_strided_slice %158 {offsets = [0, 32], sizes = [8, 32], strides = [1, 1]} : vector<8x64xf32> to vector<8x32xf32>
    %c32_40 = arith.constant 32 : index
    %c32_41 = arith.constant 32 : index
    %162 = vector.load %arg3[%c32_40, %c32_41] : memref<64x64xf32, #tpu.memory_space<vmem>>, vector<8x32xf32>
    tpu.vector_store %arg3[%c32_40, %c32_41], %161 {strides = array<i32>} : memref<64x64xf32, #tpu.memory_space<vmem>>, vector<8x32xf32>,
    %163 = vector.extract_strided_slice %36 {offsets = [32, 0], sizes = [8, 256], strides = [1, 1]} : vector<64x256xf32> to vector<8x256xf32>
    %164 = vector.extract_strided_slice %36 {offsets = [24, 0], sizes = [8, 256], strides = [1, 1]} : vector<64x256xf32> to vector<8x256xf32>
    %165 = arith.select %23, %163, %164 : vector<8x256xi1>, vector<8x256xf32>
    %cst_42 = arith.constant dense<0.000000e+00> : vector<8x256xf32>
    %166 = tpu.matmul %158, %33, %cst_42 {dimension_numbers = #tpu.dot_dimension_numbers<[1], [0], [0], [1], [0, 0, 1, 1], [], []>} : vector<8x64xf32>, vector<64x256xf32>, vector<8x256xf32> -> vector<8x256xf32>
    %167 = arith.addf %165, %166 : vector<8x256xf32>
    %cst_43 = arith.constant 2.000000e+00 : f32
    %168 = vector.broadcast %cst_43 : f32 to vector<8x256xf32>
    %169 = arith.mulf %167, %168 : vector<8x256xf32>
    %170 = arith.select %5, %169, %167 : vector<8x256xi1>, vector<8x256xf32>
    %171 = arith.negf %170 : vector<8x256xf32>
    %172 = math.exp %171 : vector<8x256xf32>
    %cst_44 = arith.constant 1.000000e+00 : f32
    %173 = vector.broadcast %cst_44 : f32 to vector<8x256xf32>
    %174 = arith.addf %173, %172 : vector<8x256xf32>
    %175 = arith.divf %173, %174 : vector<8x256xf32>
    %cst_45 = arith.constant 2.000000e+00 : f32
    %176 = vector.broadcast %cst_45 : f32 to vector<8x256xf32>
    %177 = arith.mulf %176, %175 : vector<8x256xf32>
    %cst_46 = arith.constant 1.000000e+00 : f32
    %178 = vector.broadcast %cst_46 : f32 to vector<8x256xf32>
    %179 = arith.subf %177, %178 : vector<8x256xf32>
    %180 = arith.select %5, %179, %175 : vector<8x256xi1>, vector<8x256xf32>
    %181 = vector.extract_strided_slice %180 {offsets = [0, 0], sizes = [8, 64], strides = [1, 1]} : vector<8x256xf32> to vector<8x64xf32>
    %182 = vector.extract_strided_slice %180 {offsets = [0, 64], sizes = [8, 64], strides = [1, 1]} : vector<8x256xf32> to vector<8x64xf32>
    %183 = vector.extract_strided_slice %180 {offsets = [0, 128], sizes = [8, 64], strides = [1, 1]} : vector<8x256xf32> to vector<8x64xf32>
    %184 = vector.extract_strided_slice %180 {offsets = [0, 192], sizes = [8, 64], strides = [1, 1]} : vector<8x256xf32> to vector<8x64xf32>
    %185 = arith.mulf %182, %156 : vector<8x64xf32>
    %186 = arith.mulf %181, %183 : vector<8x64xf32>
    %187 = arith.addf %185, %186 : vector<8x64xf32>
    %188 = math.tanh %187 : vector<8x64xf32>
    %189 = arith.mulf %184, %188 : vector<8x64xf32>
    %190 = vector.extract_strided_slice %189 {offsets = [0, 0], sizes = [8, 32], strides = [1, 1]} : vector<8x64xf32> to vector<8x32xf32>
    %c32_47 = arith.constant 32 : index
    %c0_48 = arith.constant 0 : index
    %191 = vector.load %arg3[%c32_47, %c0_48] : memref<64x64xf32, #tpu.memory_space<vmem>>, vector<8x32xf32>
    tpu.vector_store %arg3[%c32_47, %c0_48], %190 {strides = array<i32>} : memref<64x64xf32, #tpu.memory_space<vmem>>, vector<8x32xf32>,
    %192 = vector.extract_strided_slice %189 {offsets = [0, 32], sizes = [8, 32], strides = [1, 1]} : vector<8x64xf32> to vector<8x32xf32>
    %c24_49 = arith.constant 24 : index
    %c32_50 = arith.constant 32 : index
    %193 = vector.load %arg3[%c24_49, %c32_50] : memref<64x64xf32, #tpu.memory_space<vmem>>, vector<8x32xf32>
    tpu.vector_store %arg3[%c24_49, %c32_50], %192 {strides = array<i32>} : memref<64x64xf32, #tpu.memory_space<vmem>>, vector<8x32xf32>,
    %194 = vector.extract_strided_slice %36 {offsets = [40, 0], sizes = [8, 256], strides = [1, 1]} : vector<64x256xf32> to vector<8x256xf32>
    %195 = vector.extract_strided_slice %36 {offsets = [16, 0], sizes = [8, 256], strides = [1, 1]} : vector<64x256xf32> to vector<8x256xf32>
    %196 = arith.select %23, %194, %195 : vector<8x256xi1>, vector<8x256xf32>
    %cst_51 = arith.constant dense<0.000000e+00> : vector<8x256xf32>
    %197 = tpu.matmul %189, %33, %cst_51 {dimension_numbers = #tpu.dot_dimension_numbers<[1], [0], [0], [1], [0, 0, 1, 1], [], []>} : vector<8x64xf32>, vector<64x256xf32>, vector<8x256xf32> -> vector<8x256xf32>
    %198 = arith.addf %196, %197 : vector<8x256xf32>
    %cst_52 = arith.constant 2.000000e+00 : f32
    %199 = vector.broadcast %cst_52 : f32 to vector<8x256xf32>
    %200 = arith.mulf %198, %199 : vector<8x256xf32>
    %201 = arith.select %5, %200, %198 : vector<8x256xi1>, vector<8x256xf32>
    %202 = arith.negf %201 : vector<8x256xf32>
    %203 = math.exp %202 : vector<8x256xf32>
    %cst_53 = arith.constant 1.000000e+00 : f32
    %204 = vector.broadcast %cst_53 : f32 to vector<8x256xf32>
    %205 = arith.addf %204, %203 : vector<8x256xf32>
    %206 = arith.divf %204, %205 : vector<8x256xf32>
    %cst_54 = arith.constant 2.000000e+00 : f32
    %207 = vector.broadcast %cst_54 : f32 to vector<8x256xf32>
    %208 = arith.mulf %207, %206 : vector<8x256xf32>
    %cst_55 = arith.constant 1.000000e+00 : f32
    %209 = vector.broadcast %cst_55 : f32 to vector<8x256xf32>
    %210 = arith.subf %208, %209 : vector<8x256xf32>
    %211 = arith.select %5, %210, %206 : vector<8x256xi1>, vector<8x256xf32>
    %212 = vector.extract_strided_slice %211 {offsets = [0, 0], sizes = [8, 64], strides = [1, 1]} : vector<8x256xf32> to vector<8x64xf32>
    %213 = vector.extract_strided_slice %211 {offsets = [0, 64], sizes = [8, 64], strides = [1, 1]} : vector<8x256xf32> to vector<8x64xf32>
    %214 = vector.extract_strided_slice %211 {offsets = [0, 128], sizes = [8, 64], strides = [1, 1]} : vector<8x256xf32> to vector<8x64xf32>
    %215 = vector.extract_strided_slice %211 {offsets = [0, 192], sizes = [8, 64], strides = [1, 1]} : vector<8x256xf32> to vector<8x64xf32>
    %216 = arith.mulf %213, %187 : vector<8x64xf32>
    %217 = arith.mulf %212, %214 : vector<8x64xf32>
    %218 = arith.addf %216, %217 : vector<8x64xf32>
    %219 = math.tanh %218 : vector<8x64xf32>
    %220 = arith.mulf %215, %219 : vector<8x64xf32>
    %221 = vector.extract_strided_slice %220 {offsets = [0, 0], sizes = [8, 32], strides = [1, 1]} : vector<8x64xf32> to vector<8x32xf32>
    %c40_56 = arith.constant 40 : index
    %c0_57 = arith.constant 0 : index
    %222 = vector.load %arg3[%c40_56, %c0_57] : memref<64x64xf32, #tpu.memory_space<vmem>>, vector<8x32xf32>
    tpu.vector_store %arg3[%c40_56, %c0_57], %221 {strides = array<i32>} : memref<64x64xf32, #tpu.memory_space<vmem>>, vector<8x32xf32>,
    %223 = vector.extract_strided_slice %220 {offsets = [0, 32], sizes = [8, 32], strides = [1, 1]} : vector<8x64xf32> to vector<8x32xf32>
    %c16_58 = arith.constant 16 : index
    %c32_59 = arith.constant 32 : index
    %224 = vector.load %arg3[%c16_58, %c32_59] : memref<64x64xf32, #tpu.memory_space<vmem>>, vector<8x32xf32>
    tpu.vector_store %arg3[%c16_58, %c32_59], %223 {strides = array<i32>} : memref<64x64xf32, #tpu.memory_space<vmem>>, vector<8x32xf32>,
    %225 = vector.extract_strided_slice %36 {offsets = [48, 0], sizes = [8, 256], strides = [1, 1]} : vector<64x256xf32> to vector<8x256xf32>
    %226 = vector.extract_strided_slice %36 {offsets = [8, 0], sizes = [8, 256], strides = [1, 1]} : vector<64x256xf32> to vector<8x256xf32>
    %227 = arith.select %23, %225, %226 : vector<8x256xi1>, vector<8x256xf32>
    %cst_60 = arith.constant dense<0.000000e+00> : vector<8x256xf32>
    %228 = tpu.matmul %220, %33, %cst_60 {dimension_numbers = #tpu.dot_dimension_numbers<[1], [0], [0], [1], [0, 0, 1, 1], [], []>} : vector<8x64xf32>, vector<64x256xf32>, vector<8x256xf32> -> vector<8x256xf32>
    %229 = arith.addf %227, %228 : vector<8x256xf32>
    %cst_61 = arith.constant 2.000000e+00 : f32
    %230 = vector.broadcast %cst_61 : f32 to vector<8x256xf32>
    %231 = arith.mulf %229, %230 : vector<8x256xf32>
    %232 = arith.select %5, %231, %229 : vector<8x256xi1>, vector<8x256xf32>
    %233 = arith.negf %232 : vector<8x256xf32>
    %234 = math.exp %233 : vector<8x256xf32>
    %cst_62 = arith.constant 1.000000e+00 : f32
    %235 = vector.broadcast %cst_62 : f32 to vector<8x256xf32>
    %236 = arith.addf %235, %234 : vector<8x256xf32>
    %237 = arith.divf %235, %236 : vector<8x256xf32>
    %cst_63 = arith.constant 2.000000e+00 : f32
    %238 = vector.broadcast %cst_63 : f32 to vector<8x256xf32>
    %239 = arith.mulf %238, %237 : vector<8x256xf32>
    %cst_64 = arith.constant 1.000000e+00 : f32
    %240 = vector.broadcast %cst_64 : f32 to vector<8x256xf32>
    %241 = arith.subf %239, %240 : vector<8x256xf32>
    %242 = arith.select %5, %241, %237 : vector<8x256xi1>, vector<8x256xf32>
    %243 = vector.extract_strided_slice %242 {offsets = [0, 0], sizes = [8, 64], strides = [1, 1]} : vector<8x256xf32> to vector<8x64xf32>
    %244 = vector.extract_strided_slice %242 {offsets = [0, 64], sizes = [8, 64], strides = [1, 1]} : vector<8x256xf32> to vector<8x64xf32>
    %245 = vector.extract_strided_slice %242 {offsets = [0, 128], sizes = [8, 64], strides = [1, 1]} : vector<8x256xf32> to vector<8x64xf32>
    %246 = vector.extract_strided_slice %242 {offsets = [0, 192], sizes = [8, 64], strides = [1, 1]} : vector<8x256xf32> to vector<8x64xf32>
    %247 = arith.mulf %244, %218 : vector<8x64xf32>
    %248 = arith.mulf %243, %245 : vector<8x64xf32>
    %249 = arith.addf %247, %248 : vector<8x64xf32>
    %250 = math.tanh %249 : vector<8x64xf32>
    %251 = arith.mulf %246, %250 : vector<8x64xf32>
    %252 = vector.extract_strided_slice %251 {offsets = [0, 0], sizes = [8, 32], strides = [1, 1]} : vector<8x64xf32> to vector<8x32xf32>
    %c48_65 = arith.constant 48 : index
    %c0_66 = arith.constant 0 : index
    %253 = vector.load %arg3[%c48_65, %c0_66] : memref<64x64xf32, #tpu.memory_space<vmem>>, vector<8x32xf32>
    tpu.vector_store %arg3[%c48_65, %c0_66], %252 {strides = array<i32>} : memref<64x64xf32, #tpu.memory_space<vmem>>, vector<8x32xf32>,
    %254 = vector.extract_strided_slice %251 {offsets = [0, 32], sizes = [8, 32], strides = [1, 1]} : vector<8x64xf32> to vector<8x32xf32>
    %c8_67 = arith.constant 8 : index
    %c32_68 = arith.constant 32 : index
    %255 = vector.load %arg3[%c8_67, %c32_68] : memref<64x64xf32, #tpu.memory_space<vmem>>, vector<8x32xf32>
    tpu.vector_store %arg3[%c8_67, %c32_68], %254 {strides = array<i32>} : memref<64x64xf32, #tpu.memory_space<vmem>>, vector<8x32xf32>,
    %256 = vector.extract_strided_slice %36 {offsets = [56, 0], sizes = [8, 256], strides = [1, 1]} : vector<64x256xf32> to vector<8x256xf32>
    %257 = vector.extract_strided_slice %36 {offsets = [0, 0], sizes = [8, 256], strides = [1, 1]} : vector<64x256xf32> to vector<8x256xf32>
    %258 = arith.select %23, %256, %257 : vector<8x256xi1>, vector<8x256xf32>
    %cst_69 = arith.constant dense<0.000000e+00> : vector<8x256xf32>
    %259 = tpu.matmul %251, %33, %cst_69 {dimension_numbers = #tpu.dot_dimension_numbers<[1], [0], [0], [1], [0, 0, 1, 1], [], []>} : vector<8x64xf32>, vector<64x256xf32>, vector<8x256xf32> -> vector<8x256xf32>
    %260 = arith.addf %258, %259 : vector<8x256xf32>
    %cst_70 = arith.constant 2.000000e+00 : f32
    %261 = vector.broadcast %cst_70 : f32 to vector<8x256xf32>
    %262 = arith.mulf %260, %261 : vector<8x256xf32>
    %263 = arith.select %5, %262, %260 : vector<8x256xi1>, vector<8x256xf32>
    %264 = arith.negf %263 : vector<8x256xf32>
    %265 = math.exp %264 : vector<8x256xf32>
    %cst_71 = arith.constant 1.000000e+00 : f32
    %266 = vector.broadcast %cst_71 : f32 to vector<8x256xf32>
    %267 = arith.addf %266, %265 : vector<8x256xf32>
    %268 = arith.divf %266, %267 : vector<8x256xf32>
    %cst_72 = arith.constant 2.000000e+00 : f32
    %269 = vector.broadcast %cst_72 : f32 to vector<8x256xf32>
    %270 = arith.mulf %269, %268 : vector<8x256xf32>
    %cst_73 = arith.constant 1.000000e+00 : f32
    %271 = vector.broadcast %cst_73 : f32 to vector<8x256xf32>
    %272 = arith.subf %270, %271 : vector<8x256xf32>
    %273 = arith.select %5, %272, %268 : vector<8x256xi1>, vector<8x256xf32>
    %274 = vector.extract_strided_slice %273 {offsets = [0, 0], sizes = [8, 64], strides = [1, 1]} : vector<8x256xf32> to vector<8x64xf32>
    %275 = vector.extract_strided_slice %273 {offsets = [0, 64], sizes = [8, 64], strides = [1, 1]} : vector<8x256xf32> to vector<8x64xf32>
    %276 = vector.extract_strided_slice %273 {offsets = [0, 128], sizes = [8, 64], strides = [1, 1]} : vector<8x256xf32> to vector<8x64xf32>
    %277 = vector.extract_strided_slice %273 {offsets = [0, 192], sizes = [8, 64], strides = [1, 1]} : vector<8x256xf32> to vector<8x64xf32>
    %278 = arith.mulf %275, %249 : vector<8x64xf32>
    %279 = arith.mulf %274, %276 : vector<8x64xf32>
    %280 = arith.addf %278, %279 : vector<8x64xf32>
    %281 = math.tanh %280 : vector<8x64xf32>
    %282 = arith.mulf %277, %281 : vector<8x64xf32>
    %283 = vector.extract_strided_slice %282 {offsets = [0, 0], sizes = [8, 32], strides = [1, 1]} : vector<8x64xf32> to vector<8x32xf32>
    %c56_74 = arith.constant 56 : index
    %c0_75 = arith.constant 0 : index
    %284 = vector.load %arg3[%c56_74, %c0_75] : memref<64x64xf32, #tpu.memory_space<vmem>>, vector<8x32xf32>
    tpu.vector_store %arg3[%c56_74, %c0_75], %283 {strides = array<i32>} : memref<64x64xf32, #tpu.memory_space<vmem>>, vector<8x32xf32>,
    %285 = vector.extract_strided_slice %282 {offsets = [0, 32], sizes = [8, 32], strides = [1, 1]} : vector<8x64xf32> to vector<8x32xf32>
    %c0_76 = arith.constant 0 : index
    %c32_77 = arith.constant 32 : index
    %286 = vector.load %arg3[%c0_76, %c32_77] : memref<64x64xf32, #tpu.memory_space<vmem>>, vector<8x32xf32>
    tpu.vector_store %arg3[%c0_76, %c32_77], %285 {strides = array<i32>} : memref<64x64xf32, #tpu.memory_space<vmem>>, vector<8x32xf32>,
    %c128 = arith.constant 128 : index
    %c0_78 = arith.constant 0 : index
    %287 = vector.load %arg1[%c128, %c0_78] : memref<336x256xf32, #tpu.memory_space<vmem>>, vector<64x256xf32>
    %c192 = arith.constant 192 : index
    %c0_79 = arith.constant 0 : index
    %288 = vector.load %arg1[%c192, %c0_79] : memref<336x256xf32, #tpu.memory_space<vmem>>, vector<1x256xf32>
    %c200 = arith.constant 200 : index
    %c0_80 = arith.constant 0 : index
    %289 = vector.load %arg1[%c200, %c0_80] : memref<336x256xf32, #tpu.memory_space<vmem>>, vector<64x256xf32>
    %c0_81 = arith.constant 0 : index
    %c0_82 = arith.constant 0 : index
    %290 = vector.load %arg3[%c0_81, %c0_82] : memref<64x64xf32, #tpu.memory_space<vmem>>, vector<64x64xf32>
    %cst_83 = arith.constant dense<0.000000e+00> : vector<64x256xf32>
    %291 = tpu.matmul %290, %287, %cst_83 {dimension_numbers = #tpu.dot_dimension_numbers<[1], [0], [0], [1], [0, 0, 1, 1], [], []>} : vector<64x64xf32>, vector<64x256xf32>, vector<64x256xf32> -> vector<64x256xf32>
    %292 = vector.broadcast %288 : vector<1x256xf32> to vector<64x256xf32>
    %293 = arith.addf %291, %292 : vector<64x256xf32>
    %cst_84 = arith.constant 0.000000e+00 : f32
    %294 = vector.broadcast %cst_84 : f32 to vector<8x64xf32>
    %cst_85 = arith.constant 0.000000e+00 : f32
    %295 = vector.broadcast %cst_85 : f32 to vector<8x64xf32>
    %296 = vector.extract_strided_slice %293 {offsets = [0, 0], sizes = [8, 256], strides = [1, 1]} : vector<64x256xf32> to vector<8x256xf32>
    %297 = vector.extract_strided_slice %293 {offsets = [56, 0], sizes = [8, 256], strides = [1, 1]} : vector<64x256xf32> to vector<8x256xf32>
    %298 = arith.select %23, %296, %297 : vector<8x256xi1>, vector<8x256xf32>
    %cst_86 = arith.constant dense<0.000000e+00> : vector<8x256xf32>
    %299 = tpu.matmul %294, %289, %cst_86 {dimension_numbers = #tpu.dot_dimension_numbers<[1], [0], [0], [1], [0, 0, 1, 1], [], []>} : vector<8x64xf32>, vector<64x256xf32>, vector<8x256xf32> -> vector<8x256xf32>
    %300 = arith.addf %298, %299 : vector<8x256xf32>
    %cst_87 = arith.constant 2.000000e+00 : f32
    %301 = vector.broadcast %cst_87 : f32 to vector<8x256xf32>
    %302 = arith.mulf %300, %301 : vector<8x256xf32>
    %303 = arith.select %5, %302, %300 : vector<8x256xi1>, vector<8x256xf32>
    %304 = arith.negf %303 : vector<8x256xf32>
    %305 = math.exp %304 : vector<8x256xf32>
    %cst_88 = arith.constant 1.000000e+00 : f32
    %306 = vector.broadcast %cst_88 : f32 to vector<8x256xf32>
    %307 = arith.addf %306, %305 : vector<8x256xf32>
    %308 = arith.divf %306, %307 : vector<8x256xf32>
    %cst_89 = arith.constant 2.000000e+00 : f32
    %309 = vector.broadcast %cst_89 : f32 to vector<8x256xf32>
    %310 = arith.mulf %309, %308 : vector<8x256xf32>
    %cst_90 = arith.constant 1.000000e+00 : f32
    %311 = vector.broadcast %cst_90 : f32 to vector<8x256xf32>
    %312 = arith.subf %310, %311 : vector<8x256xf32>
    %313 = arith.select %5, %312, %308 : vector<8x256xi1>, vector<8x256xf32>
    %314 = vector.extract_strided_slice %313 {offsets = [0, 0], sizes = [8, 64], strides = [1, 1]} : vector<8x256xf32> to vector<8x64xf32>
    %315 = vector.extract_strided_slice %313 {offsets = [0, 64], sizes = [8, 64], strides = [1, 1]} : vector<8x256xf32> to vector<8x64xf32>
    %316 = vector.extract_strided_slice %313 {offsets = [0, 128], sizes = [8, 64], strides = [1, 1]} : vector<8x256xf32> to vector<8x64xf32>
    %317 = vector.extract_strided_slice %313 {offsets = [0, 192], sizes = [8, 64], strides = [1, 1]} : vector<8x256xf32> to vector<8x64xf32>
    %318 = arith.mulf %315, %295 : vector<8x64xf32>
    %319 = arith.mulf %314, %316 : vector<8x64xf32>
    %320 = arith.addf %318, %319 : vector<8x64xf32>
    %321 = math.tanh %320 : vector<8x64xf32>
    %322 = arith.mulf %317, %321 : vector<8x64xf32>
    %323 = vector.extract_strided_slice %293 {offsets = [8, 0], sizes = [8, 256], strides = [1, 1]} : vector<64x256xf32> to vector<8x256xf32>
    %324 = vector.extract_strided_slice %293 {offsets = [48, 0], sizes = [8, 256], strides = [1, 1]} : vector<64x256xf32> to vector<8x256xf32>
    %325 = arith.select %23, %323, %324 : vector<8x256xi1>, vector<8x256xf32>
    %cst_91 = arith.constant dense<0.000000e+00> : vector<8x256xf32>
    %326 = tpu.matmul %322, %289, %cst_91 {dimension_numbers = #tpu.dot_dimension_numbers<[1], [0], [0], [1], [0, 0, 1, 1], [], []>} : vector<8x64xf32>, vector<64x256xf32>, vector<8x256xf32> -> vector<8x256xf32>
    %327 = arith.addf %325, %326 : vector<8x256xf32>
    %cst_92 = arith.constant 2.000000e+00 : f32
    %328 = vector.broadcast %cst_92 : f32 to vector<8x256xf32>
    %329 = arith.mulf %327, %328 : vector<8x256xf32>
    %330 = arith.select %5, %329, %327 : vector<8x256xi1>, vector<8x256xf32>
    %331 = arith.negf %330 : vector<8x256xf32>
    %332 = math.exp %331 : vector<8x256xf32>
    %cst_93 = arith.constant 1.000000e+00 : f32
    %333 = vector.broadcast %cst_93 : f32 to vector<8x256xf32>
    %334 = arith.addf %333, %332 : vector<8x256xf32>
    %335 = arith.divf %333, %334 : vector<8x256xf32>
    %cst_94 = arith.constant 2.000000e+00 : f32
    %336 = vector.broadcast %cst_94 : f32 to vector<8x256xf32>
    %337 = arith.mulf %336, %335 : vector<8x256xf32>
    %cst_95 = arith.constant 1.000000e+00 : f32
    %338 = vector.broadcast %cst_95 : f32 to vector<8x256xf32>
    %339 = arith.subf %337, %338 : vector<8x256xf32>
    %340 = arith.select %5, %339, %335 : vector<8x256xi1>, vector<8x256xf32>
    %341 = vector.extract_strided_slice %340 {offsets = [0, 0], sizes = [8, 64], strides = [1, 1]} : vector<8x256xf32> to vector<8x64xf32>
    %342 = vector.extract_strided_slice %340 {offsets = [0, 64], sizes = [8, 64], strides = [1, 1]} : vector<8x256xf32> to vector<8x64xf32>
    %343 = vector.extract_strided_slice %340 {offsets = [0, 128], sizes = [8, 64], strides = [1, 1]} : vector<8x256xf32> to vector<8x64xf32>
    %344 = vector.extract_strided_slice %340 {offsets = [0, 192], sizes = [8, 64], strides = [1, 1]} : vector<8x256xf32> to vector<8x64xf32>
    %345 = arith.mulf %342, %320 : vector<8x64xf32>
    %346 = arith.mulf %341, %343 : vector<8x64xf32>
    %347 = arith.addf %345, %346 : vector<8x64xf32>
    %348 = math.tanh %347 : vector<8x64xf32>
    %349 = arith.mulf %344, %348 : vector<8x64xf32>
    %350 = vector.extract_strided_slice %293 {offsets = [16, 0], sizes = [8, 256], strides = [1, 1]} : vector<64x256xf32> to vector<8x256xf32>
    %351 = vector.extract_strided_slice %293 {offsets = [40, 0], sizes = [8, 256], strides = [1, 1]} : vector<64x256xf32> to vector<8x256xf32>
    %352 = arith.select %23, %350, %351 : vector<8x256xi1>, vector<8x256xf32>
    %cst_96 = arith.constant dense<0.000000e+00> : vector<8x256xf32>
    %353 = tpu.matmul %349, %289, %cst_96 {dimension_numbers = #tpu.dot_dimension_numbers<[1], [0], [0], [1], [0, 0, 1, 1], [], []>} : vector<8x64xf32>, vector<64x256xf32>, vector<8x256xf32> -> vector<8x256xf32>
    %354 = arith.addf %352, %353 : vector<8x256xf32>
    %cst_97 = arith.constant 2.000000e+00 : f32
    %355 = vector.broadcast %cst_97 : f32 to vector<8x256xf32>
    %356 = arith.mulf %354, %355 : vector<8x256xf32>
    %357 = arith.select %5, %356, %354 : vector<8x256xi1>, vector<8x256xf32>
    %358 = arith.negf %357 : vector<8x256xf32>
    %359 = math.exp %358 : vector<8x256xf32>
    %cst_98 = arith.constant 1.000000e+00 : f32
    %360 = vector.broadcast %cst_98 : f32 to vector<8x256xf32>
    %361 = arith.addf %360, %359 : vector<8x256xf32>
    %362 = arith.divf %360, %361 : vector<8x256xf32>
    %cst_99 = arith.constant 2.000000e+00 : f32
    %363 = vector.broadcast %cst_99 : f32 to vector<8x256xf32>
    %364 = arith.mulf %363, %362 : vector<8x256xf32>
    %cst_100 = arith.constant 1.000000e+00 : f32
    %365 = vector.broadcast %cst_100 : f32 to vector<8x256xf32>
    %366 = arith.subf %364, %365 : vector<8x256xf32>
    %367 = arith.select %5, %366, %362 : vector<8x256xi1>, vector<8x256xf32>
    %368 = vector.extract_strided_slice %367 {offsets = [0, 0], sizes = [8, 64], strides = [1, 1]} : vector<8x256xf32> to vector<8x64xf32>
    %369 = vector.extract_strided_slice %367 {offsets = [0, 64], sizes = [8, 64], strides = [1, 1]} : vector<8x256xf32> to vector<8x64xf32>
    %370 = vector.extract_strided_slice %367 {offsets = [0, 128], sizes = [8, 64], strides = [1, 1]} : vector<8x256xf32> to vector<8x64xf32>
    %371 = vector.extract_strided_slice %367 {offsets = [0, 192], sizes = [8, 64], strides = [1, 1]} : vector<8x256xf32> to vector<8x64xf32>
    %372 = arith.mulf %369, %347 : vector<8x64xf32>
    %373 = arith.mulf %368, %370 : vector<8x64xf32>
    %374 = arith.addf %372, %373 : vector<8x64xf32>
    %375 = math.tanh %374 : vector<8x64xf32>
    %376 = arith.mulf %371, %375 : vector<8x64xf32>
    %377 = vector.extract_strided_slice %293 {offsets = [24, 0], sizes = [8, 256], strides = [1, 1]} : vector<64x256xf32> to vector<8x256xf32>
    %378 = vector.extract_strided_slice %293 {offsets = [32, 0], sizes = [8, 256], strides = [1, 1]} : vector<64x256xf32> to vector<8x256xf32>
    %379 = arith.select %23, %377, %378 : vector<8x256xi1>, vector<8x256xf32>
    %cst_101 = arith.constant dense<0.000000e+00> : vector<8x256xf32>
    %380 = tpu.matmul %376, %289, %cst_101 {dimension_numbers = #tpu.dot_dimension_numbers<[1], [0], [0], [1], [0, 0, 1, 1], [], []>} : vector<8x64xf32>, vector<64x256xf32>, vector<8x256xf32> -> vector<8x256xf32>
    %381 = arith.addf %379, %380 : vector<8x256xf32>
    %cst_102 = arith.constant 2.000000e+00 : f32
    %382 = vector.broadcast %cst_102 : f32 to vector<8x256xf32>
    %383 = arith.mulf %381, %382 : vector<8x256xf32>
    %384 = arith.select %5, %383, %381 : vector<8x256xi1>, vector<8x256xf32>
    %385 = arith.negf %384 : vector<8x256xf32>
    %386 = math.exp %385 : vector<8x256xf32>
    %cst_103 = arith.constant 1.000000e+00 : f32
    %387 = vector.broadcast %cst_103 : f32 to vector<8x256xf32>
    %388 = arith.addf %387, %386 : vector<8x256xf32>
    %389 = arith.divf %387, %388 : vector<8x256xf32>
    %cst_104 = arith.constant 2.000000e+00 : f32
    %390 = vector.broadcast %cst_104 : f32 to vector<8x256xf32>
    %391 = arith.mulf %390, %389 : vector<8x256xf32>
    %cst_105 = arith.constant 1.000000e+00 : f32
    %392 = vector.broadcast %cst_105 : f32 to vector<8x256xf32>
    %393 = arith.subf %391, %392 : vector<8x256xf32>
    %394 = arith.select %5, %393, %389 : vector<8x256xi1>, vector<8x256xf32>
    %395 = vector.extract_strided_slice %394 {offsets = [0, 0], sizes = [8, 64], strides = [1, 1]} : vector<8x256xf32> to vector<8x64xf32>
    %396 = vector.extract_strided_slice %394 {offsets = [0, 64], sizes = [8, 64], strides = [1, 1]} : vector<8x256xf32> to vector<8x64xf32>
    %397 = vector.extract_strided_slice %394 {offsets = [0, 128], sizes = [8, 64], strides = [1, 1]} : vector<8x256xf32> to vector<8x64xf32>
    %398 = vector.extract_strided_slice %394 {offsets = [0, 192], sizes = [8, 64], strides = [1, 1]} : vector<8x256xf32> to vector<8x64xf32>
    %399 = arith.mulf %396, %374 : vector<8x64xf32>
    %400 = arith.mulf %395, %397 : vector<8x64xf32>
    %401 = arith.addf %399, %400 : vector<8x64xf32>
    %402 = math.tanh %401 : vector<8x64xf32>
    %403 = arith.mulf %398, %402 : vector<8x64xf32>
    %404 = vector.extract_strided_slice %293 {offsets = [32, 0], sizes = [8, 256], strides = [1, 1]} : vector<64x256xf32> to vector<8x256xf32>
    %405 = vector.extract_strided_slice %293 {offsets = [24, 0], sizes = [8, 256], strides = [1, 1]} : vector<64x256xf32> to vector<8x256xf32>
    %406 = arith.select %23, %404, %405 : vector<8x256xi1>, vector<8x256xf32>
    %cst_106 = arith.constant dense<0.000000e+00> : vector<8x256xf32>
    %407 = tpu.matmul %403, %289, %cst_106 {dimension_numbers = #tpu.dot_dimension_numbers<[1], [0], [0], [1], [0, 0, 1, 1], [], []>} : vector<8x64xf32>, vector<64x256xf32>, vector<8x256xf32> -> vector<8x256xf32>
    %408 = arith.addf %406, %407 : vector<8x256xf32>
    %cst_107 = arith.constant 2.000000e+00 : f32
    %409 = vector.broadcast %cst_107 : f32 to vector<8x256xf32>
    %410 = arith.mulf %408, %409 : vector<8x256xf32>
    %411 = arith.select %5, %410, %408 : vector<8x256xi1>, vector<8x256xf32>
    %412 = arith.negf %411 : vector<8x256xf32>
    %413 = math.exp %412 : vector<8x256xf32>
    %cst_108 = arith.constant 1.000000e+00 : f32
    %414 = vector.broadcast %cst_108 : f32 to vector<8x256xf32>
    %415 = arith.addf %414, %413 : vector<8x256xf32>
    %416 = arith.divf %414, %415 : vector<8x256xf32>
    %cst_109 = arith.constant 2.000000e+00 : f32
    %417 = vector.broadcast %cst_109 : f32 to vector<8x256xf32>
    %418 = arith.mulf %417, %416 : vector<8x256xf32>
    %cst_110 = arith.constant 1.000000e+00 : f32
    %419 = vector.broadcast %cst_110 : f32 to vector<8x256xf32>
    %420 = arith.subf %418, %419 : vector<8x256xf32>
    %421 = arith.select %5, %420, %416 : vector<8x256xi1>, vector<8x256xf32>
    %422 = vector.extract_strided_slice %421 {offsets = [0, 0], sizes = [8, 64], strides = [1, 1]} : vector<8x256xf32> to vector<8x64xf32>
    %423 = vector.extract_strided_slice %421 {offsets = [0, 64], sizes = [8, 64], strides = [1, 1]} : vector<8x256xf32> to vector<8x64xf32>
    %424 = vector.extract_strided_slice %421 {offsets = [0, 128], sizes = [8, 64], strides = [1, 1]} : vector<8x256xf32> to vector<8x64xf32>
    %425 = vector.extract_strided_slice %421 {offsets = [0, 192], sizes = [8, 64], strides = [1, 1]} : vector<8x256xf32> to vector<8x64xf32>
    %426 = arith.mulf %423, %401 : vector<8x64xf32>
    %427 = arith.mulf %422, %424 : vector<8x64xf32>
    %428 = arith.addf %426, %427 : vector<8x64xf32>
    %429 = math.tanh %428 : vector<8x64xf32>
    %430 = arith.mulf %425, %429 : vector<8x64xf32>
    %431 = vector.extract_strided_slice %293 {offsets = [40, 0], sizes = [8, 256], strides = [1, 1]} : vector<64x256xf32> to vector<8x256xf32>
    %432 = vector.extract_strided_slice %293 {offsets = [16, 0], sizes = [8, 256], strides = [1, 1]} : vector<64x256xf32> to vector<8x256xf32>
    %433 = arith.select %23, %431, %432 : vector<8x256xi1>, vector<8x256xf32>
    %cst_111 = arith.constant dense<0.000000e+00> : vector<8x256xf32>
    %434 = tpu.matmul %430, %289, %cst_111 {dimension_numbers = #tpu.dot_dimension_numbers<[1], [0], [0], [1], [0, 0, 1, 1], [], []>} : vector<8x64xf32>, vector<64x256xf32>, vector<8x256xf32> -> vector<8x256xf32>
    %435 = arith.addf %433, %434 : vector<8x256xf32>
    %cst_112 = arith.constant 2.000000e+00 : f32
    %436 = vector.broadcast %cst_112 : f32 to vector<8x256xf32>
    %437 = arith.mulf %435, %436 : vector<8x256xf32>
    %438 = arith.select %5, %437, %435 : vector<8x256xi1>, vector<8x256xf32>
    %439 = arith.negf %438 : vector<8x256xf32>
    %440 = math.exp %439 : vector<8x256xf32>
    %cst_113 = arith.constant 1.000000e+00 : f32
    %441 = vector.broadcast %cst_113 : f32 to vector<8x256xf32>
    %442 = arith.addf %441, %440 : vector<8x256xf32>
    %443 = arith.divf %441, %442 : vector<8x256xf32>
    %cst_114 = arith.constant 2.000000e+00 : f32
    %444 = vector.broadcast %cst_114 : f32 to vector<8x256xf32>
    %445 = arith.mulf %444, %443 : vector<8x256xf32>
    %cst_115 = arith.constant 1.000000e+00 : f32
    %446 = vector.broadcast %cst_115 : f32 to vector<8x256xf32>
    %447 = arith.subf %445, %446 : vector<8x256xf32>
    %448 = arith.select %5, %447, %443 : vector<8x256xi1>, vector<8x256xf32>
    %449 = vector.extract_strided_slice %448 {offsets = [0, 0], sizes = [8, 64], strides = [1, 1]} : vector<8x256xf32> to vector<8x64xf32>
    %450 = vector.extract_strided_slice %448 {offsets = [0, 64], sizes = [8, 64], strides = [1, 1]} : vector<8x256xf32> to vector<8x64xf32>
    %451 = vector.extract_strided_slice %448 {offsets = [0, 128], sizes = [8, 64], strides = [1, 1]} : vector<8x256xf32> to vector<8x64xf32>
    %452 = vector.extract_strided_slice %448 {offsets = [0, 192], sizes = [8, 64], strides = [1, 1]} : vector<8x256xf32> to vector<8x64xf32>
    %453 = arith.mulf %450, %428 : vector<8x64xf32>
    %454 = arith.mulf %449, %451 : vector<8x64xf32>
    %455 = arith.addf %453, %454 : vector<8x64xf32>
    %456 = math.tanh %455 : vector<8x64xf32>
    %457 = arith.mulf %452, %456 : vector<8x64xf32>
    %458 = vector.extract_strided_slice %293 {offsets = [48, 0], sizes = [8, 256], strides = [1, 1]} : vector<64x256xf32> to vector<8x256xf32>
    %459 = vector.extract_strided_slice %293 {offsets = [8, 0], sizes = [8, 256], strides = [1, 1]} : vector<64x256xf32> to vector<8x256xf32>
    %460 = arith.select %23, %458, %459 : vector<8x256xi1>, vector<8x256xf32>
    %cst_116 = arith.constant dense<0.000000e+00> : vector<8x256xf32>
    %461 = tpu.matmul %457, %289, %cst_116 {dimension_numbers = #tpu.dot_dimension_numbers<[1], [0], [0], [1], [0, 0, 1, 1], [], []>} : vector<8x64xf32>, vector<64x256xf32>, vector<8x256xf32> -> vector<8x256xf32>
    %462 = arith.addf %460, %461 : vector<8x256xf32>
    %cst_117 = arith.constant 2.000000e+00 : f32
    %463 = vector.broadcast %cst_117 : f32 to vector<8x256xf32>
    %464 = arith.mulf %462, %463 : vector<8x256xf32>
    %465 = arith.select %5, %464, %462 : vector<8x256xi1>, vector<8x256xf32>
    %466 = arith.negf %465 : vector<8x256xf32>
    %467 = math.exp %466 : vector<8x256xf32>
    %cst_118 = arith.constant 1.000000e+00 : f32
    %468 = vector.broadcast %cst_118 : f32 to vector<8x256xf32>
    %469 = arith.addf %468, %467 : vector<8x256xf32>
    %470 = arith.divf %468, %469 : vector<8x256xf32>
    %cst_119 = arith.constant 2.000000e+00 : f32
    %471 = vector.broadcast %cst_119 : f32 to vector<8x256xf32>
    %472 = arith.mulf %471, %470 : vector<8x256xf32>
    %cst_120 = arith.constant 1.000000e+00 : f32
    %473 = vector.broadcast %cst_120 : f32 to vector<8x256xf32>
    %474 = arith.subf %472, %473 : vector<8x256xf32>
    %475 = arith.select %5, %474, %470 : vector<8x256xi1>, vector<8x256xf32>
    %476 = vector.extract_strided_slice %475 {offsets = [0, 0], sizes = [8, 64], strides = [1, 1]} : vector<8x256xf32> to vector<8x64xf32>
    %477 = vector.extract_strided_slice %475 {offsets = [0, 64], sizes = [8, 64], strides = [1, 1]} : vector<8x256xf32> to vector<8x64xf32>
    %478 = vector.extract_strided_slice %475 {offsets = [0, 128], sizes = [8, 64], strides = [1, 1]} : vector<8x256xf32> to vector<8x64xf32>
    %479 = vector.extract_strided_slice %475 {offsets = [0, 192], sizes = [8, 64], strides = [1, 1]} : vector<8x256xf32> to vector<8x64xf32>
    %480 = arith.mulf %477, %455 : vector<8x64xf32>
    %481 = arith.mulf %476, %478 : vector<8x64xf32>
    %482 = arith.addf %480, %481 : vector<8x64xf32>
    %483 = math.tanh %482 : vector<8x64xf32>
    %484 = arith.mulf %479, %483 : vector<8x64xf32>
    %485 = vector.extract_strided_slice %293 {offsets = [56, 0], sizes = [8, 256], strides = [1, 1]} : vector<64x256xf32> to vector<8x256xf32>
    %486 = vector.extract_strided_slice %293 {offsets = [0, 0], sizes = [8, 256], strides = [1, 1]} : vector<64x256xf32> to vector<8x256xf32>
    %487 = arith.select %23, %485, %486 : vector<8x256xi1>, vector<8x256xf32>
    %cst_121 = arith.constant dense<0.000000e+00> : vector<8x256xf32>
    %488 = tpu.matmul %484, %289, %cst_121 {dimension_numbers = #tpu.dot_dimension_numbers<[1], [0], [0], [1], [0, 0, 1, 1], [], []>} : vector<8x64xf32>, vector<64x256xf32>, vector<8x256xf32> -> vector<8x256xf32>
    %489 = arith.addf %487, %488 : vector<8x256xf32>
    %cst_122 = arith.constant 2.000000e+00 : f32
    %490 = vector.broadcast %cst_122 : f32 to vector<8x256xf32>
    %491 = arith.mulf %489, %490 : vector<8x256xf32>
    %492 = arith.select %5, %491, %489 : vector<8x256xi1>, vector<8x256xf32>
    %493 = arith.negf %492 : vector<8x256xf32>
    %494 = math.exp %493 : vector<8x256xf32>
    %cst_123 = arith.constant 1.000000e+00 : f32
    %495 = vector.broadcast %cst_123 : f32 to vector<8x256xf32>
    %496 = arith.addf %495, %494 : vector<8x256xf32>
    %497 = arith.divf %495, %496 : vector<8x256xf32>
    %cst_124 = arith.constant 2.000000e+00 : f32
    %498 = vector.broadcast %cst_124 : f32 to vector<8x256xf32>
    %499 = arith.mulf %498, %497 : vector<8x256xf32>
    %cst_125 = arith.constant 1.000000e+00 : f32
    %500 = vector.broadcast %cst_125 : f32 to vector<8x256xf32>
    %501 = arith.subf %499, %500 : vector<8x256xf32>
    %502 = arith.select %5, %501, %497 : vector<8x256xi1>, vector<8x256xf32>
    %503 = vector.extract_strided_slice %502 {offsets = [0, 0], sizes = [8, 64], strides = [1, 1]} : vector<8x256xf32> to vector<8x64xf32>
    %504 = vector.extract_strided_slice %502 {offsets = [0, 64], sizes = [8, 64], strides = [1, 1]} : vector<8x256xf32> to vector<8x64xf32>
    %505 = vector.extract_strided_slice %502 {offsets = [0, 128], sizes = [8, 64], strides = [1, 1]} : vector<8x256xf32> to vector<8x64xf32>
    %506 = vector.extract_strided_slice %502 {offsets = [0, 192], sizes = [8, 64], strides = [1, 1]} : vector<8x256xf32> to vector<8x64xf32>
    %507 = arith.mulf %504, %482 : vector<8x64xf32>
    %508 = arith.mulf %503, %505 : vector<8x64xf32>
    %509 = arith.addf %507, %508 : vector<8x64xf32>
    %510 = math.tanh %509 : vector<8x64xf32>
    %511 = arith.mulf %506, %510 : vector<8x64xf32>
    %c264 = arith.constant 264 : index
    %c0_126 = arith.constant 0 : index
    %512 = vector.load %arg1[%c264, %c0_126] : memref<336x256xf32, #tpu.memory_space<vmem>>, vector<64x256xf32>
    %c328 = arith.constant 328 : index
    %c0_127 = arith.constant 0 : index
    %513 = vector.load %arg1[%c328, %c0_127] : memref<336x256xf32, #tpu.memory_space<vmem>>, vector<1x256xf32>
    %cst_128 = arith.constant dense<0.000000e+00> : vector<8x256xf32>
    %514 = tpu.matmul %511, %512, %cst_128 {dimension_numbers = #tpu.dot_dimension_numbers<[1], [0], [0], [1], [0, 0, 1, 1], [], []>} : vector<8x64xf32>, vector<64x256xf32>, vector<8x256xf32> -> vector<8x256xf32>
    %515 = vector.broadcast %513 : vector<1x256xf32> to vector<8x256xf32>
    %516 = arith.addf %514, %515 : vector<8x256xf32>
    %517 = vector.extract_strided_slice %516 {offsets = [0, 0], sizes = [2, 2], strides = [1, 1]} : vector<8x256xf32> to vector<2x2xf32>
    %c0_129 = arith.constant 0 : index
    %c0_130 = arith.constant 0 : index
    %518 = vector.load %arg2[%c0_129, %c0_130] : memref<2x2xf32, #tpu.memory_space<vmem>>, vector<2x2xf32>
    tpu.vector_store %arg2[%c0_129, %c0_130], %517 {strides = array<i32>} : memref<2x2xf32, #tpu.memory_space<vmem>>, vector<2x2xf32>,
    return
  }
}

</mosaic_0001>

<bundles_post_ra>
// kernel: _lambda_.1
= control target key start
LH: loop header
LB: loop body
LE: loop exit
PB: predicated region body
PF: predicated region fallthrough
CT: control target
= control target key end

     0   :  { %7 = vsyncpa [#allocation4], 0  ;;  %s3476_s0 = inlined_call_operand.vmem [shape: s32[64,1], index: 0, kind: input, shape index: {}]   ;;  %s3477_s1 = inlined_call_operand.hbm [shape: f32[336,256], index: 1, kind: input, shape index: {}]   ;;  %s3478_s2 = inlined_call_operand.hbm [shape: f32[2,2], index: 2, kind: output, shape index: {}]  }
   0x1   :  { %8 = vsyncpa [#allocation5], 0  ;;  %s15_s11 = sshll.u32 %s3477_s1, 4  ;;  %s2531_s12 = smov [#allocation3]   ;;  %s16_s11 = int_to_ptr.hbm [resolvable:$true] %s15_s11 }
   0x2   :  { %s17_s13 = sshll.u32 %s2531_s12, 4  ;;  %s2532_s14 = smov 256   ;;  %s18_s13 = int_to_ptr.vmem [resolvable:$true] %s17_s13 }
   0x3   :  { %s2533_s15 = smov 16  }
   0x4   :  { %23 = dma.hbm_to_vmem [thread:$0]  %s16_s11, 10752, %s18_s13, [#allocation4], %s2532_s14, %s2532_s14, %s2533_s15  }
   0x5   :  { %2527 = dma.done.wait [#allocation4], 10752  }
   0x6   :  { %2528 = vsyncadd [#allocation4], 4294956544  ;;  %v2534_v0 = vmov 0   ;;  %v65_v1 = vld [vmem:[%s3476_s0 + $0x10] sm:$0xff]  ;;  %v63_v2 = vld [vmem:[%s3476_s0] sm:$0xff]  ;;  %v28_v23 = vlaneseq  ;;  %vm148_vm0 = vcmask 457728  }
   0x7   :  { %2317 = vset.pattern.permute.xlu1 %v2534_v0  ;;  %2316 = vset.pattern.permute.xlu0 %v2534_v0  ;;  %v67_v3 = vld [vmem:[%s3476_s0 + $0x20] sm:$0xff]  ;;  %v124_v5 = vld [vmem:[#allocation3 + $0x68] sm:$0xff]  ;;  %v121_v6 = vld [vmem:[#allocation3 + $0x50] sm:$0xff]  ;;  %v3479_v26 = vmov 0.0   ;;  %s2537_s3 = smov [#allocation6]   ;;  %s2174_s7 = sshll.u32 %s3478_s2, 4  ;;  %s2175_s7 = int_to_ptr.hbm [resolvable:$true] %s2174_s7 }
   0x8   :  { %2318 = vset.pattern.permute.xlu2 %v2534_v0  ;;  %78 = vperm.xlu1 %2317, %v65_v1   ;;  %v123_v4 = vld [vmem:[#allocation3 + $0x60] sm:$0xff]  ;;  %v122_v7 = vld [vmem:[#allocation3 + $0x58] sm:$0xff]  ;;  %v120_v9 = vld [vmem:[#allocation3 + $0x48] sm:$0xff]  ;;  %v2580_v24 = vand.u32 127, %v28_v23  ;;  %s2172_s4 = sshll.u32 %s2537_s3, 4  ;;  %s2173_s4 = int_to_ptr.vmem [resolvable:$true] %s2172_s4 }
   0x9   :  { %72 = vperm.xlu0 %2316, %v63_v2   ;;  %84 = vperm.xlu2 %2318, %v67_v3   ;;  %v119_v8 = vld [vmem:[#allocation3 + $0x40] sm:$0xff]  ;;  %v66_v10 = vld [vmem:[%s3476_s0 + $0x18] sm:$0xff]  ;;  %v64_v11 = vld [vmem:[%s3476_s0 + $0x8] sm:$0xff] }
   0xa   :  { %182 = vmatpush.msra.mxu0 %v123_v4  ;;  %223 = vmatpush.msra.mxu1 %v124_v5  ;;  %v117_v12 = vld [vmem:[#allocation3 + $0x30] sm:$0xff]  ;;  %v118_v13 = vld [vmem:[#allocation3 + $0x38] sm:$0xff]  ;;  %v68_v14 = vld [vmem:[%s3476_s0 + $0x28] sm:$0xff] }
   0xb   :  { %v115_v15 = vld [vmem:[#allocation3 + $0x20] sm:$0xff]  ;;  %v116_v16 = vld [vmem:[#allocation3 + $0x28] sm:$0xff]  ;;  %v113_v17 = vld [vmem:[#allocation3 + $0x10] sm:$0xff] }
   0xc   :  { %183 = vmatpush.msra.mxu0 %v121_v6  ;;  %224 = vmatpush.msra.mxu1 %v122_v7  ;;  %v114_v18 = vld [vmem:[#allocation3 + $0x18] sm:$0xff]  ;;  %v69_v20 = vld [vmem:[%s3476_s0 + $0x30] sm:$0xff]  ;;  %v111_v21 = vld [vmem:[#allocation3] sm:$0xff] }
   0xd   :  { %v70_v19 = vld [vmem:[%s3476_s0 + $0x38] sm:$0xff]  ;;  %v112_v22 = vld [vmem:[#allocation3 + $0x8] sm:$0xff]  ;;  %v2586_v28 = vld [vmem:[#allocation3 + $0xf0] sm:$0xff]  ;;  %s2536_s0 = smov 64  }
   0xe   :  { %184 = vmatpush.msra.mxu0 %v119_v8  ;;  %225 = vmatpush.msra.mxu1 %v120_v9  ;;  %v2588_v29 = vld [vmem:[#allocation3 + $0xf8] sm:$0xff]  ;;  %v2596_v32 = vld [vmem:[#allocation3 + $0xe0] sm:$0xff]  ;;  %v2598_v33 = vld [vmem:[#allocation3 + $0xe8] sm:$0xff]  ;;  %v2737_v9 = vadd.s32 128, %v2580_v24 }
   0xf   :  { %269 = vmatpush.msra.mxu2 %v2586_v28  ;;  %289 = vmatpush.msra.mxu3 %v2588_v29  ;;  %v2602_v34 = vld [vmem:[#allocation3 + $0xd0] sm:$0xff]  ;;  %v2604_v35 = vld [vmem:[#allocation3 + $0xd8] sm:$0xff]  ;;  %v2609_v37 = vld [vmem:[#allocation3 + $0xc0] sm:$0xff] }
  0x10   :  { %81 = vperm.xlu1 %2317, %v66_v10   ;;  %185 = vmatpush.msra.mxu0 %v117_v12  ;;  %v2611_v38 = vld [vmem:[#allocation3 + $0xc8] sm:$0xff]  ;;  %v2617_v39 = vld [vmem:[#allocation3 + $0xb0] sm:$0xff]  ;;  %v2619_v40 = vld [vmem:[#allocation3 + $0xb8] sm:$0xff]  ;;  %v41_v12 = vand.u32 63, %v2580_v24  ;;  %vm34_vm11 = vcmp.lt.s32.totalorder %v2737_v9, 192 }
  0x11   :  { %75 = vperm.xlu0 %2316, %v64_v11   ;;  %226 = vmatpush.msra.mxu1 %v118_v13  ;;  %v2630_v42 = vld [vmem:[#allocation3 + $0xa0] sm:$0xff]  ;;  %v2632_v43 = vld [vmem:[#allocation3 + $0xa8] sm:$0xff]  ;;  %v2636_v44 = vld [vmem:[#allocation3 + $0x90] sm:$0xff]  ;;  %v48_v13 = vand.u32 63, %v2737_v9 }
  0x12   :  { %87 = vperm.xlu2 %2318, %v68_v14   ;;  %186 = vmatpush.msra.mxu0 %v115_v15  ;;  %v2638_v45 = vld [vmem:[#allocation3 + $0x98] sm:$0xff]  ;;  %v2642_v46 = vld [vmem:[#allocation3 + $0x80] sm:$0xff]  ;;  %v2644_v47 = vld [vmem:[#allocation3 + $0x88] sm:$0xff]  ;;  %vm2745_vm9 = vcmp.lt.s32.totalorder %v41_v12, 32 }
  0x13   :  { %227 = vmatpush.msra.mxu1 %v116_v16  ;;  %270 = vmatpush.msra.mxu2 %v2596_v32  ;;  %v126_v60 = vld [vmem:[#allocation3 + $0x70] ss:$8 sm:$0x3]  ;;  %vm2749_vm10 = vcmp.lt.s32.totalorder %v48_v13, 32 }
  0x14   :  { %187 = vmatpush.msra.mxu0 %v113_v17  ;;  %290 = vmatpush.msra.mxu3 %v2598_v33  ;;  %v144_v61 = vperm.slane %v126_v60, 0  ;;  %v145_v62 = vperm.slane %v126_v60, 1 }
  0x15   :  { %228 = vmatpush.msra.mxu1 %v114_v18  ;;  %271 = vmatpush.msra.mxu2 %v2602_v34 }
  0x16   :  { %188 = vmatpush.msra.mxu0 %v111_v21  ;;  %291 = vmatpush.msra.mxu3 %v2604_v35 }
  0x17   :  { %229 = vmatpush.msra.mxu1 %v112_v22  ;;  %272 = vmatpush.msra.mxu2 %v2609_v37 }
  0x18   :  { %93 = vperm.xlu1 %2317, %v70_v19   ;;  %707 = vmatpush.msrb.mxu0 %v2586_v28 }
  0x19   :  { %90 = vperm.xlu0 %2316, %v69_v20   ;;  %727 = vmatpush.msrb.mxu1 %v2588_v29 }
  0x1a   :  { %708 = vmatpush.msrb.mxu0 %v2596_v32  ;;  %292 = vmatpush.msra.mxu3 %v2611_v38 }
  0x1b   :  { %728 = vmatpush.msrb.mxu1 %v2598_v33  ;;  %273 = vmatpush.msra.mxu2 %v2617_v39 }
  0x1c   :  { %709 = vmatpush.msrb.mxu0 %v2602_v34  ;;  %293 = vmatpush.msra.mxu3 %v2619_v40 }
  0x1d   :  { %729 = vmatpush.msrb.mxu1 %v2604_v35  ;;  %274 = vmatpush.msra.mxu2 %v2630_v42 }
  0x1e   :  { %710 = vmatpush.msrb.mxu0 %v2609_v37  ;;  %294 = vmatpush.msra.mxu3 %v2632_v43 }
  0x1f   :  { %730 = vmatpush.msrb.mxu1 %v2611_v38  ;;  %275 = vmatpush.msra.mxu2 %v2636_v44 }
  0x20   :  { %711 = vmatpush.msrb.mxu0 %v2617_v39  ;;  %295 = vmatpush.msra.mxu3 %v2638_v45 }
  0x21   :  { %731 = vmatpush.msrb.mxu1 %v2619_v40  ;;  %276 = vmatpush.msra.mxu2 %v2642_v46 }
  0x22   :  { %712 = vmatpush.msrb.mxu0 %v2630_v42  ;;  %296 = vmatpush.msra.mxu3 %v2644_v47 }
  0x23   :  { %732 = vmatpush.msrb.mxu1 %v2632_v43  ;;  %277 = vmatmul.f32.vlgmr.msra.gmra.mxu2 %v3479_v26 }
  0x24   :  { %297 = vmatmul.f32.vlgmr.msra.gmra.mxu3 %v3479_v26  ;;  %380 = vmatpush.msrb.mxu2 %v2586_v28 }
  0x25   :  { %400 = vmatpush.msrb.mxu3 %v2588_v29  ;;  %733 = vmatpush.msrb.mxu1 %v2638_v45 }
  0x26   :  { %381 = vmatpush.msrb.mxu2 %v2596_v32  ;;  %713 = vmatpush.msrb.mxu0 %v2636_v44 }
  0x27   :  { %401 = vmatpush.msrb.mxu3 %v2598_v33  ;;  %734 = vmatpush.msrb.mxu1 %v2644_v47 }
  0x28   :  { %382 = vmatpush.msrb.mxu2 %v2602_v34  ;;  %714 = vmatpush.msrb.mxu0 %v2642_v46 }
  0x29   :  { %402 = vmatpush.msrb.mxu3 %v2604_v35 }
  0x2a   :  { %383 = vmatpush.msrb.mxu2 %v2609_v37 }
  0x2b   :  { %403 = vmatpush.msrb.mxu3 %v2611_v38 }
  0x2c   :  { %384 = vmatpush.msrb.mxu2 %v2617_v39 }
  0x2d   :  { %404 = vmatpush.msrb.mxu3 %v2619_v40 }
  0x2e   :  { %385 = vmatpush.msrb.mxu2 %v2630_v42 }
  0x2f   :  { %405 = vmatpush.msrb.mxu3 %v2632_v43 }
  0x30   :  { %386 = vmatpush.msrb.mxu2 %v2636_v44 }
  0x31   :  { %406 = vmatpush.msrb.mxu3 %v2638_v45 }
  0x32   :  { %387 = vmatpush.msrb.mxu2 %v2642_v46 }
  0x33   :  { %407 = vmatpush.msrb.mxu3 %v2644_v47 }
  0x34   :  { %489 = vmatpush.msra.mxu2 %v2586_v28 }
  0x35   :  { %509 = vmatpush.msra.mxu3 %v2588_v29 }
  0x36   :  { %490 = vmatpush.msra.mxu2 %v2596_v32 }
  0x37   :  { %510 = vmatpush.msra.mxu3 %v2598_v33 }
  0x38   :  { %491 = vmatpush.msra.mxu2 %v2602_v34 }
  0x39   :  { %511 = vmatpush.msra.mxu3 %v2604_v35 }
  0x3a   :  { %492 = vmatpush.msra.mxu2 %v2609_v37 }
  0x3b   :  { %512 = vmatpush.msra.mxu3 %v2611_v38 }
  0x3c   :  { %493 = vmatpush.msra.mxu2 %v2617_v39 }
  0x3d   :  { %513 = vmatpush.msra.mxu3 %v2619_v40 }
  0x3e   :  { %494 = vmatpush.msra.mxu2 %v2630_v42 }
  0x3f   :  { %514 = vmatpush.msra.mxu3 %v2632_v43 }
  0x40   :  { %495 = vmatpush.msra.mxu2 %v2636_v44 }
  0x41   :  { %515 = vmatpush.msra.mxu3 %v2638_v45 }
  0x42   :  { %496 = vmatpush.msra.mxu2 %v2642_v46 }
  0x43   :  { %516 = vmatpush.msra.mxu3 %v2644_v47 }
  0x63   :  { %v85_v50 = vpop.permute.xlu2 %84 }
  0x64   :  { %vm99_vm5 = vcmp.eq.s32.totalorder %v85_v50, %v2580_v24 }
  0x65   :  { %v107_v51 = vsel %vm99_vm5, 1.0, %v3479_v26  ;;  %vm257_vm5 = vcmask 523264  }
  0x6c   :  { %v88_v52 = vpop.permute.xlu2 %87 }
  0x6d   :  { %vm100_vm6 = vcmp.eq.s32.totalorder %v88_v52, %v2580_v24 }
  0x6e   :  { %v108_v53 = vsel %vm100_vm6, 1.0, %v3479_v26  ;;  %vm366_vm6 = vcmask 523520  }
  0x7a   :  { %v79_v36 = vpop.permute.xlu1 %78 }
  0x7b   :  { %v73_v25 = vpop.permute.xlu0 %72  ;;  %vm97_vm3 = vcmp.eq.s32.totalorder %v79_v36, %v2580_v24 }
  0x7c   :  { %vm95_vm1 = vcmp.eq.s32.totalorder %v73_v25, %v2580_v24  ;;  %v105_v41 = vsel %vm97_vm3, 1.0, %v3479_v26 }
  0x7d   :  { %v103_v27 = vsel %vm95_vm1, 1.0, %v3479_v26 }
  0x7e   :  { %2184 = vmatmul.msk.f32.vlgmr.msra.gmra.mxu0 %vm148_vm0, %v103_v27  ;;  %2192 = vmatmul.msk.f32.vlgmr.msra.gmra.mxu1 %vm148_vm0, %v103_v27 }
  0x7f   :  { %925 = vmatpush.msra.mxu0 %v2586_v28  ;;  %945 = vmatpush.msra.mxu1 %v2588_v29 }
  0x81   :  { %926 = vmatpush.msra.mxu0 %v2596_v32  ;;  %946 = vmatpush.msra.mxu1 %v2598_v33 }
  0x82   :  { %v82_v48 = vpop.permute.xlu1 %81 }
  0x83   :  { %v76_v30 = vpop.permute.xlu0 %75  ;;  %vm98_vm4 = vcmp.eq.s32.totalorder %v82_v48, %v2580_v24  ;;  %927 = vmatpush.msra.mxu0 %v2602_v34  ;;  %947 = vmatpush.msra.mxu1 %v2604_v35 }
  0x84   :  { %vm96_vm2 = vcmp.eq.s32.totalorder %v76_v30, %v2580_v24  ;;  %v106_v49 = vsel %vm98_vm4, 1.0, %v3479_v26  ;;  %vm364_vm4 = vcmask 261120  }
  0x85   :  { %v104_v31 = vsel %vm96_vm2, 1.0, %v3479_v26  ;;  %928 = vmatpush.msra.mxu0 %v2609_v37  ;;  %948 = vmatpush.msra.mxu1 %v2611_v38 }
  0x86   :  { %2185 = vmatmul.msk.f32.gmra.mxu0 %vm148_vm0, %v104_v31  ;;  %2193 = vmatmul.msk.f32.gmra.mxu1 %vm148_vm0, %v104_v31 }
  0x87   :  { %929 = vmatpush.msra.mxu0 %v2617_v39  ;;  %949 = vmatpush.msra.mxu1 %v2619_v40 }
  0x89   :  { %930 = vmatpush.msra.mxu0 %v2630_v42  ;;  %950 = vmatpush.msra.mxu1 %v2632_v43 }
  0x8a   :  { %v94_v56 = vpop.permute.xlu1 %93 }
  0x8b   :  { %v91_v54 = vpop.permute.xlu0 %90  ;;  %931 = vmatpush.msra.mxu0 %v2636_v44  ;;  %951 = vmatpush.msra.mxu1 %v2638_v45  ;;  %vm102_vm8 = vcmp.eq.s32.totalorder %v94_v56, %v2580_v24 }
  0x8c   :  { %vm101_vm7 = vcmp.eq.s32.totalorder %v91_v54, %v2580_v24  ;;  %v110_v57 = vsel %vm102_vm8, 1.0, %v3479_v26 }
  0x8d   :  { %v109_v55 = vsel %vm101_vm7, 1.0, %v3479_v26  ;;  %932 = vmatpush.msra.mxu0 %v2642_v46  ;;  %952 = vmatpush.msra.mxu1 %v2644_v47 }
  0x8e   :  { %2186 = vmatmul.msk.f32.gmra.mxu0 %vm148_vm0, %v105_v41  ;;  %2194 = vmatmul.msk.f32.gmra.mxu1 %vm148_vm0, %v105_v41 }
  0x96   :  { %2187 = vmatmul.msk.f32.gmra.mxu0 %vm148_vm0, %v106_v49  ;;  %2195 = vmatmul.msk.f32.gmra.mxu1 %vm148_vm0, %v106_v49 }
  0x9e   :  { %2188 = vmatmul.msk.f32.gmra.mxu0 %vm148_vm0, %v107_v51  ;;  %2196 = vmatmul.msk.f32.gmra.mxu1 %vm148_vm0, %v107_v51 }
  0xa6   :  { %2189 = vmatmul.msk.f32.gmra.mxu0 %vm148_vm0, %v108_v53  ;;  %2197 = vmatmul.msk.f32.gmra.mxu1 %vm148_vm0, %v108_v53 }
  0xae   :  { %2190 = vmatmul.msk.f32.gmra.mxu0 %vm148_vm0, %v109_v55  ;;  %2198 = vmatmul.msk.f32.gmra.mxu1 %vm148_vm0, %v109_v55 }
  0xb6   :  { %2191 = vmatmul.msk.f32.gmra.mxu0 %vm148_vm0, %v110_v57  ;;  %2199 = vmatmul.msk.f32.gmra.mxu1 %vm148_vm0, %v110_v57 }
  0xfb   :  { %v190_v58 = vpop.f32.mrf.mxu0  ;;  %v231_v59 = vpop.f32.mrf.mxu1 }
 0x103   :  { %v193_v63 = vpop.f32.mrf.mxu0  ;;  %v234_v0 = vpop.f32.mrf.mxu1 }
 0x104   :  { %v2728_v1 = vadd.f32 %v193_v63, %v144_v61  ;;  %v2730_v2 = vadd.f32 %v234_v0, %v145_v62  ;;  %v2813_v63 = vadd.f32 %v190_v58, %v144_v61  ;;  %v2815_v0 = vadd.f32 %v231_v59, %v145_v62 }
 0x10b   :  { %v196_v3 = vpop.f32.mrf.mxu0  ;;  %v237_v4 = vpop.f32.mrf.mxu1 }
 0x10c   :  { %v2732_v5 = vadd.f32 %v196_v3, %v144_v61  ;;  %v2734_v6 = vadd.f32 %v237_v4, %v145_v62 }
 0x113   :  { %v199_v7 = vpop.f32.mrf.mxu0  ;;  %v240_v8 = vpop.f32.mrf.mxu1 }
 0x114   :  { %v2739_v10 = vadd.f32 %v199_v7, %v144_v61  ;;  %v2741_v11 = vadd.f32 %v240_v8, %v145_v62  ;;  %v278_v7 = vpop.f32.mrf.mxu2  ;;  %v298_v8 = vpop.f32.mrf.mxu3 }
 0x11b   :  { %v202_v14 = vpop.f32.mrf.mxu0  ;;  %v243_v15 = vpop.f32.mrf.mxu1 }
 0x11c   :  { %v2753_v18 = vadd.f32 %v202_v14, %v144_v61  ;;  %v2755_v19 = vadd.f32 %v243_v15, %v145_v62 }
 0x11e   :  { %v586_v20 = vsel %vm2745_vm9, %v2739_v10, %v2753_v18  ;;  %v587_v21 = vsel %vm2749_vm10, %v2741_v11, %v2755_v19  ;;  %v695_v22 = vsel %vm2745_vm9, %v2753_v18, %v2739_v10  ;;  %v696_v23 = vsel %vm2749_vm10, %v2755_v19, %v2741_v11 }
 0x123   :  { %v205_v24 = vpop.f32.mrf.mxu0  ;;  %v246_v25 = vpop.f32.mrf.mxu1 }
 0x124   :  { %v2773_v27 = vadd.f32 %v205_v24, %v144_v61  ;;  %v2775_v30 = vadd.f32 %v246_v25, %v145_v62 }
 0x126   :  { %v477_v31 = vsel %vm2745_vm9, %v2732_v5, %v2773_v27  ;;  %v478_v36 = vsel %vm2749_vm10, %v2734_v6, %v2775_v30  ;;  %v804_v41 = vsel %vm2745_vm9, %v2773_v27, %v2732_v5 }
 0x12b   :  { %v208_v49 = vpop.f32.mrf.mxu0  ;;  %v249_v50 = vpop.f32.mrf.mxu1 }
 0x12c   :  { %v2793_v51 = vadd.f32 %v208_v49, %v144_v61  ;;  %v2795_v52 = vadd.f32 %v249_v50, %v145_v62 }
 0x12e   :  { %v368_v53 = vsel %vm2745_vm9, %v2728_v1, %v2793_v51  ;;  %v369_v54 = vsel %vm2749_vm10, %v2730_v2, %v2795_v52 }
 0x133   :  { %v211_v57 = vpop.f32.mrf.mxu0  ;;  %v252_v60 = vpop.f32.mrf.mxu1 }
 0x134   :  { %v2817_v3 = vadd.f32 %v211_v57, %v144_v61  ;;  %v2819_v4 = vadd.f32 %v252_v60, %v145_v62 }
 0x136   :  { %v255_v12 = vsel %vm2745_vm9, %v2813_v63, %v2817_v3  ;;  %v256_v13 = vsel %vm2749_vm10, %v2815_v0, %v2819_v4 }
 0x137   :  { %v301_v61 = vadd.f32 %v278_v7, %v255_v12  ;;  %v302_v62 = vadd.f32 %v298_v8, %v256_v13 }
 0x139   :  { %v2200_v14 = vmul.f32 -1.442695, %v301_v61  ;;  %v304_v15 = vmul.f32 2.0, %v302_v62 }
 0x13b   :  { %2319 = vpow2.f32 %v2200_v14  ;;  %v306_v24 = vsel %vm34_vm11, %v304_v15, %v302_v62 }
 0x13c   :  { %v2201_v25 = vmul.f32 -1.442695, %v306_v24 }
 0x13e   :  { %2321 = vpow2.f32 %v2201_v25 }
 0x141   :  { %v2320_v49 = vpop.eup %2319 }
 0x142   :  { %v313_v50 = vadd.f32 1.0, %v2320_v49 }
 0x144   :  { %v2322_v57 = vpop.eup %2321  ;;  %2323 = vrcp.f32 %v313_v50  ;;  %v326_v25 = vand.u32 2147483648, %v313_v50  ;;  %vm320_vm1 = vweird.f32 %v313_v50 }
 0x145   :  { %v314_v60 = vadd.f32 1.0, %v2322_v57  ;;  %v324_v57 = vand.u32 2147483647, %v313_v50 }
 0x147   :  { %2325 = vrcp.f32 %v314_v60  ;;  %v341_v58 = vand.u32 2147483648, %v314_v60  ;;  %v339_v56 = vand.u32 2147483647, %v314_v60  ;;  %vm335_vm13 = vweird.f32 %v314_v60 }
 0x148   :  { %vm325_vm3 = vcmp.eq.f32.partialorder %v324_v57, 8.507059e+37 }
 0x149   :  { %v342_v24 = vor.u32 1.1754944e-38, %v341_v58  ;;  %vm340_vm0 = vcmp.eq.f32.partialorder %v339_v56, 8.507059e+37 }
 0x14a   :  { %v2324_v26 = vpop.eup %2323 }
 0x14b   :  { %v316_v59 = vmul.f32 %v2324_v26, %v313_v50  ;;  %vm321_vm14 = vweird.f32 %v2324_v26 }
 0x14c   :  { %vm322_vm2 = vmor %vm320_vm1, %vm321_vm14 }
 0x14d   :  { %v2326_v7 = vpop.eup %2325  ;;  %v317_v8 = vsub.f32 1.0, %v316_v59 }
 0x14e   :  { %v331_v12 = vmul.f32 %v2326_v7, %v314_v60  ;;  %vm336_vm12 = vweird.f32 %v2326_v7 }
 0x14f   :  { %v318_v61 = vmul.f32 %v2324_v26, %v317_v8  ;;  %vm337_vm15 = vmor %vm335_vm13, %vm336_vm12  ;;  %v327_v8 = vor.u32 1.1754944e-38, %v326_v25 }
 0x150   :  { %v332_v13 = vsub.f32 1.0, %v331_v12 }
 0x151   :  { %v319_v15 = vadd.f32 %v2324_v26, %v318_v61 }
 0x152   :  { %v333_v14 = vmul.f32 %v2326_v7, %v332_v13 }
 0x153   :  { %v323_v12 = vsel %vm322_vm2, %v2324_v26, %v319_v15 }
 0x154   :  { %v334_v62 = vadd.f32 %v2326_v7, %v333_v14  ;;  %v328_v13 = vsel %vm325_vm3, %v327_v8, %v323_v12 }
 0x155   :  { %v351_v58 = vmul.f32 0.0, %v328_v13 }
 0x156   :  { %v338_v49 = vsel %vm337_vm15, %v2326_v7, %v334_v62 }
 0x157   :  { %v343_v55 = vsel %vm340_vm0, %v342_v24, %v338_v49 }
 0x158   :  { %v346_v59 = vmul.f32 2.0, %v343_v55 }
 0x15a   :  { %v2203_v48 = vadd.f32 -1.0, %v346_v59 }
 0x15c   :  { %v350_v60 = vsel %vm34_vm11, %v2203_v48, %v343_v55 }
 0x15d   :  { %v352_v61 = vmul.f32 %v350_v60, %v328_v13 }
 0x15f   :  { %354 = vrot.lane.b32.xlu2 %v352_v61, %s2536_s0 }
 0x1b9   :  { %v355_v7 = vpop.permute.xlu2 %354 }
 0x1ba   :  { %v2843_v56 = vadd.f32 %v355_v7, %v351_v58 }
 0x1bc   :  { %2327 = vtanh.f32 %v2843_v56 }
 0x1c2   :  { %v2328_v50 = vpop.eup %2327 }
 0x1c3   :  { %v359_v14 = vmul.f32 %v2328_v50, %v350_v60 }
 0x1c5   :  { %361 = vrot.lane.b32.xlu0 %v359_v14, %s2536_s0 }
 0x237   :  { %v362_v26 = vpop.permute.xlu0 %361 }
 0x238   :  { %365 = vst.msk [vmem:[#allocation2] sm:$0xff] %vm364_vm4, %v362_v26  ;;  %2204 = vmatmul.msk.f32.vlgmr.msrb.gmra.mxu2 %vm257_vm5, %v362_v26  ;;  %2205 = vmatmul.msk.f32.vlgmr.msrb.gmra.mxu3 %vm257_vm5, %v362_v26 }
 0x239   :  { %367 = vst.msk [vmem:[#allocation2 + $0x38] sm:$0xff] %vm366_vm6, %v362_v26  ;;  %598 = vmatpush.msrb.mxu2 %v2586_v28  ;;  %618 = vmatpush.msrb.mxu3 %v2588_v29 }
 0x23b   :  { %599 = vmatpush.msrb.mxu2 %v2596_v32  ;;  %619 = vmatpush.msrb.mxu3 %v2598_v33 }
 0x23d   :  { %600 = vmatpush.msrb.mxu2 %v2602_v34  ;;  %620 = vmatpush.msrb.mxu3 %v2604_v35 }
 0x23f   :  { %601 = vmatpush.msrb.mxu2 %v2609_v37  ;;  %621 = vmatpush.msrb.mxu3 %v2611_v38 }
 0x241   :  { %602 = vmatpush.msrb.mxu2 %v2617_v39  ;;  %622 = vmatpush.msrb.mxu3 %v2619_v40 }
 0x243   :  { %603 = vmatpush.msrb.mxu2 %v2630_v42  ;;  %623 = vmatpush.msrb.mxu3 %v2632_v43 }
 0x245   :  { %604 = vmatpush.msrb.mxu2 %v2636_v44  ;;  %624 = vmatpush.msrb.mxu3 %v2638_v45 }
 0x247   :  { %605 = vmatpush.msrb.mxu2 %v2642_v46  ;;  %625 = vmatpush.msrb.mxu3 %v2644_v47 }
 0x2bb   :  { %v389_v48 = vpop.f32.mrf.mxu2  ;;  %v409_v55 = vpop.f32.mrf.mxu3 }
 0x2bc   :  { %v412_v62 = vadd.f32 %v389_v48, %v368_v53  ;;  %v413_v15 = vadd.f32 %v409_v55, %v369_v54 }
 0x2be   :  { %v2206_v24 = vmul.f32 -1.442695, %v412_v62  ;;  %v415_v25 = vmul.f32 2.0, %v413_v15 }
 0x2c0   :  { %2329 = vpow2.f32 %v2206_v24  ;;  %v417_v49 = vsel %vm34_vm11, %v415_v25, %v413_v15 }
 0x2c1   :  { %v2207_v57 = vmul.f32 -1.442695, %v417_v49 }
 0x2c3   :  { %2331 = vpow2.f32 %v2207_v57 }
 0x2c6   :  { %v2330_v59 = vpop.eup %2329 }
 0x2c7   :  { %v424_v12 = vadd.f32 1.0, %v2330_v59 }
 0x2c9   :  { %v2332_v8 = vpop.eup %2331  ;;  %2333 = vrcp.f32 %v424_v12  ;;  %v437_v24 = vand.u32 2147483648, %v424_v12  ;;  %vm431_vm15 = vweird.f32 %v424_v12  ;;  %v435_v49 = vand.u32 2147483647, %v424_v12 }
 0x2ca   :  { %v425_v13 = vadd.f32 1.0, %v2332_v8 }
 0x2cb   :  { %vm436_vm1 = vcmp.eq.f32.partialorder %v435_v49, 8.507059e+37 }
 0x2cc   :  { %2335 = vrcp.f32 %v425_v13  ;;  %v452_v14 = vand.u32 2147483648, %v425_v13  ;;  %v450_v48 = vand.u32 2147483647, %v425_v13  ;;  %vm446_vm8 = vweird.f32 %v425_v13 }
 0x2ce   :  { %v453_v15 = vor.u32 1.1754944e-38, %v452_v14  ;;  %vm451_vm14 = vcmp.eq.f32.partialorder %v450_v48, 8.507059e+37 }
 0x2cf   :  { %v2334_v53 = vpop.eup %2333 }
 0x2d0   :  { %v427_v60 = vmul.f32 %v2334_v53, %v424_v12  ;;  %vm432_vm12 = vweird.f32 %v2334_v53 }
 0x2d1   :  { %vm433_vm0 = vmor %vm431_vm15, %vm432_vm12 }
 0x2d2   :  { %v2336_v61 = vpop.eup %2335  ;;  %v428_v58 = vsub.f32 1.0, %v427_v60  ;;  %v438_v60 = vor.u32 1.1754944e-38, %v437_v24 }
 0x2d3   :  { %v442_v7 = vmul.f32 %v2336_v61, %v425_v13  ;;  %vm447_vm7 = vweird.f32 %v2336_v61 }
 0x2d4   :  { %v429_v50 = vmul.f32 %v2334_v53, %v428_v58  ;;  %vm448_vm13 = vmor %vm446_vm8, %vm447_vm7 }
 0x2d5   :  { %v443_v54 = vsub.f32 1.0, %v442_v7 }
 0x2d6   :  { %v430_v62 = vadd.f32 %v2334_v53, %v429_v50 }
 0x2d7   :  { %v444_v26 = vmul.f32 %v2336_v61, %v443_v54 }
 0x2d8   :  { %v434_v8 = vsel %vm433_vm0, %v2334_v53, %v430_v62 }
 0x2d9   :  { %v445_v55 = vadd.f32 %v2336_v61, %v444_v26  ;;  %v439_v7 = vsel %vm436_vm1, %v438_v60, %v434_v8 }
 0x2da   :  { %v462_v50 = vmul.f32 %v439_v7, %v2843_v56 }
 0x2db   :  { %v449_v25 = vsel %vm448_vm13, %v2336_v61, %v445_v55 }
 0x2dc   :  { %v454_v57 = vsel %vm451_vm14, %v453_v15, %v449_v25 }
 0x2dd   :  { %v457_v59 = vmul.f32 2.0, %v454_v57 }
 0x2df   :  { %v2209_v58 = vadd.f32 -1.0, %v457_v59 }
 0x2e1   :  { %v461_v13 = vsel %vm34_vm11, %v2209_v58, %v454_v57 }
 0x2e2   :  { %v463_v54 = vmul.f32 %v461_v13, %v439_v7 }
 0x2e4   :  { %465 = vrot.lane.b32.xlu1 %v463_v54, %s2536_s0 }
 0x356   :  { %v466_v61 = vpop.permute.xlu1 %465 }
 0x357   :  { %v2883_v14 = vadd.f32 %v466_v61, %v462_v50 }
 0x359   :  { %2337 = vtanh.f32 %v2883_v14 }
 0x35f   :  { %v2338_v12 = vpop.eup %2337 }
 0x360   :  { %v470_v26 = vmul.f32 %v2338_v12, %v461_v13 }
 0x362   :  { %472 = vrot.lane.b32.xlu2 %v470_v26, %s2536_s0 }
 0x3bc   :  { %v473_v53 = vpop.permute.xlu2 %472 }
 0x3bd   :  { %475 = vst.msk [vmem:[#allocation2 + $0x8] sm:$0xff] %vm364_vm4, %v473_v53  ;;  %2210 = vmatmul.msk.f32.vlgmr.msra.gmra.mxu2 %vm257_vm5, %v473_v53  ;;  %2211 = vmatmul.msk.f32.vlgmr.msra.gmra.mxu3 %vm257_vm5, %v473_v53 }
 0x3be   :  { %476 = vst.msk [vmem:[#allocation2 + $0x30] sm:$0xff] %vm366_vm6, %v473_v53  ;;  %816 = vmatpush.msra.mxu2 %v2586_v28  ;;  %836 = vmatpush.msra.mxu3 %v2588_v29 }
 0x3c0   :  { %817 = vmatpush.msra.mxu2 %v2596_v32  ;;  %837 = vmatpush.msra.mxu3 %v2598_v33 }
 0x3c2   :  { %818 = vmatpush.msra.mxu2 %v2602_v34  ;;  %838 = vmatpush.msra.mxu3 %v2604_v35 }
 0x3c4   :  { %819 = vmatpush.msra.mxu2 %v2609_v37  ;;  %839 = vmatpush.msra.mxu3 %v2611_v38 }
 0x3c6   :  { %820 = vmatpush.msra.mxu2 %v2617_v39  ;;  %840 = vmatpush.msra.mxu3 %v2619_v40 }
 0x3c8   :  { %821 = vmatpush.msra.mxu2 %v2630_v42  ;;  %841 = vmatpush.msra.mxu3 %v2632_v43 }
 0x3ca   :  { %822 = vmatpush.msra.mxu2 %v2636_v44  ;;  %842 = vmatpush.msra.mxu3 %v2638_v45 }
 0x3cc   :  { %823 = vmatpush.msra.mxu2 %v2642_v46  ;;  %843 = vmatpush.msra.mxu3 %v2644_v47 }
 0x440   :  { %v498_v56 = vpop.f32.mrf.mxu2  ;;  %v518_v48 = vpop.f32.mrf.mxu3 }
 0x441   :  { %v521_v55 = vadd.f32 %v498_v56, %v477_v31  ;;  %v522_v62 = vadd.f32 %v518_v48, %v478_v36 }
 0x443   :  { %v2212_v15 = vmul.f32 -1.442695, %v521_v55  ;;  %v524_v24 = vmul.f32 2.0, %v522_v62 }
 0x445   :  { %2339 = vpow2.f32 %v2212_v15  ;;  %v526_v25 = vsel %vm34_vm11, %v524_v24, %v522_v62 }
 0x446   :  { %v2213_v49 = vmul.f32 -1.442695, %v526_v25 }
 0x448   :  { %2341 = vpow2.f32 %v2213_v49 }
 0x44b   :  { %v2340_v57 = vpop.eup %2339 }
 0x44c   :  { %v533_v59 = vadd.f32 1.0, %v2340_v57 }
 0x44e   :  { %v2342_v8 = vpop.eup %2341  ;;  %2343 = vrcp.f32 %v533_v59  ;;  %v546_v55 = vand.u32 2147483648, %v533_v59  ;;  %vm540_vm13 = vweird.f32 %v533_v59  ;;  %v544_v15 = vand.u32 2147483647, %v533_v59 }
 0x44f   :  { %v534_v60 = vadd.f32 1.0, %v2342_v8 }
 0x450   :  { %v547_v57 = vor.u32 1.1754944e-38, %v546_v55  ;;  %vm545_vm15 = vcmp.eq.f32.partialorder %v544_v15, 8.507059e+37 }
 0x451   :  { %2345 = vrcp.f32 %v534_v60  ;;  %v561_v61 = vand.u32 2147483648, %v534_v60  ;;  %v559_v26 = vand.u32 2147483647, %v534_v60  ;;  %vm555_vm3 = vweird.f32 %v534_v60 }
 0x453   :  { %v562_v48 = vor.u32 1.1754944e-38, %v561_v61  ;;  %vm560_vm12 = vcmp.eq.f32.partialorder %v559_v26, 8.507059e+37 }
 0x454   :  { %v2344_v31 = vpop.eup %2343 }
 0x455   :  { %v536_v58 = vmul.f32 %v2344_v31, %v533_v59  ;;  %vm541_vm7 = vweird.f32 %v2344_v31 }
 0x456   :  { %vm542_vm14 = vmor %vm540_vm13, %vm541_vm7 }
 0x457   :  { %v2346_v7 = vpop.eup %2345  ;;  %v537_v13 = vsub.f32 1.0, %v536_v58 }
 0x458   :  { %v551_v54 = vmul.f32 %v2346_v7, %v534_v60  ;;  %vm556_vm2 = vweird.f32 %v2346_v7 }
 0x459   :  { %v538_v50 = vmul.f32 %v2344_v31, %v537_v13  ;;  %vm557_vm8 = vmor %vm555_vm3, %vm556_vm2 }
 0x45a   :  { %v552_v36 = vsub.f32 1.0, %v551_v54 }
 0x45b   :  { %v539_v56 = vadd.f32 %v2344_v31, %v538_v50 }
 0x45c   :  { %v553_v12 = vmul.f32 %v2346_v7, %v552_v36 }
 0x45d   :  { %v543_v49 = vsel %vm542_vm14, %v2344_v31, %v539_v56 }
 0x45e   :  { %v554_v53 = vadd.f32 %v2346_v7, %v553_v12  ;;  %v548_v58 = vsel %vm545_vm15, %v547_v57, %v543_v49 }
 0x45f   :  { %v571_v54 = vmul.f32 %v548_v58, %v2883_v14 }
 0x460   :  { %v558_v62 = vsel %vm557_vm8, %v2346_v7, %v554_v53 }
 0x461   :  { %v563_v24 = vsel %vm560_vm12, %v562_v48, %v558_v62 }
 0x462   :  { %v566_v25 = vmul.f32 2.0, %v563_v24 }
 0x464   :  { %v2215_v8 = vadd.f32 -1.0, %v566_v25 }
 0x466   :  { %v570_v60 = vsel %vm34_vm11, %v2215_v8, %v563_v24 }
 0x467   :  { %v572_v13 = vmul.f32 %v570_v60, %v548_v58 }
 0x469   :  { %574 = vrot.lane.b32.xlu0 %v572_v13, %s2536_s0 }
 0x4db   :  { %v575_v7 = vpop.permute.xlu0 %574 }
 0x4dc   :  { %v2923_v36 = vadd.f32 %v575_v7, %v571_v54 }
 0x4de   :  { %2347 = vtanh.f32 %v2923_v36 }
 0x4e4   :  { %v2348_v59 = vpop.eup %2347 }
 0x4e5   :  { %v579_v50 = vmul.f32 %v2348_v59, %v570_v60 }
 0x4e7   :  { %581 = vrot.lane.b32.xlu1 %v579_v50, %s2536_s0 }
 0x559   :  { %v582_v31 = vpop.permute.xlu1 %581 }
 0x55a   :  { %584 = vst.msk [vmem:[#allocation2 + $0x10] sm:$0xff] %vm364_vm4, %v582_v31  ;;  %2216 = vmatmul.msk.f32.vlgmr.msrb.gmra.mxu2 %vm257_vm5, %v582_v31  ;;  %2217 = vmatmul.msk.f32.vlgmr.msrb.gmra.mxu3 %vm257_vm5, %v582_v31 }
 0x55b   :  { %585 = vst.msk [vmem:[#allocation2 + $0x28] sm:$0xff] %vm366_vm6, %v582_v31  ;;  %1034 = vmatpush.msrb.mxu2 %v2586_v28  ;;  %1054 = vmatpush.msrb.mxu3 %v2588_v29 }
 0x55d   :  { %1035 = vmatpush.msrb.mxu2 %v2596_v32  ;;  %1055 = vmatpush.msrb.mxu3 %v2598_v33 }
 0x55f   :  { %1036 = vmatpush.msrb.mxu2 %v2602_v34  ;;  %1056 = vmatpush.msrb.mxu3 %v2604_v35 }
 0x561   :  { %1037 = vmatpush.msrb.mxu2 %v2609_v37  ;;  %1057 = vmatpush.msrb.mxu3 %v2611_v38 }
 0x563   :  { %1038 = vmatpush.msrb.mxu2 %v2617_v39  ;;  %1058 = vmatpush.msrb.mxu3 %v2619_v40 }
 0x565   :  { %1039 = vmatpush.msrb.mxu2 %v2630_v42  ;;  %1059 = vmatpush.msrb.mxu3 %v2632_v43 }
 0x567   :  { %1040 = vmatpush.msrb.mxu2 %v2636_v44  ;;  %1060 = vmatpush.msrb.mxu3 %v2638_v45 }
 0x569   :  { %1041 = vmatpush.msrb.mxu2 %v2642_v46  ;;  %1061 = vmatpush.msrb.mxu3 %v2644_v47 }
 0x5dd   :  { %v607_v28 = vpop.f32.mrf.mxu2  ;;  %v627_v29 = vpop.f32.mrf.mxu3 }
 0x5de   :  { %v630_v32 = vadd.f32 %v607_v28, %v586_v20  ;;  %v631_v33 = vadd.f32 %v627_v29, %v587_v21 }
 0x5e0   :  { %v2218_v34 = vmul.f32 -1.442695, %v630_v32  ;;  %v633_v35 = vmul.f32 2.0, %v631_v33 }
 0x5e2   :  { %2349 = vpow2.f32 %v2218_v34  ;;  %v635_v37 = vsel %vm34_vm11, %v633_v35, %v631_v33 }
 0x5e3   :  { %v2219_v38 = vmul.f32 -1.442695, %v635_v37 }
 0x5e5   :  { %2351 = vpow2.f32 %v2219_v38 }
 0x5e8   :  { %v2350_v39 = vpop.eup %2349 }
 0x5e9   :  { %v642_v40 = vadd.f32 1.0, %v2350_v39 }
 0x5eb   :  { %v2352_v42 = vpop.eup %2351  ;;  %2353 = vrcp.f32 %v642_v40  ;;  %v655_v55 = vand.u32 2147483648, %v642_v40  ;;  %vm649_vm8 = vweird.f32 %v642_v40  ;;  %v653_v15 = vand.u32 2147483647, %v642_v40 }
 0x5ec   :  { %v643_v43 = vadd.f32 1.0, %v2352_v42 }
 0x5ed   :  { %v656_v57 = vor.u32 1.1754944e-38, %v655_v55  ;;  %vm654_vm13 = vcmp.eq.f32.partialorder %v653_v15, 8.507059e+37 }
 0x5ee   :  { %2355 = vrcp.f32 %v643_v43  ;;  %v670_v61 = vand.u32 2147483648, %v643_v43  ;;  %v668_v26 = vand.u32 2147483647, %v643_v43  ;;  %vm664_vm1 = vweird.f32 %v643_v43 }
 0x5f0   :  { %v671_v48 = vor.u32 1.1754944e-38, %v670_v61  ;;  %vm669_vm7 = vcmp.eq.f32.partialorder %v668_v26, 8.507059e+37 }
 0x5f1   :  { %v2354_v44 = vpop.eup %2353 }
 0x5f2   :  { %v645_v45 = vmul.f32 %v2354_v44, %v642_v40  ;;  %vm650_vm2 = vweird.f32 %v2354_v44 }
 0x5f3   :  { %vm651_vm12 = vmor %vm649_vm8, %vm650_vm2 }
 0x5f4   :  { %v2356_v46 = vpop.eup %2355  ;;  %v646_v47 = vsub.f32 1.0, %v645_v45 }
 0x5f5   :  { %v660_v20 = vmul.f32 %v2356_v46, %v643_v43  ;;  %vm665_vm0 = vweird.f32 %v2356_v46 }
 0x5f6   :  { %v647_v14 = vmul.f32 %v2354_v44, %v646_v47  ;;  %vm666_vm3 = vmor %vm664_vm1, %vm665_vm0 }
 0x5f7   :  { %v661_v21 = vsub.f32 1.0, %v660_v20 }
 0x5f8   :  { %v648_v56 = vadd.f32 %v2354_v44, %v647_v14 }
 0x5f9   :  { %v662_v12 = vmul.f32 %v2356_v46, %v661_v21 }
 0x5fa   :  { %v652_v49 = vsel %vm651_vm12, %v2354_v44, %v648_v56 }
 0x5fb   :  { %v663_v53 = vadd.f32 %v2356_v46, %v662_v12  ;;  %v657_v58 = vsel %vm654_vm13, %v656_v57, %v652_v49 }
 0x5fc   :  { %v680_v54 = vmul.f32 %v657_v58, %v2923_v36 }
 0x5fd   :  { %v667_v62 = vsel %vm666_vm3, %v2356_v46, %v663_v53 }
 0x5fe   :  { %v672_v24 = vsel %vm669_vm7, %v671_v48, %v667_v62 }
 0x5ff   :  { %v675_v25 = vmul.f32 2.0, %v672_v24 }
 0x601   :  { %v2221_v8 = vadd.f32 -1.0, %v675_v25 }
 0x603   :  { %v679_v60 = vsel %vm34_vm11, %v2221_v8, %v672_v24 }
 0x604   :  { %v681_v13 = vmul.f32 %v679_v60, %v657_v58 }
 0x606   :  { %683 = vrot.lane.b32.xlu2 %v681_v13, %s2536_s0 }
 0x660   :  { %v684_v7 = vpop.permute.xlu2 %683 }
 0x661   :  { %v686_v59 = vadd.f32 %v684_v7, %v680_v54 }
 0x663   :  { %2357 = vtanh.f32 %v686_v59 }
 0x669   :  { %v2358_v50 = vpop.eup %2357 }
 0x66a   :  { %v688_v31 = vmul.f32 %v2358_v50, %v679_v60  ;;  %v3485_v50 = vsel %vm2749_vm10, %v2775_v30, %v2734_v6 }
 0x66c   :  { %690 = vrot.lane.b32.xlu0 %v688_v31, %s2536_s0 }
 0x6de   :  { %v691_v28 = vpop.permute.xlu0 %690 }
 0x6df   :  { %693 = vst.msk [vmem:[#allocation2 + $0x18] sm:$0xff] %vm364_vm4, %v691_v28  ;;  %2222 = vmatmul.msk.f32.vlgmr.msrb.gmra.mxu0 %vm257_vm5, %v691_v28  ;;  %2223 = vmatmul.msk.f32.vlgmr.msrb.gmra.mxu1 %vm257_vm5, %v691_v28 }
 0x6e0   :  { %694 = vst.msk [vmem:[#allocation2 + $0x20] sm:$0xff] %vm366_vm6, %v691_v28 }
 0x75c   :  { %v716_v29 = vpop.f32.mrf.mxu0  ;;  %v736_v32 = vpop.f32.mrf.mxu1 }
 0x75d   :  { %v739_v36 = vadd.f32 %v716_v29, %v695_v22  ;;  %v740_v33 = vadd.f32 %v736_v32, %v696_v23 }
 0x75f   :  { %v2224_v34 = vmul.f32 -1.442695, %v739_v36  ;;  %v742_v35 = vmul.f32 2.0, %v740_v33 }
 0x761   :  { %2359 = vpow2.f32 %v2224_v34  ;;  %v744_v37 = vsel %vm34_vm11, %v742_v35, %v740_v33 }
 0x762   :  { %v2225_v38 = vmul.f32 -1.442695, %v744_v37 }
 0x764   :  { %2361 = vpow2.f32 %v2225_v38 }
 0x767   :  { %v2360_v39 = vpop.eup %2359 }
 0x768   :  { %v751_v40 = vadd.f32 1.0, %v2360_v39 }
 0x76a   :  { %v2362_v42 = vpop.eup %2361  ;;  %2363 = vrcp.f32 %v751_v40  ;;  %v764_v61 = vand.u32 2147483648, %v751_v40  ;;  %vm758_vm3 = vweird.f32 %v751_v40  ;;  %v762_v26 = vand.u32 2147483647, %v751_v40 }
 0x76b   :  { %v752_v10 = vadd.f32 1.0, %v2362_v42 }
 0x76c   :  { %v765_v55 = vor.u32 1.1754944e-38, %v764_v61  ;;  %vm763_vm8 = vcmp.eq.f32.partialorder %v762_v26, 8.507059e+37 }
 0x76d   :  { %2365 = vrcp.f32 %v752_v10  ;;  %v779_v45 = vand.u32 2147483648, %v752_v10  ;;  %v777_v47 = vand.u32 2147483647, %v752_v10  ;;  %vm773_vm15 = vweird.f32 %v752_v10 }
 0x76f   :  { %v780_v14 = vor.u32 1.1754944e-38, %v779_v45  ;;  %vm778_vm2 = vcmp.eq.f32.partialorder %v777_v47, 8.507059e+37 }
 0x770   :  { %v2364_v18 = vpop.eup %2363 }
 0x771   :  { %v754_v22 = vmul.f32 %v2364_v18, %v751_v40  ;;  %vm759_vm0 = vweird.f32 %v2364_v18 }
 0x772   :  { %vm760_vm7 = vmor %vm758_vm3, %vm759_vm0 }
 0x773   :  { %v2366_v43 = vpop.eup %2365  ;;  %v755_v44 = vsub.f32 1.0, %v754_v22 }
 0x774   :  { %v769_v11 = vmul.f32 %v2366_v43, %v752_v10  ;;  %vm774_vm14 = vweird.f32 %v2366_v43 }
 0x775   :  { %v756_v23 = vmul.f32 %v2364_v18, %v755_v44  ;;  %vm775_vm1 = vmor %vm773_vm15, %vm774_vm14 }
 0x776   :  { %v770_v19 = vsub.f32 1.0, %v769_v11 }
 0x777   :  { %v757_v21 = vadd.f32 %v2364_v18, %v756_v23 }
 0x778   :  { %v771_v46 = vmul.f32 %v2366_v43, %v770_v19 }
 0x779   :  { %v761_v48 = vsel %vm760_vm7, %v2364_v18, %v757_v21 }
 0x77a   :  { %v772_v20 = vadd.f32 %v2366_v43, %v771_v46  ;;  %v766_v15 = vsel %vm763_vm8, %v765_v55, %v761_v48 }
 0x77b   :  { %v789_v49 = vmul.f32 %v766_v15, %v686_v59 }
 0x77c   :  { %v776_v12 = vsel %vm775_vm1, %v2366_v43, %v772_v20 }
 0x77d   :  { %v781_v53 = vsel %vm778_vm2, %v780_v14, %v776_v12 }
 0x77e   :  { %v784_v56 = vmul.f32 2.0, %v781_v53 }
 0x780   :  { %v2227_v62 = vadd.f32 -1.0, %v784_v56 }
 0x782   :  { %v788_v24 = vsel %vm34_vm11, %v2227_v62, %v781_v53 }
 0x783   :  { %v790_v25 = vmul.f32 %v788_v24, %v766_v15 }
 0x785   :  { %792 = vrot.lane.b32.xlu1 %v790_v25, %s2536_s0 }
 0x7f7   :  { %v793_v57 = vpop.permute.xlu1 %792 }
 0x7f8   :  { %v795_v8 = vadd.f32 %v793_v57, %v789_v49  ;;  %v3487_v49 = vsel %vm2749_vm10, %v2795_v52, %v2730_v2 }
 0x7fa   :  { %2367 = vtanh.f32 %v795_v8 }
 0x800   :  { %v2368_v58 = vpop.eup %2367 }
 0x801   :  { %v797_v60 = vmul.f32 %v2368_v58, %v788_v24  ;;  %v3486_v24 = vsel %vm2745_vm9, %v2793_v51, %v2728_v1 }
 0x803   :  { %799 = vrot.lane.b32.xlu2 %v797_v60, %s2536_s0 }
 0x85d   :  { %v800_v13 = vpop.permute.xlu2 %799 }
 0x85e   :  { %802 = vst.msk [vmem:[#allocation2 + $0x20] sm:$0xff] %vm364_vm4, %v800_v13  ;;  %2228 = vmatmul.msk.f32.vlgmr.msra.gmra.mxu2 %vm257_vm5, %v800_v13  ;;  %2229 = vmatmul.msk.f32.vlgmr.msra.gmra.mxu3 %vm257_vm5, %v800_v13 }
 0x85f   :  { %803 = vst.msk [vmem:[#allocation2 + $0x18] sm:$0xff] %vm366_vm6, %v800_v13 }
 0x8e1   :  { %v825_v54 = vpop.f32.mrf.mxu2  ;;  %v845_v7 = vpop.f32.mrf.mxu3 }
 0x8e2   :  { %v848_v59 = vadd.f32 %v825_v54, %v804_v41  ;;  %v849_v31 = vadd.f32 %v845_v7, %v3485_v50 }
 0x8e4   :  { %v2230_v28 = vmul.f32 -1.442695, %v848_v59  ;;  %v851_v29 = vmul.f32 2.0, %v849_v31 }
 0x8e6   :  { %2369 = vpow2.f32 %v2230_v28  ;;  %v853_v32 = vsel %vm34_vm11, %v851_v29, %v849_v31 }
 0x8e7   :  { %v2231_v36 = vmul.f32 -1.442695, %v853_v32 }
 0x8e9   :  { %2371 = vpow2.f32 %v2231_v36 }
 0x8ec   :  { %v2370_v33 = vpop.eup %2369 }
 0x8ed   :  { %v860_v34 = vadd.f32 1.0, %v2370_v33 }
 0x8ef   :  { %v2372_v35 = vpop.eup %2371  ;;  %2373 = vrcp.f32 %v860_v34  ;;  %v873_v44 = vand.u32 2147483648, %v860_v34  ;;  %vm867_vm1 = vweird.f32 %v860_v34  ;;  %v871_v19 = vand.u32 2147483647, %v860_v34 }
 0x8f0   :  { %v861_v5 = vadd.f32 1.0, %v2372_v35 }
 0x8f1   :  { %v874_v47 = vor.u32 1.1754944e-38, %v873_v44  ;;  %vm872_vm3 = vcmp.eq.f32.partialorder %v871_v19, 8.507059e+37 }
 0x8f2   :  { %2375 = vrcp.f32 %v861_v5  ;;  %v888_v40 = vand.u32 2147483648, %v861_v5  ;;  %v886_v10 = vand.u32 2147483647, %v861_v5  ;;  %vm882_vm13 = vweird.f32 %v861_v5 }
 0x8f4   :  { %v889_v43 = vor.u32 1.1754944e-38, %v888_v40  ;;  %vm887_vm0 = vcmp.eq.f32.partialorder %v886_v10, 8.507059e+37 }
 0x8f5   :  { %v2374_v27 = vpop.eup %2373 }
 0x8f6   :  { %v863_v41 = vmul.f32 %v2374_v27, %v860_v34  ;;  %vm868_vm14 = vweird.f32 %v2374_v27 }
 0x8f7   :  { %vm869_vm2 = vmor %vm867_vm1, %vm868_vm14 }
 0x8f8   :  { %v2376_v37 = vpop.eup %2375  ;;  %v864_v38 = vsub.f32 1.0, %v863_v41 }
 0x8f9   :  { %v878_v6 = vmul.f32 %v2376_v37, %v861_v5  ;;  %vm883_vm12 = vweird.f32 %v2376_v37 }
 0x8fa   :  { %v865_v39 = vmul.f32 %v2374_v27, %v864_v38  ;;  %vm884_vm15 = vmor %vm882_vm13, %vm883_vm12 }
 0x8fb   :  { %v879_v30 = vsub.f32 1.0, %v878_v6 }
 0x8fc   :  { %v866_v22 = vadd.f32 %v2374_v27, %v865_v39 }
 0x8fd   :  { %v880_v42 = vmul.f32 %v2376_v37, %v879_v30 }
 0x8fe   :  { %v870_v46 = vsel %vm869_vm2, %v2374_v27, %v866_v22 }
 0x8ff   :  { %v881_v18 = vadd.f32 %v2376_v37, %v880_v42  ;;  %v875_v21 = vsel %vm872_vm3, %v874_v47, %v870_v46  ;;  %v3488_v47 = vsel %vm2745_vm9, %v2817_v3, %v2813_v63 }
 0x900   :  { %v898_v12 = vmul.f32 %v875_v21, %v795_v8 }
 0x901   :  { %v885_v11 = vsel %vm884_vm15, %v2376_v37, %v881_v18 }
 0x902   :  { %v890_v23 = vsel %vm887_vm0, %v889_v43, %v885_v11 }
 0x903   :  { %v893_v45 = vmul.f32 2.0, %v890_v23 }
 0x905   :  { %v2233_v20 = vadd.f32 -1.0, %v893_v45 }
 0x907   :  { %v897_v14 = vsel %vm34_vm11, %v2233_v20, %v890_v23 }
 0x908   :  { %v899_v61 = vmul.f32 %v897_v14, %v875_v21  ;;  %v3489_v21 = vsel %vm2749_vm10, %v2819_v4, %v2815_v0 }
 0x90a   :  { %901 = vrot.lane.b32.xlu0 %v899_v61, %s2536_s0 }
 0x97c   :  { %v902_v26 = vpop.permute.xlu0 %901 }
 0x97d   :  { %v904_v53 = vadd.f32 %v902_v26, %v898_v12 }
 0x97f   :  { %2377 = vtanh.f32 %v904_v53 }
 0x985   :  { %v2378_v56 = vpop.eup %2377 }
 0x986   :  { %v906_v48 = vmul.f32 %v2378_v56, %v897_v14 }
 0x988   :  { %908 = vrot.lane.b32.xlu1 %v906_v48, %s2536_s0 }
 0x9fa   :  { %v909_v55 = vpop.permute.xlu1 %908 }
 0x9fb   :  { %911 = vst.msk [vmem:[#allocation2 + $0x28] sm:$0xff] %vm364_vm4, %v909_v55  ;;  %2234 = vmatmul.msk.f32.vlgmr.msra.gmra.mxu0 %vm257_vm5, %v909_v55  ;;  %2235 = vmatmul.msk.f32.vlgmr.msra.gmra.mxu1 %vm257_vm5, %v909_v55 }
 0x9fc   :  { %912 = vst.msk [vmem:[#allocation2 + $0x10] sm:$0xff] %vm366_vm6, %v909_v55 }
 0xa78   :  { %v934_v62 = vpop.f32.mrf.mxu0  ;;  %v954_v15 = vpop.f32.mrf.mxu1 }
 0xa79   :  { %v957_v25 = vadd.f32 %v934_v62, %v3486_v24  ;;  %v958_v57 = vadd.f32 %v954_v15, %v3487_v49 }
 0xa7b   :  { %v2236_v8 = vmul.f32 -1.442695, %v957_v25  ;;  %v960_v58 = vmul.f32 2.0, %v958_v57 }
 0xa7d   :  { %2379 = vpow2.f32 %v2236_v8  ;;  %v962_v60 = vsel %vm34_vm11, %v960_v58, %v958_v57 }
 0xa7e   :  { %v2237_v13 = vmul.f32 -1.442695, %v962_v60 }
 0xa80   :  { %2381 = vpow2.f32 %v2237_v13 }
 0xa83   :  { %v2380_v54 = vpop.eup %2379 }
 0xa84   :  { %v969_v7 = vadd.f32 1.0, %v2380_v54 }
 0xa86   :  { %v2382_v59 = vpop.eup %2381  ;;  %2383 = vrcp.f32 %v969_v7  ;;  %v982_v27 = vand.u32 2147483648, %v969_v7  ;;  %vm976_vm15 = vweird.f32 %v969_v7  ;;  %v980_v37 = vand.u32 2147483647, %v969_v7 }
 0xa87   :  { %v970_v1 = vadd.f32 1.0, %v2382_v59 }
 0xa88   :  { %v983_v39 = vor.u32 1.1754944e-38, %v982_v27  ;;  %vm981_vm1 = vcmp.eq.f32.partialorder %v980_v37, 8.507059e+37  ;;  %v1139_v27 = vld [vmem:[#allocation3 + $0x140] sm:$0xff] }
 0xa89   :  { %2385 = vrcp.f32 %v970_v1  ;;  %v997_v32 = vand.u32 2147483648, %v970_v1  ;;  %v995_v33 = vand.u32 2147483647, %v970_v1  ;;  %vm991_vm8 = vweird.f32 %v970_v1 }
 0xa8b   :  { %v998_v5 = vor.u32 1.1754944e-38, %v997_v32  ;;  %vm996_vm14 = vcmp.eq.f32.partialorder %v995_v33, 8.507059e+37  ;;  %v1145_v32 = vld [vmem:[#allocation3 + $0x170] sm:$0xff]  ;;  %v1143_v33 = vld [vmem:[#allocation3 + $0x160] sm:$0xff] }
 0xa8c   :  { %v2384_v51 = vpop.eup %2383  ;;  %1210 = vmatpush.msrb.mxu0 %v1145_v32 }
 0xa8d   :  { %v972_v50 = vmul.f32 %v2384_v51, %v969_v7  ;;  %vm977_vm12 = vweird.f32 %v2384_v51 }
 0xa8e   :  { %vm978_vm0 = vmor %vm976_vm15, %vm977_vm12  ;;  %1211 = vmatpush.msrb.mxu0 %v1143_v33 }
 0xa8f   :  { %v2386_v31 = vpop.eup %2385  ;;  %v973_v28 = vsub.f32 1.0, %v972_v50 }
 0xa90   :  { %v987_v2 = vmul.f32 %v2386_v31, %v970_v1  ;;  %vm992_vm7 = vweird.f32 %v2386_v31 }
 0xa91   :  { %v974_v29 = vmul.f32 %v2384_v51, %v973_v28  ;;  %vm993_vm13 = vmor %vm991_vm8, %vm992_vm7 }
 0xa92   :  { %v988_v52 = vsub.f32 1.0, %v987_v2 }
 0xa93   :  { %v975_v35 = vadd.f32 %v2384_v51, %v974_v29 }
 0xa94   :  { %v989_v36 = vmul.f32 %v2386_v31, %v988_v52 }
 0xa95   :  { %v979_v30 = vsel %vm978_vm0, %v2384_v51, %v975_v35  ;;  %v1141_v35 = vld [vmem:[#allocation3 + $0x150] sm:$0xff] }
 0xa96   :  { %v990_v34 = vadd.f32 %v2386_v31, %v989_v36  ;;  %v984_v42 = vsel %vm981_vm1, %v983_v39, %v979_v30  ;;  %v1146_v36 = vld [vmem:[#allocation3 + $0x178] sm:$0xff]  ;;  %1212 = vmatpush.msrb.mxu0 %v1141_v35 }
 0xa97   :  { %v1007_v22 = vmul.f32 %v984_v42, %v904_v53  ;;  %1251 = vmatpush.msrb.mxu1 %v1146_v36 }
 0xa98   :  { %v994_v41 = vsel %vm993_vm13, %v2386_v31, %v990_v34  ;;  %v1144_v34 = vld [vmem:[#allocation3 + $0x168] sm:$0xff]  ;;  %1213 = vmatpush.msrb.mxu0 %v1139_v27 }
 0xa99   :  { %v999_v38 = vsel %vm996_vm14, %v998_v5, %v994_v41  ;;  %v1142_v5 = vld [vmem:[#allocation3 + $0x158] sm:$0xff]  ;;  %1252 = vmatpush.msrb.mxu1 %v1144_v34  ;;  %v1140_v41 = vld [vmem:[#allocation3 + $0x148] sm:$0xff] }
 0xa9a   :  { %v1002_v6 = vmul.f32 2.0, %v999_v38 }
 0xa9b   :  { %1253 = vmatpush.msrb.mxu1 %v1142_v5 }
 0xa9c   :  { %v2239_v40 = vadd.f32 -1.0, %v1002_v6 }
 0xa9d   :  { %1254 = vmatpush.msrb.mxu1 %v1140_v41 }
 0xa9e   :  { %v1006_v10 = vsel %vm34_vm11, %v2239_v40, %v999_v38  ;;  %v1137_v40 = vld [vmem:[#allocation3 + $0x130] sm:$0xff] }
 0xa9f   :  { %v1008_v18 = vmul.f32 %v1006_v10, %v984_v42  ;;  %v1138_v42 = vld [vmem:[#allocation3 + $0x138] sm:$0xff]  ;;  %1214 = vmatpush.msrb.mxu0 %v1137_v40 }
 0xaa0   :  { %1255 = vmatpush.msrb.mxu1 %v1138_v42 }
 0xaa1   :  { %1010 = vrot.lane.b32.xlu2 %v1008_v18, %s2536_s0  ;;  %v1136_v18 = vld [vmem:[#allocation3 + $0x128] sm:$0xff] }
 0xaa2   :  { %1256 = vmatpush.msrb.mxu1 %v1136_v18 }
 0xafb   :  { %v1011_v43 = vpop.permute.xlu2 %1010 }
 0xafc   :  { %v3023_v44 = vadd.f32 %v1011_v43, %v1007_v22  ;;  %v1133_v22 = vld [vmem:[#allocation3 + $0x110] sm:$0xff]  ;;  %v1134_v43 = vld [vmem:[#allocation3 + $0x118] sm:$0xff] }
 0xafd   :  { %1257 = vmatpush.msrb.mxu1 %v1134_v43 }
 0xafe   :  { %2387 = vtanh.f32 %v3023_v44 }
 0xb04   :  { %v2388_v11 = vpop.eup %2387 }
 0xb05   :  { %v1015_v19 = vmul.f32 %v2388_v11, %v1006_v10  ;;  %v1135_v10 = vld [vmem:[#allocation3 + $0x120] sm:$0xff] }
 0xb06   :  { %1215 = vmatpush.msrb.mxu0 %v1135_v10  ;;  %v1131_v11 = vld [vmem:[#allocation3 + $0x100] sm:$0xff] }
 0xb07   :  { %1017 = vrot.lane.b32.xlu0 %v1015_v19, %s2536_s0  ;;  %v1132_v19 = vld [vmem:[#allocation3 + $0x108] sm:$0xff] }
 0xb08   :  { %1216 = vmatpush.msrb.mxu0 %v1133_v22  ;;  %1258 = vmatpush.msrb.mxu1 %v1132_v19 }
 0xb0a   :  { %1217 = vmatpush.msrb.mxu0 %v1131_v11 }
 0xb79   :  { %v1018_v23 = vpop.permute.xlu0 %1017 }
 0xb7a   :  { %1020 = vst.msk [vmem:[#allocation2 + $0x30] sm:$0xff] %vm364_vm4, %v1018_v23  ;;  %2240 = vmatmul.msk.f32.vlgmr.msrb.gmra.mxu2 %vm257_vm5, %v1018_v23  ;;  %2241 = vmatmul.msk.f32.vlgmr.msrb.gmra.mxu3 %vm257_vm5, %v1018_v23 }
 0xb7b   :  { %1021 = vst.msk [vmem:[#allocation2 + $0x8] sm:$0xff] %vm366_vm6, %v1018_v23 }
 0xbfd   :  { %v1043_v45 = vpop.f32.mrf.mxu2  ;;  %v1063_v46 = vpop.f32.mrf.mxu3 }
 0xbfe   :  { %v1066_v20 = vadd.f32 %v1043_v45, %v3488_v47  ;;  %v1067_v14 = vadd.f32 %v1063_v46, %v3489_v21  ;;  %v3052_v45 = vld [vmem:[#allocation3 + $0x200] sm:$0xff]  ;;  %v3054_v46 = vld [vmem:[#allocation3 + $0x208] sm:$0xff]  ;;  %v3062_v21 = vld [vmem:[#allocation3 + $0x1f8] sm:$0xff] }
 0xbff   :  { %1294 = vmatpush.msra.mxu2 %v3052_v45  ;;  %1314 = vmatpush.msra.mxu3 %v3054_v46  ;;  %v1166_v47 = vld [vmem:[#allocation2 + $0x8] sm:$0xff] }
 0xc00   :  { %v2242_v61 = vmul.f32 -1.442695, %v1066_v20  ;;  %v1069_v12 = vmul.f32 2.0, %v1067_v14  ;;  %1738 = vmatpush.msra.mxu1 %v3054_v46  ;;  %1718 = vmatpush.msra.mxu0 %v3052_v45  ;;  %v3060_v20 = vld [vmem:[#allocation3 + $0x1f0] sm:$0xff] }
 0xc01   :  { %1295 = vmatpush.msra.mxu2 %v3060_v20  ;;  %1315 = vmatpush.msra.mxu3 %v3062_v21 }
 0xc02   :  { %2389 = vpow2.f32 %v2242_v61  ;;  %v1071_v26 = vsel %vm34_vm11, %v1069_v12, %v1067_v14  ;;  %v3066_v14 = vld [vmem:[#allocation3 + $0x1e0] sm:$0xff]  ;;  %v3068_v61 = vld [vmem:[#allocation3 + $0x1e8] sm:$0xff]  ;;  %v3072_v12 = vld [vmem:[#allocation3 + $0x1d0] sm:$0xff]  ;;  %1739 = vmatpush.msra.mxu1 %v3062_v21  ;;  %1719 = vmatpush.msra.mxu0 %v3060_v20 }
 0xc03   :  { %v2243_v53 = vmul.f32 -1.442695, %v1071_v26  ;;  %v3074_v26 = vld [vmem:[#allocation3 + $0x1d8] sm:$0xff]  ;;  %1296 = vmatpush.msra.mxu2 %v3066_v14  ;;  %1316 = vmatpush.msra.mxu3 %v3068_v61 }
 0xc04   :  { %1740 = vmatpush.msra.mxu1 %v3068_v61  ;;  %1720 = vmatpush.msra.mxu0 %v3066_v14 }
 0xc05   :  { %2391 = vpow2.f32 %v2243_v53  ;;  %v3080_v53 = vld [vmem:[#allocation3 + $0x1c0] sm:$0xff]  ;;  %1297 = vmatpush.msra.mxu2 %v3072_v12  ;;  %1317 = vmatpush.msra.mxu3 %v3074_v26 }
 0xc06   :  { %1741 = vmatpush.msra.mxu1 %v3074_v26  ;;  %1721 = vmatpush.msra.mxu0 %v3072_v12 }
 0xc07   :  { %1298 = vmatpush.msra.mxu2 %v3080_v53 }
 0xc08   :  { %v2390_v56 = vpop.eup %2389  ;;  %1722 = vmatpush.msra.mxu0 %v3080_v53 }
 0xc09   :  { %v1078_v48 = vadd.f32 1.0, %v2390_v56  ;;  %v3082_v56 = vld [vmem:[#allocation3 + $0x1c8] sm:$0xff] }
 0xc0a   :  { %1318 = vmatpush.msra.mxu3 %v3082_v56  ;;  %1742 = vmatpush.msra.mxu1 %v3082_v56 }
 0xc0b   :  { %v2392_v55 = vpop.eup %2391  ;;  %2393 = vrcp.f32 %v1078_v48  ;;  %v1091_v54 = vand.u32 2147483648, %v1078_v48  ;;  %vm1085_vm13 = vweird.f32 %v1078_v48  ;;  %v1089_v59 = vand.u32 2147483647, %v1078_v48 }
 0xc0c   :  { %v1079_v63 = vadd.f32 1.0, %v2392_v55  ;;  %v3092_v55 = vld [vmem:[#allocation3 + $0x1b0] sm:$0xff] }
 0xc0d   :  { %v1092_v31 = vor.u32 1.1754944e-38, %v1091_v54  ;;  %vm1090_vm15 = vcmp.eq.f32.partialorder %v1089_v59, 8.507059e+37  ;;  %1299 = vmatpush.msra.mxu2 %v3092_v55  ;;  %1723 = vmatpush.msra.mxu0 %v3092_v55 }
 0xc0e   :  { %2395 = vrcp.f32 %v1079_v63  ;;  %v1106_v49 = vand.u32 2147483648, %v1079_v63  ;;  %v1104_v8 = vand.u32 2147483647, %v1079_v63  ;;  %vm1100_vm3 = vweird.f32 %v1079_v63 }
 0xc10   :  { %v1107_v13 = vor.u32 1.1754944e-38, %v1106_v49  ;;  %vm1105_vm12 = vcmp.eq.f32.partialorder %v1104_v8, 8.507059e+37  ;;  %v1170_v49 = vld [vmem:[#allocation2 + $0x28] sm:$0xff] }
 0xc11   :  { %v2394_v3 = vpop.eup %2393 }
 0xc12   :  { %v1081_v62 = vmul.f32 %v2394_v3, %v1078_v48  ;;  %vm1086_vm7 = vweird.f32 %v2394_v3  ;;  %v1167_v48 = vld [vmem:[#allocation2 + $0x10] sm:$0xff] }
 0xc13   :  { %vm1087_vm14 = vmor %vm1085_vm13, %vm1086_vm7 }
 0xc14   :  { %v2396_v15 = vpop.eup %2395  ;;  %v1082_v24 = vsub.f32 1.0, %v1081_v62  ;;  %v3100_v62 = vld [vmem:[#allocation3 + $0x1a8] sm:$0xff] }
 0xc15   :  { %v1096_v0 = vmul.f32 %v2396_v15, %v1079_v63  ;;  %vm1101_vm2 = vweird.f32 %v2396_v15  ;;  %v3094_v63 = vld [vmem:[#allocation3 + $0x1b8] sm:$0xff] }
 0xc16   :  { %v1083_v25 = vmul.f32 %v2394_v3, %v1082_v24  ;;  %vm1102_vm8 = vmor %vm1100_vm3, %vm1101_vm2  ;;  %1319 = vmatpush.msra.mxu3 %v3094_v63  ;;  %v3106_v24 = vld [vmem:[#allocation3 + $0x198] sm:$0xff]  ;;  %1743 = vmatpush.msra.mxu1 %v3094_v63 }
 0xc17   :  { %v1097_v4 = vsub.f32 1.0, %v1096_v0  ;;  %v3490_v0 = vmov 0.0  }
 0xc18   :  { %v1084_v60 = vadd.f32 %v2394_v3, %v1083_v25  ;;  %1320 = vmatpush.msra.mxu3 %v3100_v62  ;;  %1744 = vmatpush.msra.mxu1 %v3100_v62  ;;  %v1169_v25 = vld [vmem:[#allocation2 + $0x20] sm:$0xff] }
 0xc19   :  { %v1098_v57 = vmul.f32 %v2396_v15, %v1097_v4  ;;  %v1168_v4 = vld [vmem:[#allocation2 + $0x18] sm:$0xff] }
 0xc1a   :  { %v1088_v50 = vsel %vm1087_vm14, %v2394_v3, %v1084_v60  ;;  %v3098_v3 = vld [vmem:[#allocation3 + $0x1a0] sm:$0xff]  ;;  %1321 = vmatpush.msra.mxu3 %v3106_v24  ;;  %1745 = vmatpush.msra.mxu1 %v3106_v24 }
 0xc1b   :  { %v1099_v58 = vadd.f32 %v2396_v15, %v1098_v57  ;;  %v1093_v2 = vsel %vm1090_vm15, %v1092_v31, %v1088_v50  ;;  %1300 = vmatpush.msra.mxu2 %v3098_v3  ;;  %1322 = vmatmul.f32.vlgmr.msra.gmra.mxu3 %v3490_v0  ;;  %v1171_v57 = vld [vmem:[#allocation2 + $0x30] sm:$0xff] }
 0xc1c   :  { %v1116_v37 = vmul.f32 %v1093_v2, %v3023_v44  ;;  %1420 = vmatpush.msrb.mxu3 %v3054_v46  ;;  %1724 = vmatpush.msra.mxu0 %v3098_v3 }
 0xc1d   :  { %v1103_v7 = vsel %vm1102_vm8, %v2396_v15, %v1099_v58  ;;  %v3104_v15 = vld [vmem:[#allocation3 + $0x190] sm:$0xff] }
 0xc1e   :  { %v1108_v1 = vsel %vm1105_vm12, %v1107_v13, %v1103_v7  ;;  %1301 = vmatpush.msra.mxu2 %v3104_v15  ;;  %1421 = vmatpush.msrb.mxu3 %v3062_v21  ;;  %v1148_v13 = vld [vmem:[#allocation3 + $0x180] ss:$8 sm:$0x3] }
 0xc1f   :  { %v1111_v51 = vmul.f32 2.0, %v1108_v1  ;;  %1302 = vmatmul.f32.vlgmr.msra.gmra.mxu2 %v3490_v0  ;;  %1725 = vmatpush.msra.mxu0 %v3104_v15  ;;  %v1174_v54 = vperm.slane %v1148_v13, 0  ;;  %v1175_v7 = vperm.slane %v1148_v13, 1 }
 0xc20   :  { %1400 = vmatpush.msrb.mxu2 %v3052_v45  ;;  %1422 = vmatpush.msrb.mxu3 %v3068_v61 }
 0xc21   :  { %v2245_v28 = vadd.f32 -1.0, %v1111_v51 }
 0xc22   :  { %1401 = vmatpush.msrb.mxu2 %v3060_v20  ;;  %1423 = vmatpush.msrb.mxu3 %v3074_v26 }
 0xc23   :  { %v1115_v52 = vsel %vm34_vm11, %v2245_v28, %v1108_v1 }
 0xc24   :  { %v1117_v29 = vmul.f32 %v1115_v52, %v1093_v2  ;;  %1402 = vmatpush.msrb.mxu2 %v3066_v14  ;;  %1424 = vmatpush.msrb.mxu3 %v3082_v56 }
 0xc26   :  { %1119 = vrot.lane.b32.xlu1 %v1117_v29, %s2536_s0  ;;  %1403 = vmatpush.msrb.mxu2 %v3072_v12 }
 0xc27   :  { %1425 = vmatpush.msrb.mxu3 %v3094_v63 }
 0xc28   :  { %1404 = vmatpush.msrb.mxu2 %v3080_v53 }
 0xc29   :  { %1426 = vmatpush.msrb.mxu3 %v3100_v62 }
 0xc2a   :  { %1405 = vmatpush.msrb.mxu2 %v3092_v55 }
 0xc2b   :  { %1427 = vmatpush.msrb.mxu3 %v3106_v24 }
 0xc2c   :  { %1406 = vmatpush.msrb.mxu2 %v3098_v3 }
 0xc2d   :  { %1526 = vmatpush.msra.mxu3 %v3054_v46 }
 0xc2e   :  { %1407 = vmatpush.msrb.mxu2 %v3104_v15 }
 0xc2f   :  { %1527 = vmatpush.msra.mxu3 %v3062_v21 }
 0xc30   :  { %1506 = vmatpush.msra.mxu2 %v3052_v45 }
 0xc31   :  { %1528 = vmatpush.msra.mxu3 %v3068_v61 }
 0xc32   :  { %1507 = vmatpush.msra.mxu2 %v3060_v20 }
 0xc33   :  { %1529 = vmatpush.msra.mxu3 %v3074_v26 }
 0xc34   :  { %1508 = vmatpush.msra.mxu2 %v3066_v14 }
 0xc35   :  { %1530 = vmatpush.msra.mxu3 %v3082_v56 }
 0xc36   :  { %1509 = vmatpush.msra.mxu2 %v3072_v12 }
 0xc37   :  { %1531 = vmatpush.msra.mxu3 %v3094_v63 }
 0xc38   :  { %1510 = vmatpush.msra.mxu2 %v3080_v53 }
 0xc39   :  { %1532 = vmatpush.msra.mxu3 %v3100_v62 }
 0xc3a   :  { %1511 = vmatpush.msra.mxu2 %v3092_v55 }
 0xc3b   :  { %1533 = vmatpush.msra.mxu3 %v3106_v24 }
 0xc3c   :  { %1512 = vmatpush.msra.mxu2 %v3098_v3 }
 0xc3e   :  { %1513 = vmatpush.msra.mxu2 %v3104_v15 }
 0xc98   :  { %v1120_v38 = vpop.permute.xlu1 %1119 }
 0xc99   :  { %v1122_v6 = vadd.f32 %v1120_v38, %v1116_v37 }
 0xc9b   :  { %2397 = vtanh.f32 %v1122_v6 }
 0xca1   :  { %v2398_v30 = vpop.eup %2397 }
 0xca2   :  { %v1124_v39 = vmul.f32 %v2398_v30, %v1115_v52 }
 0xca4   :  { %1126 = vrot.lane.b32.xlu2 %v1124_v39, %s2536_s0 }
 0xcfe   :  { %v1127_v44 = vpop.permute.xlu2 %1126 }
 0xcff   :  { %1129 = vst.msk [vmem:[#allocation2 + $0x38] sm:$0xff] %vm364_vm4, %v1127_v44 }
 0xd00   :  { %1130 = vst.msk [vmem:[#allocation2] sm:$0xff] %vm366_vm6, %v1127_v44 }
 0xd06   :  { %v1172_v8 = vld [vmem:[#allocation2 + $0x38] sm:$0xff] }
 0xd07   :  { %v1165_v23 = vld [vmem:[#allocation2] sm:$0xff] }
 0xd08   :  { %2246 = vmatmul.msk.f32.vlgmr.msrb.gmra.mxu0 %vm257_vm5, %v1165_v23  ;;  %2254 = vmatmul.msk.f32.vlgmr.msrb.gmra.mxu1 %vm257_vm5, %v1165_v23 }
 0xd09   :  { %1930 = vmatpush.msrb.mxu0 %v3052_v45  ;;  %1950 = vmatpush.msrb.mxu1 %v3054_v46 }
 0xd0b   :  { %1931 = vmatpush.msrb.mxu0 %v3060_v20  ;;  %1951 = vmatpush.msrb.mxu1 %v3062_v21 }
 0xd0d   :  { %1932 = vmatpush.msrb.mxu0 %v3066_v14  ;;  %1952 = vmatpush.msrb.mxu1 %v3068_v61 }
 0xd0f   :  { %1933 = vmatpush.msrb.mxu0 %v3072_v12  ;;  %1953 = vmatpush.msrb.mxu1 %v3074_v26 }
 0xd10   :  { %2247 = vmatmul.msk.f32.gmra.mxu0 %vm257_vm5, %v1166_v47  ;;  %2255 = vmatmul.msk.f32.gmra.mxu1 %vm257_vm5, %v1166_v47 }
 0xd11   :  { %1934 = vmatpush.msrb.mxu0 %v3080_v53  ;;  %1954 = vmatpush.msrb.mxu1 %v3082_v56 }
 0xd13   :  { %1935 = vmatpush.msrb.mxu0 %v3092_v55  ;;  %1955 = vmatpush.msrb.mxu1 %v3094_v63 }
 0xd15   :  { %1936 = vmatpush.msrb.mxu0 %v3098_v3  ;;  %1956 = vmatpush.msrb.mxu1 %v3100_v62 }
 0xd17   :  { %1937 = vmatpush.msrb.mxu0 %v3104_v15  ;;  %1957 = vmatpush.msrb.mxu1 %v3106_v24 }
 0xd18   :  { %2248 = vmatmul.msk.f32.gmra.mxu0 %vm257_vm5, %v1167_v48  ;;  %2256 = vmatmul.msk.f32.gmra.mxu1 %vm257_vm5, %v1167_v48 }
 0xd20   :  { %2249 = vmatmul.msk.f32.gmra.mxu0 %vm257_vm5, %v1168_v4  ;;  %2257 = vmatmul.msk.f32.gmra.mxu1 %vm257_vm5, %v1168_v4 }
 0xd28   :  { %2250 = vmatmul.msk.f32.gmra.mxu0 %vm257_vm5, %v1169_v25  ;;  %2258 = vmatmul.msk.f32.gmra.mxu1 %vm257_vm5, %v1169_v25 }
 0xd30   :  { %2251 = vmatmul.msk.f32.gmra.mxu0 %vm257_vm5, %v1170_v49  ;;  %2259 = vmatmul.msk.f32.gmra.mxu1 %vm257_vm5, %v1170_v49 }
 0xd38   :  { %2252 = vmatmul.msk.f32.gmra.mxu0 %vm257_vm5, %v1171_v57  ;;  %2260 = vmatmul.msk.f32.gmra.mxu1 %vm257_vm5, %v1171_v57 }
 0xd40   :  { %2253 = vmatmul.msk.f32.gmra.mxu0 %vm257_vm5, %v1172_v8  ;;  %2261 = vmatmul.msk.f32.gmra.mxu1 %vm257_vm5, %v1172_v8 }
 0xd85   :  { %v1219_v58 = vpop.f32.mrf.mxu0  ;;  %v1260_v60 = vpop.f32.mrf.mxu1 }
 0xd86   :  { %v3252_v57 = vadd.f32 %v1219_v58, %v1174_v54  ;;  %v3254_v8 = vadd.f32 %v1260_v60, %v1175_v7 }
 0xd8d   :  { %v1222_v59 = vpop.f32.mrf.mxu0  ;;  %v1263_v1 = vpop.f32.mrf.mxu1 }
 0xd8e   :  { %v3180_v51 = vadd.f32 %v1222_v59, %v1174_v54  ;;  %v3182_v50 = vadd.f32 %v1263_v1, %v1175_v7  ;;  %v1303_v1 = vpop.f32.mrf.mxu2 }
 0xd95   :  { %v1225_v31 = vpop.f32.mrf.mxu0  ;;  %v1266_v28 = vpop.f32.mrf.mxu1 }
 0xd96   :  { %v3184_v2 = vadd.f32 %v1225_v31, %v1174_v54  ;;  %v3186_v52 = vadd.f32 %v1266_v28, %v1175_v7  ;;  %v1323_v31 = vpop.f32.mrf.mxu3 }
 0xd9d   :  { %v1228_v29 = vpop.f32.mrf.mxu0  ;;  %v1269_v32 = vpop.f32.mrf.mxu1 }
 0xd9e   :  { %v3188_v36 = vadd.f32 %v1228_v29, %v1174_v54  ;;  %v3190_v33 = vadd.f32 %v1269_v32, %v1175_v7 }
 0xda5   :  { %v1231_v34 = vpop.f32.mrf.mxu0  ;;  %v1272_v35 = vpop.f32.mrf.mxu1 }
 0xda6   :  { %v3192_v5 = vadd.f32 %v1231_v34, %v1174_v54  ;;  %v3194_v27 = vadd.f32 %v1272_v35, %v1175_v7 }
 0xda8   :  { %v1597_v41 = vsel %vm2745_vm9, %v3188_v36, %v3192_v5  ;;  %v1598_v37 = vsel %vm2749_vm10, %v3190_v33, %v3194_v27  ;;  %v1703_v38 = vsel %vm2745_vm9, %v3192_v5, %v3188_v36  ;;  %v1704_v6 = vsel %vm2749_vm10, %v3194_v27, %v3190_v33 }
 0xdad   :  { %v1234_v30 = vpop.f32.mrf.mxu0  ;;  %v1275_v39 = vpop.f32.mrf.mxu1 }
 0xdae   :  { %v3212_v40 = vadd.f32 %v1234_v30, %v1174_v54  ;;  %v3214_v42 = vadd.f32 %v1275_v39, %v1175_v7 }
 0xdb0   :  { %v1491_v10 = vsel %vm2745_vm9, %v3184_v2, %v3212_v40  ;;  %v1492_v18 = vsel %vm2749_vm10, %v3186_v52, %v3214_v42  ;;  %v1809_v22 = vsel %vm2745_vm9, %v3212_v40, %v3184_v2 }
 0xdb5   :  { %v1237_v11 = vpop.f32.mrf.mxu0  ;;  %v1278_v19 = vpop.f32.mrf.mxu1 }
 0xdb6   :  { %v3232_v44 = vadd.f32 %v1237_v11, %v1174_v54  ;;  %v3234_v23 = vadd.f32 %v1278_v19, %v1175_v7 }
 0xdb8   :  { %v1385_v47 = vsel %vm2745_vm9, %v3180_v51, %v3232_v44  ;;  %v1386_v48 = vsel %vm2749_vm10, %v3182_v50, %v3234_v23 }
 0xdbd   :  { %v1240_v25 = vpop.f32.mrf.mxu0  ;;  %v1281_v49 = vpop.f32.mrf.mxu1 }
 0xdbe   :  { %v3256_v13 = vadd.f32 %v1240_v25, %v1174_v54  ;;  %v3258_v59 = vadd.f32 %v1281_v49, %v1175_v7 }
 0xdc0   :  { %v1284_v28 = vsel %vm2745_vm9, %v3252_v57, %v3256_v13  ;;  %v1285_v29 = vsel %vm2749_vm10, %v3254_v8, %v3258_v59 }
 0xdc1   :  { %v1326_v54 = vadd.f32 %v1303_v1, %v1284_v28  ;;  %v1327_v7 = vadd.f32 %v1323_v31, %v1285_v29 }
 0xdc3   :  { %v2262_v32 = vmul.f32 -1.442695, %v1326_v54  ;;  %v1329_v34 = vmul.f32 2.0, %v1327_v7 }
 0xdc5   :  { %2399 = vpow2.f32 %v2262_v32  ;;  %v1331_v35 = vsel %vm34_vm11, %v1329_v34, %v1327_v7 }
 0xdc6   :  { %v2263_v30 = vmul.f32 -1.442695, %v1331_v35 }
 0xdc8   :  { %2401 = vpow2.f32 %v2263_v30 }
 0xdcb   :  { %v2400_v39 = vpop.eup %2399 }
 0xdcc   :  { %v1338_v11 = vadd.f32 1.0, %v2400_v39 }
 0xdce   :  { %v2402_v19 = vpop.eup %2401  ;;  %2403 = vrcp.f32 %v1338_v11  ;;  %v1351_v30 = vand.u32 2147483648, %v1338_v11  ;;  %vm1345_vm3 = vweird.f32 %v1338_v11 }
 0xdcf   :  { %v1339_v25 = vadd.f32 1.0, %v2402_v19  ;;  %v1349_v19 = vand.u32 2147483647, %v1338_v11 }
 0xdd1   :  { %2405 = vrcp.f32 %v1339_v25  ;;  %v1366_v29 = vand.u32 2147483648, %v1339_v25  ;;  %v1364_v32 = vand.u32 2147483647, %v1339_v25  ;;  %vm1360_vm6 = vweird.f32 %v1339_v25 }
 0xdd2   :  { %vm1350_vm8 = vcmp.eq.f32.partialorder %v1349_v19, 8.507059e+37 }
 0xdd3   :  { %v1367_v35 = vor.u32 1.1754944e-38, %v1366_v29  ;;  %vm1365_vm2 = vcmp.eq.f32.partialorder %v1364_v32, 8.507059e+37 }
 0xdd4   :  { %v2404_v49 = vpop.eup %2403 }
 0xdd5   :  { %v1341_v58 = vmul.f32 %v2404_v49, %v1338_v11  ;;  %vm1346_vm0 = vweird.f32 %v2404_v49 }
 0xdd6   :  { %vm1347_vm7 = vmor %vm1345_vm3, %vm1346_vm0 }
 0xdd7   :  { %v2406_v4 = vpop.eup %2405  ;;  %v1342_v60 = vsub.f32 1.0, %v1341_v58 }
 0xdd8   :  { %v1356_v1 = vmul.f32 %v2406_v4, %v1339_v25  ;;  %vm1361_vm4 = vweird.f32 %v2406_v4 }
 0xdd9   :  { %v1343_v28 = vmul.f32 %v2404_v49, %v1342_v60  ;;  %vm1362_vm1 = vmor %vm1360_vm6, %vm1361_vm4  ;;  %v1352_v60 = vor.u32 1.1754944e-38, %v1351_v30 }
 0xdda   :  { %v1357_v31 = vsub.f32 1.0, %v1356_v1 }
 0xddb   :  { %v1344_v34 = vadd.f32 %v2404_v49, %v1343_v28 }
 0xddc   :  { %v1358_v54 = vmul.f32 %v2406_v4, %v1357_v31 }
 0xddd   :  { %v1348_v1 = vsel %vm1347_vm7, %v2404_v49, %v1344_v34 }
 0xdde   :  { %v1359_v7 = vadd.f32 %v2406_v4, %v1358_v54  ;;  %v1353_v31 = vsel %vm1350_vm8, %v1352_v60, %v1348_v1 }
 0xddf   :  { %v1376_v29 = vmul.f32 0.0, %v1353_v31 }
 0xde0   :  { %v1363_v39 = vsel %vm1362_vm1, %v2406_v4, %v1359_v7 }
 0xde1   :  { %v1368_v0 = vsel %vm1365_vm2, %v1367_v35, %v1363_v39 }
 0xde2   :  { %v1371_v58 = vmul.f32 2.0, %v1368_v0 }
 0xde4   :  { %v2265_v43 = vadd.f32 -1.0, %v1371_v58 }
 0xde6   :  { %v1375_v25 = vsel %vm34_vm11, %v2265_v43, %v1368_v0 }
 0xde7   :  { %v1377_v28 = vmul.f32 %v1375_v25, %v1353_v31 }
 0xde9   :  { %1379 = vrot.lane.b32.xlu0 %v1377_v28, %s2536_s0 }
 0xe5b   :  { %v1380_v54 = vpop.permute.xlu0 %1379 }
 0xe5c   :  { %v3281_v4 = vadd.f32 %v1380_v54, %v1376_v29 }
 0xe5e   :  { %2407 = vtanh.f32 %v3281_v4 }
 0xe64   :  { %v2408_v11 = vpop.eup %2407 }
 0xe65   :  { %v1384_v32 = vmul.f32 %v2408_v11, %v1375_v25 }
 0xe67   :  { %1388 = vrot.lane.b32.xlu1 %v1384_v32, %s2536_s0 }
 0xed9   :  { %v1389_v49 = vpop.permute.xlu1 %1388 }
 0xeda   :  { %2266 = vmatmul.msk.f32.vlgmr.msrb.gmra.mxu2 %vm257_vm5, %v1389_v49  ;;  %2267 = vmatmul.msk.f32.vlgmr.msrb.gmra.mxu3 %vm257_vm5, %v1389_v49 }
 0xedb   :  { %1612 = vmatpush.msrb.mxu2 %v3052_v45  ;;  %1632 = vmatpush.msrb.mxu3 %v3054_v46 }
 0xedd   :  { %1613 = vmatpush.msrb.mxu2 %v3060_v20  ;;  %1633 = vmatpush.msrb.mxu3 %v3062_v21 }
 0xedf   :  { %1614 = vmatpush.msrb.mxu2 %v3066_v14  ;;  %1634 = vmatpush.msrb.mxu3 %v3068_v61 }
 0xee1   :  { %1615 = vmatpush.msrb.mxu2 %v3072_v12  ;;  %1635 = vmatpush.msrb.mxu3 %v3074_v26 }
 0xee3   :  { %1616 = vmatpush.msrb.mxu2 %v3080_v53  ;;  %1636 = vmatpush.msrb.mxu3 %v3082_v56 }
 0xee5   :  { %1617 = vmatpush.msrb.mxu2 %v3092_v55  ;;  %1637 = vmatpush.msrb.mxu3 %v3094_v63 }
 0xee7   :  { %1618 = vmatpush.msrb.mxu2 %v3098_v3  ;;  %1638 = vmatpush.msrb.mxu3 %v3100_v62 }
 0xee9   :  { %1619 = vmatpush.msrb.mxu2 %v3104_v15  ;;  %1639 = vmatpush.msrb.mxu3 %v3106_v24 }
 0xf5d   :  { %v1409_v43 = vpop.f32.mrf.mxu2  ;;  %v1429_v0 = vpop.f32.mrf.mxu3 }
 0xf5e   :  { %v1432_v7 = vadd.f32 %v1409_v43, %v1385_v47  ;;  %v1433_v34 = vadd.f32 %v1429_v0, %v1386_v48 }
 0xf60   :  { %v2268_v35 = vmul.f32 -1.442695, %v1432_v7  ;;  %v1435_v30 = vmul.f32 2.0, %v1433_v34 }
 0xf62   :  { %2409 = vpow2.f32 %v2268_v35  ;;  %v1437_v39 = vsel %vm34_vm11, %v1435_v30, %v1433_v34 }
 0xf63   :  { %v2269_v19 = vmul.f32 -1.442695, %v1437_v39 }
 0xf65   :  { %2411 = vpow2.f32 %v2269_v19 }
 0xf68   :  { %v2410_v58 = vpop.eup %2409 }
 0xf69   :  { %v1444_v1 = vadd.f32 1.0, %v2410_v58 }
 0xf6b   :  { %v2412_v60 = vpop.eup %2411  ;;  %2413 = vrcp.f32 %v1444_v1  ;;  %v1457_v35 = vand.u32 2147483648, %v1444_v1  ;;  %vm1451_vm6 = vweird.f32 %v1444_v1  ;;  %v1455_v39 = vand.u32 2147483647, %v1444_v1 }
 0xf6c   :  { %v1445_v31 = vadd.f32 1.0, %v2412_v60 }
 0xf6d   :  { %vm1456_vm1 = vcmp.eq.f32.partialorder %v1455_v39, 8.507059e+37 }
 0xf6e   :  { %2415 = vrcp.f32 %v1445_v31  ;;  %v1472_v32 = vand.u32 2147483648, %v1445_v31  ;;  %v1470_v43 = vand.u32 2147483647, %v1445_v31  ;;  %vm1466_vm13 = vweird.f32 %v1445_v31 }
 0xf70   :  { %v1473_v34 = vor.u32 1.1754944e-38, %v1472_v32  ;;  %vm1471_vm4 = vcmp.eq.f32.partialorder %v1470_v43, 8.507059e+37 }
 0xf71   :  { %v2414_v47 = vpop.eup %2413 }
 0xf72   :  { %v1447_v25 = vmul.f32 %v2414_v47, %v1444_v1  ;;  %vm1452_vm14 = vweird.f32 %v2414_v47 }
 0xf73   :  { %vm1453_vm0 = vmor %vm1451_vm6, %vm1452_vm14 }
 0xf74   :  { %v2416_v28 = vpop.eup %2415  ;;  %v1448_v29 = vsub.f32 1.0, %v1447_v25  ;;  %v1458_v25 = vor.u32 1.1754944e-38, %v1457_v35 }
 0xf75   :  { %v1462_v54 = vmul.f32 %v2416_v28, %v1445_v31  ;;  %vm1467_vm12 = vweird.f32 %v2416_v28 }
 0xf76   :  { %v1449_v11 = vmul.f32 %v2414_v47, %v1448_v29  ;;  %vm1468_vm15 = vmor %vm1466_vm13, %vm1467_vm12 }
 0xf77   :  { %v1463_v48 = vsub.f32 1.0, %v1462_v54 }
 0xf78   :  { %v1450_v7 = vadd.f32 %v2414_v47, %v1449_v11 }
 0xf79   :  { %v1464_v49 = vmul.f32 %v2416_v28, %v1463_v48 }
 0xf7a   :  { %v1454_v60 = vsel %vm1453_vm0, %v2414_v47, %v1450_v7 }
 0xf7b   :  { %v1465_v0 = vadd.f32 %v2416_v28, %v1464_v49  ;;  %v1459_v54 = vsel %vm1456_vm1, %v1458_v25, %v1454_v60 }
 0xf7c   :  { %v1482_v11 = vmul.f32 %v1459_v54, %v3281_v4 }
 0xf7d   :  { %v1469_v30 = vsel %vm1468_vm15, %v2416_v28, %v1465_v0 }
 0xf7e   :  { %v1474_v19 = vsel %vm1471_vm4, %v1473_v34, %v1469_v30 }
 0xf7f   :  { %v1477_v58 = vmul.f32 2.0, %v1474_v19 }
 0xf81   :  { %v2271_v29 = vadd.f32 -1.0, %v1477_v58 }
 0xf83   :  { %v1481_v31 = vsel %vm34_vm11, %v2271_v29, %v1474_v19 }
 0xf84   :  { %v1483_v48 = vmul.f32 %v1481_v31, %v1459_v54 }
 0xf86   :  { %1485 = vrot.lane.b32.xlu2 %v1483_v48, %s2536_s0 }
 0xfe0   :  { %v1486_v28 = vpop.permute.xlu2 %1485 }
 0xfe1   :  { %v3319_v32 = vadd.f32 %v1486_v28, %v1482_v11 }
 0xfe3   :  { %2417 = vtanh.f32 %v3319_v32 }
 0xfe9   :  { %v2418_v1 = vpop.eup %2417 }
 0xfea   :  { %v1490_v49 = vmul.f32 %v2418_v1, %v1481_v31 }
 0xfec   :  { %1494 = vrot.lane.b32.xlu0 %v1490_v49, %s2536_s0 }
0x105e   :  { %v1495_v47 = vpop.permute.xlu0 %1494 }
0x105f   :  { %2272 = vmatmul.msk.f32.vlgmr.msra.gmra.mxu2 %vm257_vm5, %v1495_v47  ;;  %2273 = vmatmul.msk.f32.vlgmr.msra.gmra.mxu3 %vm257_vm5, %v1495_v47 }
0x1060   :  { %1824 = vmatpush.msra.mxu2 %v3052_v45  ;;  %1844 = vmatpush.msra.mxu3 %v3054_v46 }
0x1062   :  { %1825 = vmatpush.msra.mxu2 %v3060_v20  ;;  %1845 = vmatpush.msra.mxu3 %v3062_v21 }
0x1064   :  { %1826 = vmatpush.msra.mxu2 %v3066_v14  ;;  %1846 = vmatpush.msra.mxu3 %v3068_v61 }
0x1066   :  { %1827 = vmatpush.msra.mxu2 %v3072_v12  ;;  %1847 = vmatpush.msra.mxu3 %v3074_v26 }
0x1068   :  { %1828 = vmatpush.msra.mxu2 %v3080_v53  ;;  %1848 = vmatpush.msra.mxu3 %v3082_v56 }
0x106a   :  { %1829 = vmatpush.msra.mxu2 %v3092_v55  ;;  %1849 = vmatpush.msra.mxu3 %v3094_v63 }
0x106c   :  { %1830 = vmatpush.msra.mxu2 %v3098_v3  ;;  %1850 = vmatpush.msra.mxu3 %v3100_v62 }
0x106e   :  { %1831 = vmatpush.msra.mxu2 %v3104_v15  ;;  %1851 = vmatpush.msra.mxu3 %v3106_v24 }
0x10e2   :  { %v1515_v4 = vpop.f32.mrf.mxu2  ;;  %v1535_v43 = vpop.f32.mrf.mxu3 }
0x10e3   :  { %v1538_v0 = vadd.f32 %v1515_v4, %v1491_v10  ;;  %v1539_v7 = vadd.f32 %v1535_v43, %v1492_v18 }
0x10e5   :  { %v2274_v34 = vmul.f32 -1.442695, %v1538_v0  ;;  %v1541_v35 = vmul.f32 2.0, %v1539_v7 }
0x10e7   :  { %2419 = vpow2.f32 %v2274_v34  ;;  %v1543_v30 = vsel %vm34_vm11, %v1541_v35, %v1539_v7 }
0x10e8   :  { %v2275_v39 = vmul.f32 -1.442695, %v1543_v30 }
0x10ea   :  { %2421 = vpow2.f32 %v2275_v39 }
0x10ed   :  { %v2420_v19 = vpop.eup %2419 }
0x10ee   :  { %v1550_v58 = vadd.f32 1.0, %v2420_v19 }
0x10f0   :  { %v2422_v60 = vpop.eup %2421  ;;  %2423 = vrcp.f32 %v1550_v58  ;;  %v1563_v0 = vand.u32 2147483648, %v1550_v58  ;;  %vm1557_vm13 = vweird.f32 %v1550_v58  ;;  %v1561_v34 = vand.u32 2147483647, %v1550_v58 }
0x10f1   :  { %v1551_v25 = vadd.f32 1.0, %v2422_v60 }
0x10f2   :  { %v1564_v19 = vor.u32 1.1754944e-38, %v1563_v0  ;;  %vm1562_vm15 = vcmp.eq.f32.partialorder %v1561_v34, 8.507059e+37 }
0x10f3   :  { %2425 = vrcp.f32 %v1551_v25  ;;  %v1578_v28 = vand.u32 2147483648, %v1551_v25  ;;  %v1576_v49 = vand.u32 2147483647, %v1551_v25  ;;  %vm1572_vm3 = vweird.f32 %v1551_v25 }
0x10f5   :  { %v1579_v43 = vor.u32 1.1754944e-38, %v1578_v28  ;;  %vm1577_vm12 = vcmp.eq.f32.partialorder %v1576_v49, 8.507059e+37 }
0x10f6   :  { %v2424_v10 = vpop.eup %2423 }
0x10f7   :  { %v1553_v29 = vmul.f32 %v2424_v10, %v1550_v58  ;;  %vm1558_vm7 = vweird.f32 %v2424_v10 }
0x10f8   :  { %vm1559_vm14 = vmor %vm1557_vm13, %vm1558_vm7 }
0x10f9   :  { %v2426_v54 = vpop.eup %2425  ;;  %v1554_v31 = vsub.f32 1.0, %v1553_v29 }
0x10fa   :  { %v1568_v48 = vmul.f32 %v2426_v54, %v1551_v25  ;;  %vm1573_vm2 = vweird.f32 %v2426_v54 }
0x10fb   :  { %v1555_v11 = vmul.f32 %v2424_v10, %v1554_v31  ;;  %vm1574_vm8 = vmor %vm1572_vm3, %vm1573_vm2 }
0x10fc   :  { %v1569_v18 = vsub.f32 1.0, %v1568_v48 }
0x10fd   :  { %v1556_v4 = vadd.f32 %v2424_v10, %v1555_v11 }
0x10fe   :  { %v1570_v1 = vmul.f32 %v2426_v54, %v1569_v18 }
0x10ff   :  { %v1560_v39 = vsel %vm1559_vm14, %v2424_v10, %v1556_v4 }
0x1100   :  { %v1571_v47 = vadd.f32 %v2426_v54, %v1570_v1  ;;  %v1565_v29 = vsel %vm1562_vm15, %v1564_v19, %v1560_v39 }
0x1101   :  { %v1588_v48 = vmul.f32 %v1565_v29, %v3319_v32 }
0x1102   :  { %v1575_v7 = vsel %vm1574_vm8, %v2426_v54, %v1571_v47 }
0x1103   :  { %v1580_v35 = vsel %vm1577_vm12, %v1579_v43, %v1575_v7 }
0x1104   :  { %v1583_v30 = vmul.f32 2.0, %v1580_v35 }
0x1106   :  { %v2277_v60 = vadd.f32 -1.0, %v1583_v30 }
0x1108   :  { %v1587_v25 = vsel %vm34_vm11, %v2277_v60, %v1580_v35 }
0x1109   :  { %v1589_v31 = vmul.f32 %v1587_v25, %v1565_v29 }
0x110b   :  { %1591 = vrot.lane.b32.xlu1 %v1589_v31, %s2536_s0 }
0x117d   :  { %v1592_v54 = vpop.permute.xlu1 %1591 }
0x117e   :  { %v3357_v18 = vadd.f32 %v1592_v54, %v1588_v48 }
0x1180   :  { %2427 = vtanh.f32 %v3357_v18 }
0x1186   :  { %v2428_v58 = vpop.eup %2427 }
0x1187   :  { %v1596_v11 = vmul.f32 %v2428_v58, %v1587_v25 }
0x1189   :  { %1600 = vrot.lane.b32.xlu2 %v1596_v11, %s2536_s0 }
0x11e3   :  { %v1601_v10 = vpop.permute.xlu2 %1600 }
0x11e4   :  { %2278 = vmatmul.msk.f32.vlgmr.msrb.gmra.mxu2 %vm257_vm5, %v1601_v10  ;;  %2279 = vmatmul.msk.f32.vlgmr.msrb.gmra.mxu3 %vm257_vm5, %v1601_v10 }
0x11e5   :  { %2036 = vmatpush.msrb.mxu2 %v3052_v45  ;;  %2056 = vmatpush.msrb.mxu3 %v3054_v46 }
0x11e7   :  { %2037 = vmatpush.msrb.mxu2 %v3060_v20  ;;  %2057 = vmatpush.msrb.mxu3 %v3062_v21 }
0x11e9   :  { %2038 = vmatpush.msrb.mxu2 %v3066_v14  ;;  %2058 = vmatpush.msrb.mxu3 %v3068_v61 }
0x11eb   :  { %2039 = vmatpush.msrb.mxu2 %v3072_v12  ;;  %2059 = vmatpush.msrb.mxu3 %v3074_v26 }
0x11ed   :  { %2040 = vmatpush.msrb.mxu2 %v3080_v53  ;;  %2060 = vmatpush.msrb.mxu3 %v3082_v56 }
0x11ef   :  { %2041 = vmatpush.msrb.mxu2 %v3092_v55  ;;  %2061 = vmatpush.msrb.mxu3 %v3094_v63 }
0x11f1   :  { %2042 = vmatpush.msrb.mxu2 %v3098_v3  ;;  %2062 = vmatpush.msrb.mxu3 %v3100_v62 }
0x11f3   :  { %2043 = vmatpush.msrb.mxu2 %v3104_v15  ;;  %2063 = vmatpush.msrb.mxu3 %v3106_v24 }
0x1267   :  { %v1621_v45 = vpop.f32.mrf.mxu2  ;;  %v1641_v46 = vpop.f32.mrf.mxu3 }
0x1268   :  { %v1644_v20 = vadd.f32 %v1621_v45, %v1597_v41  ;;  %v1645_v21 = vadd.f32 %v1641_v46, %v1598_v37 }
0x126a   :  { %v2280_v14 = vmul.f32 -1.442695, %v1644_v20  ;;  %v1647_v61 = vmul.f32 2.0, %v1645_v21 }
0x126c   :  { %2429 = vpow2.f32 %v2280_v14  ;;  %v1649_v12 = vsel %vm34_vm11, %v1647_v61, %v1645_v21 }
0x126d   :  { %v2281_v26 = vmul.f32 -1.442695, %v1649_v12 }
0x126f   :  { %2431 = vpow2.f32 %v2281_v26 }
0x1272   :  { %v2430_v53 = vpop.eup %2429 }
0x1273   :  { %v1656_v56 = vadd.f32 1.0, %v2430_v53 }
0x1275   :  { %v2432_v55 = vpop.eup %2431  ;;  %2433 = vrcp.f32 %v1656_v56  ;;  %v1669_v0 = vand.u32 2147483648, %v1656_v56  ;;  %vm1663_vm3 = vweird.f32 %v1656_v56  ;;  %v1667_v34 = vand.u32 2147483647, %v1656_v56 }
0x1276   :  { %v1657_v63 = vadd.f32 1.0, %v2432_v55 }
0x1277   :  { %v1670_v19 = vor.u32 1.1754944e-38, %v1669_v0  ;;  %vm1668_vm8 = vcmp.eq.f32.partialorder %v1667_v34, 8.507059e+37 }
0x1278   :  { %2435 = vrcp.f32 %v1657_v63  ;;  %v1684_v28 = vand.u32 2147483648, %v1657_v63  ;;  %v1682_v49 = vand.u32 2147483647, %v1657_v63  ;;  %vm1678_vm6 = vweird.f32 %v1657_v63 }
0x127a   :  { %v1685_v43 = vor.u32 1.1754944e-38, %v1684_v28  ;;  %vm1683_vm2 = vcmp.eq.f32.partialorder %v1682_v49, 8.507059e+37 }
0x127b   :  { %v2434_v3 = vpop.eup %2433 }
0x127c   :  { %v1659_v62 = vmul.f32 %v2434_v3, %v1656_v56  ;;  %vm1664_vm0 = vweird.f32 %v2434_v3 }
0x127d   :  { %vm1665_vm7 = vmor %vm1663_vm3, %vm1664_vm0 }
0x127e   :  { %v2436_v15 = vpop.eup %2435  ;;  %v1660_v24 = vsub.f32 1.0, %v1659_v62 }
0x127f   :  { %v1674_v41 = vmul.f32 %v2436_v15, %v1657_v63  ;;  %vm1679_vm4 = vweird.f32 %v2436_v15 }
0x1280   :  { %v1661_v32 = vmul.f32 %v2434_v3, %v1660_v24  ;;  %vm1680_vm1 = vmor %vm1678_vm6, %vm1679_vm4 }
0x1281   :  { %v1675_v37 = vsub.f32 1.0, %v1674_v41 }
0x1282   :  { %v1662_v4 = vadd.f32 %v2434_v3, %v1661_v32 }
0x1283   :  { %v1676_v1 = vmul.f32 %v2436_v15, %v1675_v37 }
0x1284   :  { %v1666_v39 = vsel %vm1665_vm7, %v2434_v3, %v1662_v4 }
0x1285   :  { %v1677_v47 = vadd.f32 %v2436_v15, %v1676_v1  ;;  %v1671_v29 = vsel %vm1668_vm8, %v1670_v19, %v1666_v39 }
0x1286   :  { %v1694_v48 = vmul.f32 %v1671_v29, %v3357_v18 }
0x1287   :  { %v1681_v7 = vsel %vm1680_vm1, %v2436_v15, %v1677_v47 }
0x1288   :  { %v1686_v35 = vsel %vm1683_vm2, %v1685_v43, %v1681_v7 }
0x1289   :  { %v1689_v30 = vmul.f32 2.0, %v1686_v35 }
0x128b   :  { %v2283_v60 = vadd.f32 -1.0, %v1689_v30 }
0x128d   :  { %v1693_v25 = vsel %vm34_vm11, %v2283_v60, %v1686_v35 }
0x128e   :  { %v1695_v31 = vmul.f32 %v1693_v25, %v1671_v29 }
0x1290   :  { %1697 = vrot.lane.b32.xlu0 %v1695_v31, %s2536_s0 }
0x1302   :  { %v1698_v54 = vpop.permute.xlu0 %1697 }
0x1303   :  { %v1700_v58 = vadd.f32 %v1698_v54, %v1694_v48 }
0x1305   :  { %2437 = vtanh.f32 %v1700_v58 }
0x130b   :  { %v2438_v11 = vpop.eup %2437 }
0x130c   :  { %v1702_v10 = vmul.f32 %v2438_v11, %v1693_v25  ;;  %v3491_v11 = vsel %vm2749_vm10, %v3214_v42, %v3186_v52 }
0x130e   :  { %1706 = vrot.lane.b32.xlu1 %v1702_v10, %s2536_s0 }
0x1380   :  { %v1707_v45 = vpop.permute.xlu1 %1706 }
0x1381   :  { %2284 = vmatmul.msk.f32.vlgmr.msra.gmra.mxu0 %vm257_vm5, %v1707_v45  ;;  %2285 = vmatmul.msk.f32.vlgmr.msra.gmra.mxu1 %vm257_vm5, %v1707_v45 }
0x13fe   :  { %v1727_v46 = vpop.f32.mrf.mxu0  ;;  %v1747_v20 = vpop.f32.mrf.mxu1 }
0x13ff   :  { %v1750_v18 = vadd.f32 %v1727_v46, %v1703_v38  ;;  %v1751_v21 = vadd.f32 %v1747_v20, %v1704_v6 }
0x1401   :  { %v2286_v14 = vmul.f32 -1.442695, %v1750_v18  ;;  %v1753_v61 = vmul.f32 2.0, %v1751_v21 }
0x1403   :  { %2439 = vpow2.f32 %v2286_v14  ;;  %v1755_v12 = vsel %vm34_vm11, %v1753_v61, %v1751_v21 }
0x1404   :  { %v2287_v26 = vmul.f32 -1.442695, %v1755_v12 }
0x1406   :  { %2441 = vpow2.f32 %v2287_v26 }
0x1409   :  { %v2440_v53 = vpop.eup %2439 }
0x140a   :  { %v1762_v56 = vadd.f32 1.0, %v2440_v53 }
0x140c   :  { %v2442_v55 = vpop.eup %2441  ;;  %2443 = vrcp.f32 %v1762_v56  ;;  %v1775_v28 = vand.u32 2147483648, %v1762_v56  ;;  %vm1769_vm6 = vweird.f32 %v1762_v56  ;;  %v1773_v49 = vand.u32 2147483647, %v1762_v56 }
0x140d   :  { %v1763_v36 = vadd.f32 1.0, %v2442_v55 }
0x140e   :  { %v1776_v0 = vor.u32 1.1754944e-38, %v1775_v28  ;;  %vm1774_vm1 = vcmp.eq.f32.partialorder %v1773_v49, 8.507059e+37 }
0x140f   :  { %2445 = vrcp.f32 %v1763_v36  ;;  %v1790_v62 = vand.u32 2147483648, %v1763_v36  ;;  %v1788_v24 = vand.u32 2147483647, %v1763_v36  ;;  %vm1784_vm13 = vweird.f32 %v1763_v36 }
0x1411   :  { %v1791_v32 = vor.u32 1.1754944e-38, %v1790_v62  ;;  %vm1789_vm4 = vcmp.eq.f32.partialorder %v1788_v24, 8.507059e+37 }
0x1412   :  { %v2444_v5 = vpop.eup %2443 }
0x1413   :  { %v1765_v38 = vmul.f32 %v2444_v5, %v1762_v56  ;;  %vm1770_vm14 = vweird.f32 %v2444_v5 }
0x1414   :  { %vm1771_vm0 = vmor %vm1769_vm6, %vm1770_vm14 }
0x1415   :  { %v2446_v63 = vpop.eup %2445  ;;  %v1766_v3 = vsub.f32 1.0, %v1765_v38 }
0x1416   :  { %v1780_v33 = vmul.f32 %v2446_v63, %v1763_v36  ;;  %vm1785_vm12 = vweird.f32 %v2446_v63 }
0x1417   :  { %v1767_v6 = vmul.f32 %v2444_v5, %v1766_v3  ;;  %vm1786_vm15 = vmor %vm1784_vm13, %vm1785_vm12 }
0x1418   :  { %v1781_v27 = vsub.f32 1.0, %v1780_v33 }
0x1419   :  { %v1768_v37 = vadd.f32 %v2444_v5, %v1767_v6 }
0x141a   :  { %v1782_v15 = vmul.f32 %v2446_v63, %v1781_v27 }
0x141b   :  { %v1772_v43 = vsel %vm1771_vm0, %v2444_v5, %v1768_v37 }
0x141c   :  { %v1783_v41 = vadd.f32 %v2446_v63, %v1782_v15  ;;  %v1777_v34 = vsel %vm1774_vm1, %v1776_v0, %v1772_v43 }
0x141d   :  { %v1800_v39 = vmul.f32 %v1777_v34, %v1700_v58 }
0x141e   :  { %v1787_v1 = vsel %vm1786_vm15, %v2446_v63, %v1783_v41 }
0x141f   :  { %v1792_v47 = vsel %vm1789_vm4, %v1791_v32, %v1787_v1 }
0x1420   :  { %v1795_v4 = vmul.f32 2.0, %v1792_v47 }
0x1422   :  { %v2289_v7 = vadd.f32 -1.0, %v1795_v4 }
0x1424   :  { %v1799_v35 = vsel %vm34_vm11, %v2289_v7, %v1792_v47 }
0x1425   :  { %v1801_v30 = vmul.f32 %v1799_v35, %v1777_v34 }
0x1427   :  { %1803 = vrot.lane.b32.xlu2 %v1801_v30, %s2536_s0 }
0x1481   :  { %v1804_v19 = vpop.permute.xlu2 %1803 }
0x1482   :  { %v1806_v60 = vadd.f32 %v1804_v19, %v1800_v39  ;;  %v3493_v39 = vsel %vm2749_vm10, %v3234_v23, %v3182_v50 }
0x1484   :  { %2447 = vtanh.f32 %v1806_v60 }
0x148a   :  { %v2448_v29 = vpop.eup %2447 }
0x148b   :  { %v1808_v25 = vmul.f32 %v2448_v29, %v1799_v35  ;;  %v3492_v35 = vsel %vm2745_vm9, %v3232_v44, %v3180_v51 }
0x148d   :  { %1812 = vrot.lane.b32.xlu0 %v1808_v25, %s2536_s0 }
0x14ff   :  { %v1813_v31 = vpop.permute.xlu0 %1812 }
0x1500   :  { %2290 = vmatmul.msk.f32.vlgmr.msra.gmra.mxu2 %vm257_vm5, %v1813_v31  ;;  %2291 = vmatmul.msk.f32.vlgmr.msra.gmra.mxu3 %vm257_vm5, %v1813_v31 }
0x1583   :  { %v1833_v48 = vpop.f32.mrf.mxu2  ;;  %v1853_v54 = vpop.f32.mrf.mxu3 }
0x1584   :  { %v1856_v58 = vadd.f32 %v1833_v48, %v1809_v22  ;;  %v1857_v10 = vadd.f32 %v1853_v54, %v3491_v11 }
0x1586   :  { %v2292_v45 = vmul.f32 -1.442695, %v1856_v58  ;;  %v1859_v46 = vmul.f32 2.0, %v1857_v10 }
0x1588   :  { %2449 = vpow2.f32 %v2292_v45  ;;  %v1861_v20 = vsel %vm34_vm11, %v1859_v46, %v1857_v10 }
0x1589   :  { %v2293_v18 = vmul.f32 -1.442695, %v1861_v20 }
0x158b   :  { %2451 = vpow2.f32 %v2293_v18 }
0x158e   :  { %v2450_v21 = vpop.eup %2449 }
0x158f   :  { %v1868_v14 = vadd.f32 1.0, %v2450_v21 }
0x1591   :  { %v2452_v61 = vpop.eup %2451  ;;  %2453 = vrcp.f32 %v1868_v14  ;;  %v1881_v3 = vand.u32 2147483648, %v1868_v14  ;;  %vm1875_vm13 = vweird.f32 %v1868_v14  ;;  %v1879_v27 = vand.u32 2147483647, %v1868_v14 }
0x1592   :  { %v1869_v2 = vadd.f32 1.0, %v2452_v61 }
0x1593   :  { %v1882_v24 = vor.u32 1.1754944e-38, %v1881_v3  ;;  %vm1880_vm15 = vcmp.eq.f32.partialorder %v1879_v27, 8.507059e+37 }
0x1594   :  { %2455 = vrcp.f32 %v1869_v2  ;;  %v1896_v56 = vand.u32 2147483648, %v1869_v2  ;;  %v1894_v36 = vand.u32 2147483647, %v1869_v2  ;;  %vm1890_vm3 = vweird.f32 %v1869_v2 }
0x1596   :  { %v1897_v63 = vor.u32 1.1754944e-38, %v1896_v56  ;;  %vm1895_vm12 = vcmp.eq.f32.partialorder %v1894_v36, 8.507059e+37 }
0x1597   :  { %v2454_v40 = vpop.eup %2453 }
0x1598   :  { %v1871_v22 = vmul.f32 %v2454_v40, %v1868_v14  ;;  %vm1876_vm7 = vweird.f32 %v2454_v40 }
0x1599   :  { %vm1877_vm14 = vmor %vm1875_vm13, %vm1876_vm7 }
0x159a   :  { %v2456_v12 = vpop.eup %2455  ;;  %v1872_v26 = vsub.f32 1.0, %v1871_v22 }
0x159b   :  { %v1886_v52 = vmul.f32 %v2456_v12, %v1869_v2  ;;  %vm1891_vm2 = vweird.f32 %v2456_v12 }
0x159c   :  { %v1873_v53 = vmul.f32 %v2454_v40, %v1872_v26  ;;  %vm1892_vm8 = vmor %vm1890_vm3, %vm1891_vm2 }
0x159d   :  { %v1887_v42 = vsub.f32 1.0, %v1886_v52 }
0x159e   :  { %v1874_v38 = vadd.f32 %v2454_v40, %v1873_v53 }
0x159f   :  { %v1888_v55 = vmul.f32 %v2456_v12, %v1887_v42 }
0x15a0   :  { %v1878_v15 = vsel %vm1877_vm14, %v2454_v40, %v1874_v38 }
0x15a1   :  { %v1889_v5 = vadd.f32 %v2456_v12, %v1888_v55  ;;  %v1883_v37 = vsel %vm1880_vm15, %v1882_v24, %v1878_v15  ;;  %v3494_v24 = vsel %vm2745_vm9, %v3256_v13, %v3252_v57 }
0x15a2   :  { %v1906_v1 = vmul.f32 %v1883_v37, %v1806_v60 }
0x15a3   :  { %v1893_v33 = vsel %vm1892_vm8, %v2456_v12, %v1889_v5 }
0x15a4   :  { %v1898_v6 = vsel %vm1895_vm12, %v1897_v63, %v1893_v33 }
0x15a5   :  { %v1901_v62 = vmul.f32 2.0, %v1898_v6 }
0x15a7   :  { %v2295_v41 = vadd.f32 -1.0, %v1901_v62 }
0x15a9   :  { %v1905_v32 = vsel %vm34_vm11, %v2295_v41, %v1898_v6 }
0x15aa   :  { %v1907_v28 = vmul.f32 %v1905_v32, %v1883_v37  ;;  %v3495_v37 = vsel %vm2749_vm10, %v3258_v59, %v3254_v8 }
0x15ac   :  { %1909 = vrot.lane.b32.xlu1 %v1907_v28, %s2536_s0 }
0x161e   :  { %v1910_v49 = vpop.permute.xlu1 %1909 }
0x161f   :  { %v1912_v47 = vadd.f32 %v1910_v49, %v1906_v1 }
0x1621   :  { %2457 = vtanh.f32 %v1912_v47 }
0x1627   :  { %v2458_v4 = vpop.eup %2457 }
0x1628   :  { %v1914_v43 = vmul.f32 %v2458_v4, %v1905_v32 }
0x162a   :  { %1918 = vrot.lane.b32.xlu2 %v1914_v43, %s2536_s0 }
0x1684   :  { %v1919_v0 = vpop.permute.xlu2 %1918 }
0x1685   :  { %2296 = vmatmul.msk.f32.vlgmr.msrb.gmra.mxu0 %vm257_vm5, %v1919_v0  ;;  %2297 = vmatmul.msk.f32.vlgmr.msrb.gmra.mxu1 %vm257_vm5, %v1919_v0 }
0x1702   :  { %v1939_v7 = vpop.f32.mrf.mxu0  ;;  %v1959_v34 = vpop.f32.mrf.mxu1 }
0x1703   :  { %v1962_v30 = vadd.f32 %v1939_v7, %v3492_v35  ;;  %v1963_v19 = vadd.f32 %v1959_v34, %v3493_v39 }
0x1705   :  { %v2298_v60 = vmul.f32 -1.442695, %v1962_v30  ;;  %v1965_v29 = vmul.f32 2.0, %v1963_v19 }
0x1707   :  { %2459 = vpow2.f32 %v2298_v60  ;;  %v1967_v25 = vsel %vm34_vm11, %v1965_v29, %v1963_v19 }
0x1708   :  { %v2299_v31 = vmul.f32 -1.442695, %v1967_v25 }
0x170a   :  { %2461 = vpow2.f32 %v2299_v31 }
0x170d   :  { %v2460_v48 = vpop.eup %2459 }
0x170e   :  { %v1974_v54 = vadd.f32 1.0, %v2460_v48 }
0x1710   :  { %v2462_v58 = vpop.eup %2461  ;;  %2463 = vrcp.f32 %v1974_v54  ;;  %v1987_v40 = vand.u32 2147483648, %v1974_v54  ;;  %vm1981_vm3 = vweird.f32 %v1974_v54  ;;  %v1985_v12 = vand.u32 2147483647, %v1974_v54 }
0x1711   :  { %v1975_v51 = vadd.f32 1.0, %v2462_v58 }
0x1712   :  { %v1988_v53 = vor.u32 1.1754944e-38, %v1987_v40  ;;  %vm1986_vm8 = vcmp.eq.f32.partialorder %v1985_v12, 8.507059e+37 }
0x1713   :  { %2465 = vrcp.f32 %v1975_v51  ;;  %v2002_v20 = vand.u32 2147483648, %v1975_v51  ;;  %v2000_v21 = vand.u32 2147483647, %v1975_v51  ;;  %vm1996_vm6 = vweird.f32 %v1975_v51 }
0x1715   :  { %v2003_v2 = vor.u32 1.1754944e-38, %v2002_v20  ;;  %vm2001_vm2 = vcmp.eq.f32.partialorder %v2000_v21, 8.507059e+37  ;;  %v2132_v20 = vld [vmem:[#allocation3 + $0x260] sm:$0xff] }
0x1716   :  { %v2464_v44 = vpop.eup %2463  ;;  %v2130_v21 = vld [vmem:[#allocation3 + $0x240] sm:$0xff] }
0x1717   :  { %v1977_v11 = vmul.f32 %v2464_v44, %v1974_v54  ;;  %vm1982_vm0 = vweird.f32 %v2464_v44 }
0x1718   :  { %vm1983_vm7 = vmor %vm1981_vm3, %vm1982_vm0 }
0x1719   :  { %v2466_v10 = vpop.eup %2465  ;;  %v1978_v45 = vsub.f32 1.0, %v1977_v11 }
0x171a   :  { %v1992_v50 = vmul.f32 %v2466_v10, %v1975_v51  ;;  %vm1997_vm4 = vweird.f32 %v2466_v10 }
0x171b   :  { %v1979_v46 = vmul.f32 %v2464_v44, %v1978_v45  ;;  %vm1998_vm1 = vmor %vm1996_vm6, %vm1997_vm4 }
0x171c   :  { %v1993_v23 = vsub.f32 1.0, %v1992_v50 }
0x171d   :  { %v1980_v61 = vadd.f32 %v2464_v44, %v1979_v46  ;;  %v2133_v46 = vld [vmem:[#allocation3 + $0x270] sm:$0xff] }
0x171e   :  { %v1994_v18 = vmul.f32 %v2466_v10, %v1993_v23  ;;  %v2134_v23 = vld [vmem:[#allocation3 + $0x280] sm:$0xff] }
0x171f   :  { %v1984_v42 = vsel %vm1983_vm7, %v2464_v44, %v1980_v61  ;;  %2153 = vmatpush.msra.mxu0 %v2134_v23  ;;  %v2128_v61 = vld [vmem:[#allocation3 + $0x220] sm:$0xff] }
0x1720   :  { %v1995_v14 = vadd.f32 %v2466_v10, %v1994_v18  ;;  %v1989_v55 = vsel %vm1986_vm8, %v1988_v53, %v1984_v42  ;;  %v2131_v18 = vld [vmem:[#allocation3 + $0x250] sm:$0xff] }
0x1721   :  { %v2012_v38 = vmul.f32 %v1989_v55, %v1912_v47  ;;  %2154 = vmatpush.msra.mxu0 %v2133_v46  ;;  %v2136_v42 = vld [vmem:[#allocation3 + $0x290] ss:$8 sm:$0x3] }
0x1722   :  { %v1999_v22 = vsel %vm1998_vm1, %v2466_v10, %v1995_v14  ;;  %v2129_v14 = vld [vmem:[#allocation3 + $0x230] sm:$0xff]  ;;  %v2138_v53 = vperm.slane %v2136_v42, 0 }
0x1723   :  { %v2004_v26 = vsel %vm2001_vm2, %v2003_v2, %v1999_v22  ;;  %2155 = vmatpush.msra.mxu0 %v2132_v20  ;;  %v2127_v2 = vld [vmem:[#allocation3 + $0x210] sm:$0xff] }
0x1724   :  { %v2007_v52 = vmul.f32 2.0, %v2004_v26 }
0x1725   :  { %2156 = vmatpush.msra.mxu0 %v2131_v18 }
0x1726   :  { %v2301_v56 = vadd.f32 -1.0, %v2007_v52 }
0x1727   :  { %2157 = vmatpush.msra.mxu0 %v2130_v21 }
0x1728   :  { %v2011_v36 = vsel %vm34_vm11, %v2301_v56, %v2004_v26 }
0x1729   :  { %v2013_v5 = vmul.f32 %v2011_v36, %v1989_v55  ;;  %2158 = vmatpush.msra.mxu0 %v2129_v14 }
0x172b   :  { %2015 = vrot.lane.b32.xlu0 %v2013_v5, %s2536_s0  ;;  %2159 = vmatpush.msra.mxu0 %v2128_v61 }
0x172d   :  { %2160 = vmatpush.msra.mxu0 %v2127_v2 }
0x179d   :  { %v2016_v63 = vpop.permute.xlu0 %2015 }
0x179e   :  { %v3449_v3 = vadd.f32 %v2016_v63, %v2012_v38 }
0x17a0   :  { %2467 = vtanh.f32 %v3449_v3 }
0x17a6   :  { %v2468_v33 = vpop.eup %2467 }
0x17a7   :  { %v2020_v27 = vmul.f32 %v2468_v33, %v2011_v36 }
0x17a9   :  { %2024 = vrot.lane.b32.xlu1 %v2020_v27, %s2536_s0 }
0x181b   :  { %v2025_v6 = vpop.permute.xlu1 %2024 }
0x181c   :  { %2302 = vmatmul.msk.f32.vlgmr.msrb.gmra.mxu2 %vm257_vm5, %v2025_v6  ;;  %2303 = vmatmul.msk.f32.vlgmr.msrb.gmra.mxu3 %vm257_vm5, %v2025_v6 }
0x189f   :  { %v2045_v62 = vpop.f32.mrf.mxu2  ;;  %v2065_v15 = vpop.f32.mrf.mxu3 }
0x18a0   :  { %v2068_v41 = vadd.f32 %v2045_v62, %v3494_v24  ;;  %v2069_v32 = vadd.f32 %v2065_v15, %v3495_v37 }
0x18a2   :  { %v2304_v28 = vmul.f32 -1.442695, %v2068_v41  ;;  %v2071_v1 = vmul.f32 2.0, %v2069_v32 }
0x18a4   :  { %2469 = vpow2.f32 %v2304_v28  ;;  %v2073_v49 = vsel %vm34_vm11, %v2071_v1, %v2069_v32 }
0x18a5   :  { %v2305_v47 = vmul.f32 -1.442695, %v2073_v49 }
0x18a7   :  { %2471 = vpow2.f32 %v2305_v47 }
0x18aa   :  { %v2470_v4 = vpop.eup %2469 }
0x18ab   :  { %v2080_v16 = vadd.f32 1.0, %v2470_v4 }
0x18ad   :  { %v2472_v43 = vpop.eup %2471  ;;  %2473 = vrcp.f32 %v2080_v16  ;;  %v2093_v25 = vand.u32 2147483648, %v2080_v16  ;;  %vm2087_vm15 = vweird.f32 %v2080_v16  ;;  %v2091_v48 = vand.u32 2147483647, %v2080_v16 }
0x18ae   :  { %v2081_v57 = vadd.f32 1.0, %v2472_v43 }
0x18af   :  { %v2094_v44 = vor.u32 1.1754944e-38, %v2093_v25  ;;  %vm2092_vm6 = vcmp.eq.f32.partialorder %v2091_v48, 8.507059e+37 }
0x18b0   :  { %2475 = vrcp.f32 %v2081_v57  ;;  %v2108_v35 = vand.u32 2147483648, %v2081_v57  ;;  %v2106_v39 = vand.u32 2147483647, %v2081_v57  ;;  %vm2102_vm10 = vweird.f32 %v2081_v57 }
0x18b2   :  { %v2109_v29 = vor.u32 1.1754944e-38, %v2108_v35  ;;  %vm2107_vm14 = vcmp.eq.f32.partialorder %v2106_v39, 8.507059e+37 }
0x18b3   :  { %v2474_v13 = vpop.eup %2473 }
0x18b4   :  { %v2083_v17 = vmul.f32 %v2474_v13, %v2080_v16  ;;  %vm2088_vm12 = vweird.f32 %v2474_v13 }
0x18b5   :  { %vm2089_vm4 = vmor %vm2087_vm15, %vm2088_vm12 }
0x18b6   :  { %v2476_v0 = vpop.eup %2475  ;;  %v2084_v7 = vsub.f32 1.0, %v2083_v17 }
0x18b7   :  { %v2098_v8 = vmul.f32 %v2476_v0, %v2081_v57  ;;  %vm2103_vm9 = vweird.f32 %v2476_v0 }
0x18b8   :  { %v2085_v34 = vmul.f32 %v2474_v13, %v2084_v7  ;;  %vm2104_vm13 = vmor %vm2102_vm10, %vm2103_vm9 }
0x18b9   :  { %v2099_v59 = vsub.f32 1.0, %v2098_v8 }
0x18ba   :  { %v2086_v60 = vadd.f32 %v2474_v13, %v2085_v34 }
0x18bb   :  { %v2100_v30 = vmul.f32 %v2476_v0, %v2099_v59 }
0x18bc   :  { %v2090_v51 = vsel %vm2089_vm4, %v2474_v13, %v2086_v60 }
0x18bd   :  { %v2101_v19 = vadd.f32 %v2476_v0, %v2100_v30  ;;  %v2095_v10 = vsel %vm2092_vm6, %v2094_v44, %v2090_v51 }
0x18be   :  { %v2118_v9 = vmul.f32 %v2095_v10, %v3449_v3 }
0x18bf   :  { %v2105_v31 = vsel %vm2104_vm13, %v2476_v0, %v2101_v19 }
0x18c0   :  { %v2110_v54 = vsel %vm2107_vm14, %v2109_v29, %v2105_v31 }
0x18c1   :  { %v2113_v58 = vmul.f32 2.0, %v2110_v54 }
0x18c3   :  { %v2307_v11 = vadd.f32 -1.0, %v2113_v58 }
0x18c5   :  { %v2117_v45 = vsel %vm34_vm11, %v2307_v11, %v2110_v54  ;;  %vm2165_vm11 = vcmask 9216  }
0x18c6   :  { %v2119_v50 = vmul.f32 %v2117_v45, %v2095_v10 }
0x18c8   :  { %2121 = vrot.lane.b32.xlu2 %v2119_v50, %s2536_s0 }
0x1922   :  { %v2122_v40 = vpop.permute.xlu2 %2121 }
0x1923   :  { %v2124_v22 = vadd.f32 %v2122_v40, %v2118_v9 }
0x1925   :  { %2477 = vtanh.f32 %v2124_v22 }
0x192b   :  { %v2478_v12 = vpop.eup %2477 }
0x192c   :  { %v2126_v26 = vmul.f32 %v2478_v12, %v2117_v45 }
0x192e   :  { %2141 = vrot.lane.b32.xlu0 %v2126_v26, %s2536_s0 }
0x19a0   :  { %v2142_v52 = vpop.permute.xlu0 %2141 }
0x19a1   :  { %2308 = vmatmul.msk.f32.vlgmr.msra.gmra.mxu0 %vm257_vm5, %v2142_v52 }
0x1a1e   :  { %v2162_v56 = vpop.f32.mrf.mxu0 }
0x1a1f   :  { %v2163_v55 = vadd.f32 %v2162_v56, %v2138_v53 }
0x1a21   :  { %2166 = vst.msk [vmem:[#allocation6] sm:$0x3] %vm2165_vm11, %v2163_v55 }
0x1a22   :  { %2177 = dma.vmem_to_hbm [thread:$0]  %s2173_s4, 32, %s2175_s7, [#allocation5]  }
0x1a23   :  { %2529 = dma.done.wait [#allocation5], 32  }
0x1a24   :  { %2530 = vsyncadd [#allocation5], 4294967264 }
0x1a25   :  { %2182 = vsyncpa [#allocation4], 1 }
0x1a26   :  { %2183 = vsyncpa [#allocation5], 1 }

</bundles_post_ra>
